<compile_context>
chip_gen: v5e
topology: v5e:2x2
jax: 0.10.0
libtpu: 0.0.40
codegen_flags: <defaults>
</compile_context>

<pallas_src>
import functools

import jax
import jax.numpy as jnp
from jax.experimental import pallas as pl
from jax.experimental.pallas import tpu as pltpu


TM_MAX = 1024       # max target rows per tile (sublane axis), multiple of 32 (int8 A packing)
TK_MAX = 2048       # max source columns per K tile (lane axis), multiple of 128
MIN_ROW_TILES = 2   # guarantee >=2 row tiles so v7x's two TensorCores both get work


def _cdiv(a, b):
    return -(-a // b)


def _round_up(x, m):
    return (x + m - 1) // m * m


def _pad2d(x, rows, cols, dtype):
    x = x.astype(dtype)  # cast first so the pad pass runs in the narrow dtype
    r, c = x.shape
    return jnp.pad(x, ((0, rows - r), (0, cols - c)))


@functools.lru_cache(maxsize=None)
def _vmem_limit_bytes():
    """~75% of physical VMEM, clamped to [48, 96] MiB (v7x 64 MiB/TC -> 48; v5e/v6e 128 -> 96)."""
    mib = 1024 * 1024
    try:
        cap = int(pltpu.get_tpu_info().vmem_capacity_bytes)
    except Exception:
        return 48 * mib  # v7x-safe fallback
    return max(48 * mib, min(cap * 3 // 4, 96 * mib))


# ----------------------------------------------------------------------------
# Pallas kernel: one fused SAGEConv layer, tiled over (target rows, source K)
# ----------------------------------------------------------------------------
def _sage_layer_kernel(a_ref, xsrc_ref, xtgt_ref, wl_ref, wr_ref, b_ref, invd_ref,
                       o_ref, acc_ref, *, mode, cout):
    """Grid = (i: target-row tiles [parallel], k: source K tiles [arbitrary]).

    acc_ref accumulates the (unnormalized) neighbor-sum partials (tm, cin_pad) in f32.
    Finalize (k == last): mean via inv_deg, lin_l + lin_r + bias, relu or masked log_softmax.
    """
    k = pl.program_id(1)

    @pl.when(k == 0)
    def _():
        acc_ref[...] = jnp.zeros_like(acc_ref)

    # A is streamed from HBM as int8 (0/1 edge counts) and widened to bf16 on the VPU just
    # before the MXU dot -> half the HBM bytes on the dominant stream, f32 accumulation.
    acc_ref[...] += jnp.dot(a_ref[...].astype(jnp.bfloat16), xsrc_ref[...],
                            preferred_element_type=jnp.float32)

    @pl.when(k == pl.num_programs(1) - 1)
    def _():
        # Deferred mean: scale the summed neighbors by 1/deg (f32, broadcast over channels).
        agg = (acc_ref[...] * invd_ref[...]).astype(jnp.bfloat16)
        h = (jnp.dot(agg, wl_ref[...], preferred_element_type=jnp.float32)
             + jnp.dot(xtgt_ref[...], wr_ref[...], preferred_element_type=jnp.float32)
             + b_ref[...])
        if mode == "relu":
            o_ref[...] = jnp.maximum(h, 0.0).astype(o_ref.dtype)
        else:  # "log_softmax" over the real (unpadded) channels only
            lane = jax.lax.broadcasted_iota(jnp.int32, h.shape, 1)
            valid = lane < cout
            h = jnp.where(valid, h, -jnp.inf)
            m = jnp.max(h, axis=-1, keepdims=True)
            s = h - m
            lse = jnp.log(jnp.sum(jnp.exp(s), axis=-1, keepdims=True))
            o_ref[...] = jnp.where(valid, s - lse, 0.0).astype(o_ref.dtype)


def sage_layer(x, edge_index, n_src, n_tgt, w_l, w_r, b, *, mode):
    """One fused SAGEConv layer via a tiled, pipelined pallas_call."""
    cin = x.shape[1]
    cout = w_l.shape[1]
    nt, ns = n_tgt, n_src

    # Tile derivation: as large as TM_MAX/TK_MAX allow, but at least MIN_ROW_TILES row tiles
    # (v7x megacore) and multiples of 32 / 128 (int8 sublane packing / lane width).
    tm = min(TM_MAX, max(_round_up(_cdiv(nt, MIN_ROW_TILES), 32), 32))
    tk = min(TK_MAX, _round_up(ns, 128))
    nt_pad = _round_up(nt, tm)
    ns_pad = _round_up(ns, tk)
    cin_pad = _round_up(cin, 128)
    cout_pad = _round_up(cout, 128)

    src, tgt = edge_index[0], edge_index[1]

    # Unnormalized adjacency built directly at padded shape in int8 (edge multiplicity counts;
    # exact for realistic graphs -- duplicate-edge multiplicity must stay < 128).
    a_p = jnp.zeros((nt_pad, ns_pad), jnp.int8).at[tgt, src].add(
        jnp.ones(src.shape, jnp.int8))
    deg = jnp.zeros((nt_pad,), jnp.float32).at[tgt].add(1.0)
    inv_deg = (1.0 / jnp.maximum(deg, 1.0)).reshape(nt_pad, 1)

    # bf16 MXU operands (f32 accumulation inside the kernel); bias / inv_deg stay f32.
    xs_p = _pad2d(x[:n_src], ns_pad, cin_pad, jnp.bfloat16)
    xt_p = _pad2d(x[:n_tgt], nt_pad, cin_pad, jnp.bfloat16)
    wl_p = _pad2d(w_l, cin_pad, cout_pad, jnp.bfloat16)
    wr_p = _pad2d(w_r, cin_pad, cout_pad, jnp.bfloat16)
    b_p = _pad2d(b, 1, cout_pad, jnp.float32)

    out_dtype = jnp.bfloat16 if mode == "relu" else jnp.float32
    grid = (nt_pad // tm, ns_pad // tk)
    kernel = functools.partial(_sage_layer_kernel, mode=mode, cout=cout)

    out = pl.pallas_call(
        kernel,
        out_shape=jax.ShapeDtypeStruct((nt_pad, cout_pad), out_dtype),
        grid=grid,
        in_specs=[
            pl.BlockSpec((tm, tk), lambda i, k: (i, k)),             # A (int8, streamed)
            pl.BlockSpec((tk, cin_pad), lambda i, k: (k, 0)),        # x_src (streamed over k)
            pl.BlockSpec((tm, cin_pad), lambda i, k: (i, 0)),        # x_tgt (k-invariant)
            pl.BlockSpec((cin_pad, cout_pad), lambda i, k: (0, 0)),  # W_l (resident)
            pl.BlockSpec((cin_pad, cout_pad), lambda i, k: (0, 0)),  # W_r (resident)
            pl.BlockSpec((1, cout_pad), lambda i, k: (0, 0)),        # bias (resident)
            pl.BlockSpec((tm, 1), lambda i, k: (i, 0)),              # inv_deg (k-invariant)
        ],
        out_specs=pl.BlockSpec((tm, cout_pad), lambda i, k: (i, 0)),
        scratch_shapes=[pltpu.VMEM((tm, cin_pad), jnp.float32)],
        compiler_params=pltpu.CompilerParams(
            dimension_semantics=("parallel", "arbitrary"),
            vmem_limit_bytes=_vmem_limit_bytes(),
        ),
    )(a_p, xs_p, xt_p, wl_p, wr_p, b_p, inv_deg)

    return out[:nt, :cout]


# ----------------------------------------------------------------------------
# Plain-JAX glue (mirrors SAGE.forward(x, adjs) in eval mode)
# ----------------------------------------------------------------------------
def sage_forward(x, adjs, params):
    """adjs: list of (edge_index, (n_src, n_tgt)) per layer, like PyG NeighborSampler adjs."""
    num_layers = len(params)
    x = x.astype(jnp.bfloat16)  # feature stream dtype; done once up front
    for i, (edge_index, size) in enumerate(adjs):
        n_src, n_tgt = size
        w_l, w_r, b = params[i]
        mode = "relu" if i != num_layers - 1 else "log_softmax"
        x = sage_layer(x, edge_index, n_src, n_tgt, w_l, w_r, b, mode=mode)
        # F.dropout(p=0.5, training=False) == identity in eval mode.
    return x


def init_params(key, in_channels, hidden_channels, out_channels):
    """Deterministic SAGEConv parameters (W stored as (in, out) = W^T)."""
    dims = [(in_channels, hidden_channels), (hidden_channels, out_channels)]
    params = []
    for cin, cout in dims:
        key, k1, k2, k3 = jax.random.split(key, 4)
        scale = 1.0 / jnp.sqrt(jnp.float32(cin))
        w_l = jax.random.uniform(k1, (cin, cout), jnp.float32, -scale, scale)
        w_r = jax.random.uniform(k2, (cin, cout), jnp.float32, -scale, scale)
        b = jax.random.uniform(k3, (1, cout), jnp.float32, -scale, scale)
        params.append((w_l, w_r, b))
    return params


# ----------------------------------------------------------------------------
# Example run
# ----------------------------------------------------------------------------
if __name__ == "__main__":
    key = jax.random.PRNGKey(0)

    in_channels, hidden_channels, out_channels = 64, 64, 16
    # Sampled bipartite sizes: sources L0, targets L0 (= sources L1), targets L1.
    n0, n1, n2 = 1024, 512, 128
    e0, e1 = 8192, 2048                      # edges per layer (~16 neighbors / target)

    key, kx, ke0s, ke0t, ke1s, ke1t, kp = jax.random.split(key, 7)
    x = jax.random.normal(kx, (n0, in_channels), jnp.float32)

    edge_index_0 = jnp.stack([
        jax.random.randint(ke0s, (e0,), 0, n0),   # source ids (into x)
        jax.random.randint(ke0t, (e0,), 0, n1),   # target ids (into x_target)
    ])
    edge_index_1 = jnp.stack([
        jax.random.randint(ke1s, (e1,), 0, n1),
        jax.random.randint(ke1t, (e1,), 0, n2),
    ])
    adjs = [(edge_index_0, (n0, n1)), (edge_index_1, (n1, n2))]

    params = init_params(kp, in_channels, hidden_channels, out_channels)

    out = sage_forward(x, adjs, params)
    out = jax.block_until_ready(out)

    assert out.shape == (n2, out_channels)
    # log_softmax rows must sum to ~1 in probability space
    assert jnp.allclose(jnp.sum(jnp.exp(out), axis=-1), 1.0, atol=1e-3)
    assert bool(jnp.all(jnp.isfinite(out)))
    print("KERNEL_OK")
</pallas_src>

<mosaic_0001>
module attributes {stable_mosaic.version = 11 : i64} {
  func.func @_sage_layer_kernel(%arg0: i32, %arg1: i32, %arg2: memref<256x1024xi8, #tpu.memory_space<vmem>>, %arg3: memref<1024x128xbf16, #tpu.memory_space<vmem>>, %arg4: memref<256x128xbf16, #tpu.memory_space<vmem>>, %arg5: memref<128x128xbf16, #tpu.memory_space<vmem>>, %arg6: memref<128x128xbf16, #tpu.memory_space<vmem>>, %arg7: memref<1x128xf32, #tpu.memory_space<vmem>>, %arg8: memref<256x1xf32, #tpu.memory_space<vmem>>, %arg9: memref<256x128xbf16, #tpu.memory_space<vmem>>, %arg10: memref<256x128xf32, #tpu.memory_space<vmem>>) attributes {dimension_semantics = [#tpu.dimension_semantics<parallel>, #tpu.dimension_semantics<arbitrary>], iteration_bounds = array<i64: 2, 1>, scalar_prefetch = 0 : i64, scratch_operands = 1 : i64, tpu.core_type = #tpu.core_type<tc>, window_params = [{transform_indices = @transform_0, window_bounds = array<i64: 256, 1024>}, {transform_indices = @transform_1, window_bounds = array<i64: 1024, 128>}, {transform_indices = @transform_2, window_bounds = array<i64: 256, 128>}, {pipeline_mode = #tpu.pipeline_mode<synchronous>, transform_indices = @transform_3, window_bounds = array<i64: 128, 128>}, {pipeline_mode = #tpu.pipeline_mode<synchronous>, transform_indices = @transform_4, window_bounds = array<i64: 128, 128>}, {pipeline_mode = #tpu.pipeline_mode<synchronous>, transform_indices = @transform_5, window_bounds = array<i64: 1, 128>}, {transform_indices = @transform_6, window_bounds = array<i64: 256, 1>}, {transform_indices = @transform_7, window_bounds = array<i64: 256, 128>}]} {
    %c0_i32 = arith.constant 0 : i32
    %0 = arith.cmpi eq, %arg1, %c0_i32 : i32
    %1 = arith.extui %0 : i1 to i32
    %c0_i32_0 = arith.constant 0 : i32
    %2 = arith.cmpi ne, %1, %c0_i32_0 : i32
    scf.if %2 {
      %cst_10 = arith.constant 0.000000e+00 : f32
      %13 = vector.broadcast %cst_10 : f32 to vector<256x128xf32>
      %c0_11 = arith.constant 0 : index
      %c0_12 = arith.constant 0 : index
      %14 = vector.load %arg10[%c0_11, %c0_12] : memref<256x128xf32, #tpu.memory_space<vmem>>, vector<256x128xf32>
      tpu.vector_store %arg10[%c0_11, %c0_12], %13 {strides = array<i32>} : memref<256x128xf32, #tpu.memory_space<vmem>>, vector<256x128xf32>,
    } else {
    }
    %c0 = arith.constant 0 : index
    %c0_1 = arith.constant 0 : index
    %3 = vector.load %arg10[%c0, %c0_1] : memref<256x128xf32, #tpu.memory_space<vmem>>, vector<256x128xf32>
    %c0_2 = arith.constant 0 : index
    %c0_3 = arith.constant 0 : index
    %4 = vector.load %arg2[%c0_2, %c0_3] : memref<256x1024xi8, #tpu.memory_space<vmem>>, vector<256x1024xi8>
    %5 = arith.sitofp %4 : vector<256x1024xi8> to vector<256x1024xbf16>
    %c0_4 = arith.constant 0 : index
    %c0_5 = arith.constant 0 : index
    %6 = vector.load %arg3[%c0_4, %c0_5] : memref<1024x128xbf16, #tpu.memory_space<vmem>>, vector<1024x128xbf16>
    %cst = arith.constant dense<0.000000e+00> : vector<256x128xf32>
    %7 = tpu.matmul %5, %6, %cst {dimension_numbers = #tpu.dot_dimension_numbers<[1], [0], [0], [1], [0, 0, 1, 1], [], []>} : vector<256x1024xbf16>, vector<1024x128xbf16>, vector<256x128xf32> -> vector<256x128xf32>
    %8 = arith.addf %3, %7 : vector<256x128xf32>
    %c0_6 = arith.constant 0 : index
    %c0_7 = arith.constant 0 : index
    %9 = vector.load %arg10[%c0_6, %c0_7] : memref<256x128xf32, #tpu.memory_space<vmem>>, vector<256x128xf32>
    tpu.vector_store %arg10[%c0_6, %c0_7], %8 {strides = array<i32>} : memref<256x128xf32, #tpu.memory_space<vmem>>, vector<256x128xf32>,
    %c0_i32_8 = arith.constant 0 : i32
    %10 = arith.cmpi eq, %arg1, %c0_i32_8 : i32
    %11 = arith.extui %10 : i1 to i32
    %c0_i32_9 = arith.constant 0 : i32
    %12 = arith.cmpi ne, %11, %c0_i32_9 : i32
    scf.if %12 {
      %c0_10 = arith.constant 0 : index
      %c0_11 = arith.constant 0 : index
      %13 = vector.load %arg10[%c0_10, %c0_11] : memref<256x128xf32, #tpu.memory_space<vmem>>, vector<256x128xf32>
      %c0_12 = arith.constant 0 : index
      %c0_13 = arith.constant 0 : index
      %14 = vector.load %arg8[%c0_12, %c0_13] : memref<256x1xf32, #tpu.memory_space<vmem>>, vector<256x1xf32>
      %15 = vector.broadcast %14 : vector<256x1xf32> to vector<256x128xf32>
      %16 = arith.mulf %13, %15 : vector<256x128xf32>
      %17 = arith.truncf %16 : vector<256x128xf32> to vector<256x128xbf16>
      %c0_14 = arith.constant 0 : index
      %c0_15 = arith.constant 0 : index
      %18 = vector.load %arg5[%c0_14, %c0_15] : memref<128x128xbf16, #tpu.memory_space<vmem>>, vector<128x128xbf16>
      %cst_16 = arith.constant dense<0.000000e+00> : vector<256x128xf32>
      %19 = tpu.matmul %17, %18, %cst_16 {dimension_numbers = #tpu.dot_dimension_numbers<[1], [0], [0], [1], [0, 0, 1, 1], [], []>} : vector<256x128xbf16>, vector<128x128xbf16>, vector<256x128xf32> -> vector<256x128xf32>
      %c0_17 = arith.constant 0 : index
      %c0_18 = arith.constant 0 : index
      %20 = vector.load %arg4[%c0_17, %c0_18] : memref<256x128xbf16, #tpu.memory_space<vmem>>, vector<256x128xbf16>
      %c0_19 = arith.constant 0 : index
      %c0_20 = arith.constant 0 : index
      %21 = vector.load %arg6[%c0_19, %c0_20] : memref<128x128xbf16, #tpu.memory_space<vmem>>, vector<128x128xbf16>
      %cst_21 = arith.constant dense<0.000000e+00> : vector<256x128xf32>
      %22 = tpu.matmul %20, %21, %cst_21 {dimension_numbers = #tpu.dot_dimension_numbers<[1], [0], [0], [1], [0, 0, 1, 1], [], []>} : vector<256x128xbf16>, vector<128x128xbf16>, vector<256x128xf32> -> vector<256x128xf32>
      %23 = arith.addf %19, %22 : vector<256x128xf32>
      %c0_22 = arith.constant 0 : index
      %c0_23 = arith.constant 0 : index
      %24 = vector.load %arg7[%c0_22, %c0_23] : memref<1x128xf32, #tpu.memory_space<vmem>>, vector<1x128xf32>
      %25 = vector.broadcast %24 : vector<1x128xf32> to vector<256x128xf32>
      %26 = arith.addf %23, %25 : vector<256x128xf32>
      %cst_24 = arith.constant 0.000000e+00 : f32
      %27 = vector.broadcast %cst_24 : f32 to vector<256x128xf32>
      %28 = arith.maximumf %26, %27 : vector<256x128xf32>
      %29 = arith.truncf %28 : vector<256x128xf32> to vector<256x128xbf16>
      %c0_25 = arith.constant 0 : index
      %c0_26 = arith.constant 0 : index
      %30 = vector.load %arg9[%c0_25, %c0_26] : memref<256x128xbf16, #tpu.memory_space<vmem>>, vector<256x128xbf16>
      tpu.vector_store %arg9[%c0_25, %c0_26], %29 {strides = array<i32>} : memref<256x128xbf16, #tpu.memory_space<vmem>>, vector<256x128xbf16>,
    } else {
    }
    return
  }
  func.func @transform_0(%arg0: i32, %arg1: i32) -> (i32, i32) {
    %c0_i32 = arith.constant 0 : i32
    return %arg0, %arg1 : i32, i32
  }
  func.func @transform_1(%arg0: i32, %arg1: i32) -> (i32, i32) {
    %c0_i32 = arith.constant 0 : i32
    %c0_i32_0 = arith.constant 0 : i32
    return %arg1, %c0_i32 : i32, i32
  }
  func.func @transform_2(%arg0: i32, %arg1: i32) -> (i32, i32) {
    %c0_i32 = arith.constant 0 : i32
    %c0_i32_0 = arith.constant 0 : i32
    return %arg0, %c0_i32 : i32, i32
  }
  func.func @transform_3(%arg0: i32, %arg1: i32) -> (i32, i32) {
    %c0_i32 = arith.constant 0 : i32
    %c0_i32_0 = arith.constant 0 : i32
    %c0_i32_1 = arith.constant 0 : i32
    return %c0_i32, %c0_i32_0 : i32, i32
  }
  func.func @transform_4(%arg0: i32, %arg1: i32) -> (i32, i32) {
    %c0_i32 = arith.constant 0 : i32
    %c0_i32_0 = arith.constant 0 : i32
    %c0_i32_1 = arith.constant 0 : i32
    return %c0_i32, %c0_i32_0 : i32, i32
  }
  func.func @transform_5(%arg0: i32, %arg1: i32) -> (i32, i32) {
    %c0_i32 = arith.constant 0 : i32
    %c0_i32_0 = arith.constant 0 : i32
    %c0_i32_1 = arith.constant 0 : i32
    return %c0_i32, %c0_i32_0 : i32, i32
  }
  func.func @transform_6(%arg0: i32, %arg1: i32) -> (i32, i32) {
    %c0_i32 = arith.constant 0 : i32
    %c0_i32_0 = arith.constant 0 : i32
    return %arg0, %c0_i32 : i32, i32
  }
  func.func @transform_7(%arg0: i32, %arg1: i32) -> (i32, i32) {
    %c0_i32 = arith.constant 0 : i32
    %c0_i32_0 = arith.constant 0 : i32
    return %arg0, %c0_i32 : i32, i32
  }
}

</mosaic_0001>

<bundles_post_ra>
// kernel: tpu_custom_call.1
= control target key start
LH: loop header
LB: loop body
LE: loop exit
PB: predicated region body
PF: predicated region fallthrough
CT: control target
= control target key end

     0   :  { %s5506_s0 = inlined_call_operand.hbm [shape: s8[512,1024], index: 0, kind: input, shape index: {}]   ;;  %s5507_s1 = inlined_call_operand.vmem [shape: bf16[1024,128], index: 1, kind: input, shape index: {}]   ;;  %s5508_s2 = inlined_call_operand.hbm [shape: bf16[512,128], index: 2, kind: input, shape index: {}]   ;;  %s5509_s3 = inlined_call_operand.hbm [shape: bf16[128,128], index: 3, kind: input, shape index: {}]   ;;  %s5510_s4 = inlined_call_operand.hbm [shape: bf16[128,128], index: 4, kind: input, shape index: {}]   ;;  %s5511_s5 = inlined_call_operand.vmem [shape: f32[1,128], index: 5, kind: input, shape index: {}]   ;;  %s5512_s6 = inlined_call_operand.vmem [shape: f32[512,1], index: 6, kind: input, shape index: {}]   ;;  %s5513_s7 = inlined_call_operand.hbm [shape: bf16[512,128], index: 7, kind: output, shape index: {}]  }
   0x1   :  { %5521 = sst [smem:[#allocation35_spill]] %s5506_s0 }
   0x2   :  { %5522 = sst [smem:[#allocation36_spill]] %s5509_s3 }
   0x3   :  { %5523 = sst [smem:[#allocation37_spill]] %s5510_s4 }
   0x4   :  { %12 = vsyncpa [#allocation4], 0 }
   0x5   :  { %14 = vsyncpa [#allocation4 + $0x1], 0 }
   0x6   :  { %15 = vsyncpa [#allocation7], 0 }
   0x7   :  { %17 = vsyncpa [#allocation7 + $0x1], 0 }
   0x8   :  { %18 = vsyncpa [#allocation10], 0 }
   0x9   :  { %19 = vsyncpa [#allocation5], 0 }
   0xa   :  { %21 = vsyncpa [#allocation5 + $0x1], 0  ;;  %s4493_s24 = smov 0   ;;  %s4495_s25 = smov 0  }
   0xb   :  { %s4497_s26 = smov 0   ;;  %s4499_s27 = smov 0  }
   0xc   :  { %s4501_s28 = smov 0   ;;  %s4503_s29 = smov 0  }
   0xd LB: > { %5524 = sst [smem:[#allocation17_spill]] %s4423_s24  ;;  %s4524_s30 = sadd.s32 4294967295, %s4443_s29   ;;  %s4443_s29 = sphi %s4503_s29, %s27_s29   ;;  %s4439_s28 = sphi %s4501_s28, %s5575_s28   ;;  %s4435_s27 = sphi %s4499_s27, %s5574_s27   ;;  %s4431_s26 = sphi %s4497_s26, %s5570_s26   ;;  %s4427_s25 = sphi %s4495_s25, %s5573_s25   ;;  %s4423_s24 = sphi %s4493_s24, %s5572_s24  }
   0xe   : > { %5525 = sst [smem:[#allocation18_spill]] %s4431_s26  ;;  %s3510_s8 = sadd.s32 4294967294, %s4443_s29  }
   0xf   : > { %p61_p0 = scmp.ne.s32.totalorder %s4427_s25, %s4423_s24  ;;  %p62_p1 = scmp.eq.s32.totalorder %s4524_s30, 0 }
  0x10   : > { %p226_p2 = scmp.eq.s32.totalorder %s4524_s30, 1  ;;  %p232_p3 = scmp.eq.s32.totalorder %s3510_s8, 1 }
  0x11   : > { %p4533_p4 = por %p62_p1, %p61_p0  ;;  %p3511_p5 = scmp.ge.s32.totalorder %s4443_s29, 1 }
  0x12   : > { %p4538_p6 = por %p232_p3, %p61_p0  ;;  %p239_p7 = scmp.lt.s32.totalorder %s4443_s29, 3 }
  0x13   : > { %s5529_s3 = sld [smem:[#allocation36_spill]]  ;;  %s4445_s15 = smov [#allocation8]  }
  0x14   : > { %s5527_s10 = scalar_select %p4538_p6, 1, 0 }
  0x15   : > { %p4546_p8 = pnand %p3511_p5, %p239_p7  ;;  %s261_s16 = sshll.u32 %s4445_s15, 4  ;;  %s262_s16 = int_to_ptr.vmem [resolvable:$true] %s261_s16 }
  0x16   : > { %5528 = sst [smem:[#allocation19_spill]] %s5527_s10  ;;  %p3515_p11 = scmp.ge.s32.totalorder %s4443_s29, 2 }
  0x17   : > { %p4145_p9 = pneg %p4546_p8  ;;  %s5531_s4 = sld [smem:[#allocation37_spill]] }
  0x18   : > { %s5515_s20 = smov 64   ;;  %s5514_s21 = smov 4  }
  0x19   : > { %s259_s13 = sshll.u32 %s5529_s3, 4  ;;  %p4146_p10 = pnand %p4145_p9, %p62_p1  ;;  %s260_s13 = int_to_ptr.hbm [resolvable:$true] %s259_s13 }
  0x1a   : > { %s4448_s22 = smov [#allocation9]   ;;  %s39_s8 = sadd.s32 1, %s4439_s28 }
  0x1b   : > { %4148 = dma.hbm_to_vmem [thread:$0]  (!%p4146_p10), %s260_s13, 1024, %s262_s16, [#allocation7], %s5515_s20, %s5515_s20, %s5514_s21  }
  0x1c   : > { %s275_s23 = sshll.u32 %s4448_s22, 4  ;;  %s48_s11 = sadd.s32 1, %s4431_s26  ;;  %s276_s23 = int_to_ptr.vmem [resolvable:$true] %s275_s23 }
  0x1d   : > { %s273_s19 = sshll.u32 %s5531_s4, 4  ;;  %p41_p12 = scmp.ge.s32.totalorder %s39_s8, 2  ;;  %s274_s19 = int_to_ptr.hbm [resolvable:$true] %s273_s19 }
  0x1e   : > { %4151 = dma.hbm_to_vmem [thread:$0]  (!%p4146_p10), %s274_s19, 1024, %s276_s23, [#allocation10], %s5515_s20, %s5515_s20, %s5514_s21  }
  0x1f   : > { %p55_p13 = scmp.ne.s32.totalorder %s4431_s26, %s4427_s25  ;;  %p56_p0 = scmp.eq.s32.totalorder %s4443_s29, 0 }
  0x20   : > { %p4165_p3 = scmp.lt.s32.totalorder %s4443_s29, 2  ;;  %s5577_s8 = smov (%p41_p12, %s39_s8), 0 }
  0x21   : > { %5532 = sst [smem:[#allocation20_spill]] %s5577_s8  ;;  %p4572_p5 = por %p56_p0, %p55_p13 }
  0x22   : > { %p4578_p7 = por %p226_p2, %p55_p13  ;;  %s43_s15 = ssub.s32 %s4439_s28, %s5577_s8 }
  0x23   : > { %s292_s16 = sand.u32 1, %s4431_s26   ;;  %p46_p9 = scmp.eq.s32.totalorder %s43_s15, 0 }
  0x24   : > { %s3516_s17 = sshll.u32 %s292_s16, 9  ;;  %s3921_s18 = sshll.u32 %s4439_s28, 9 }
  0x25   : > { %s4587_s19 = scalar_select %p46_p9, %s4431_s26, %s48_s11  }
  0x26   : > { %s5536_s0 = sld [smem:[#allocation35_spill]]  ;;  %s296_s3 = scalar_lea.vmem [#allocation3], %s3516_s17 }
  0x27   : > { %5535 = sst [smem:[#allocation21_spill]] %s4587_s19  ;;  %s307_s4 = sshll.u32 %s296_s3, 4  ;;  %s308_s4 = int_to_ptr.vmem [resolvable:$true] %s307_s4 }
  0x28   : > { %p4596_p2 = pnand %p4165_p3, %p4572_p5  ;;  %s317_s15 = sand.u32 1, %s4443_s29  }
  0x29   : > { %s3520_s11 = sshll.u32 %s292_s16, 7  ;;  %s293_s19 = scalar_lea.sflag [#allocation4], %s292_s16 }
  0x2a   : > { %s4449_s26 = smov 1024   ;;  %s5538_s22 = smov 64  }
  0x2b   : > { %s321_s12 = scalar_lea.vmem [#allocation6], %s3520_s11  ;;  %s318_s10 = scalar_lea.sflag [#allocation7], %s317_s15 }
  0x2c   : > { %s304_s21 = scalar_lea.hbm %s5536_s0, %s3921_s18  ;;  %s329_s23 = sshll.u32 %s321_s12, 4  ;;  %s330_s23 = int_to_ptr.vmem [resolvable:$true] %s329_s23 }
  0x2d   : > { %s305_s20 = sshll.u32 %s304_s21, 4  ;;  %s3922_s21 = sshll.u32 %s4439_s28, 7  ;;  %s306_s20 = int_to_ptr.hbm [resolvable:$true] %s305_s20 }
  0x2e   : > { %4155 = dma.hbm_to_vmem [thread:$0]  (!%p4596_p2), %s306_s20, 8192, %s308_s4, %s293_s19, %s4449_s26, %s4449_s26, %s5538_s22  }
  0x2f   : > { %s326_s18 = scalar_lea.hbm %s5508_s2, %s3922_s21  ;;  %s5539_s24 = smov 4  }
  0x30   : > { %s327_s0 = sshll.u32 %s326_s18, 4  ;;  %350 = sbr.rel (%p4546_p8) target bundleno = 1014 (0x3f6), region = 48  ;;  %s328_s0 = int_to_ptr.hbm [resolvable:$true] %s327_s0 }
  0x31   : > { %4158 = dma.hbm_to_vmem [thread:$0]  (!%p4596_p2), %s328_s0, 2048, %s330_s23, %s318_s10, %s5538_s22, %s5538_s22, %s5539_s24  }
  0x35   : > { %s4616_s4 = sand.u32 1, %s4427_s25  }
  0x36   : > { %s3524_s26 = sshll.u32 %s4616_s4, 9  ;;  %s353_s20 = scalar_lea.sflag [#allocation4], %s4616_s4 }
  0x37   : > { %s4620_s16 = scalar_lea.vmem [#allocation3], %s3524_s26 }
  0x38   : > { %4402 = dma.done.wait (%p4533_p4), %s353_s20, 8192  }
  0x39   : > { %4404 = vsyncadd (%p4533_p4), %s353_s20, 4294959104  ;;  %s362_s0 = sand.u32 1, %s4524_s30   ;;  %s3525_s24 = sshll.u32 %s4616_s4, 7 }
  0x3a   : > { %s363_s10 = scalar_lea.sflag [#allocation7], %s362_s0  ;;  %s4630_s14 = scalar_lea.vmem [#allocation6], %s3525_s24 }
  0x3b   : > { %4406 = dma.done.wait (%p4533_p4), %s363_s10, 2048  }
  0x3c   : > { %4408 = vsyncadd (%p4533_p4), %s363_s10, 4294965248 }
  0x3d   : > { %4410 = dma.done.wait (%p62_p1), [#allocation7], 1024  }
  0x3e   : > { %4412 = vsyncadd (%p62_p1), [#allocation7], 4294966272 }
  0x3f   : > { %4414 = dma.done.wait (%p62_p1), [#allocation10], 1024  }
  0x40   : > { %4416 = vsyncadd (%p62_p1), [#allocation10], 4294966272  ;;  %v3930_v0 = vld [vmem:[%s5507_s1 + $0x38] sm:$0xff]  ;;  %v3929_v2 = vld [vmem:[%s5507_s1 + $0x30] sm:$0xff]  ;;  %s3529_s19 = sshll.u32 %s4435_s27, 5  ;;  %s5364_s10 = scalar_lea.vmem [#allocation11], %s3525_s24 }
  0x41   : > { %v3938_v1 = vld [vmem:[%s5507_s1 + $0x78] sm:$0xff]  ;;  %4115 = vmatpush.bf16.msra.mxu2 %v3930_v0  ;;  %v3937_v3 = vld [vmem:[%s5507_s1 + $0x70] sm:$0xff]  ;;  %1723 = vmatpush.bf16.msra.mxu0 %v3930_v0  ;;  %v3928_v4 = vld [vmem:[%s5507_s1 + $0x28] sm:$0xff]  ;;  %p5024_p1 = scmp.lt.s32.totalorder %s3529_s19, 63  ;;  %s4019_s24 = sshll.u32 %s4435_s27, 7 }
  0x42   : > { %4123 = vmatpush.bf16.msra.mxu3 %v3938_v1  ;;  %1812 = vmatpush.bf16.msra.mxu1 %v3938_v1  ;;  %v3936_v5 = vld [vmem:[%s5507_s1 + $0x68] sm:$0xff]  ;;  %v3927_v6 = vld [vmem:[%s5507_s1 + $0x20] sm:$0xff]  ;;  %v3926_v8 = vld [vmem:[%s5507_s1 + $0x18] sm:$0xff]  ;;  %s3353_s15 = sshll.u32 %s5364_s10, 4  ;;  %s3341_s27 = scalar_lea.sflag [#allocation5], %s4616_s4  ;;  %s3354_s15 = int_to_ptr.vmem [resolvable:$true] %s3353_s15 }
  0x43   : > { %v3935_v7 = vld [vmem:[%s5507_s1 + $0x60] sm:$0xff]  ;;  %v3934_v9 = vld [vmem:[%s5507_s1 + $0x58] sm:$0xff]  ;;  %v3925_v10 = vld [vmem:[%s5507_s1 + $0x10] sm:$0xff]  ;;  %s5579_s19 = smov (!%p5024_p1, %s3529_s19), 63 }
  0x44   : > { %v3933_v11 = vld [vmem:[%s5507_s1 + $0x50] sm:$0xff]  ;;  %v4681_v12 = vld [vmem:[%s4620_s16 + $0x100] sm:$0xff]  ;;  %v4684_v13 = vld [vmem:[%s4620_s16 + $0x108] sm:$0xff]  ;;  %s3530_s11 = sshll.u32 %s5579_s19, 3  ;;  %s3352_s19 = scalar_lea.hbm %s5513_s7, %s4019_s24 }
  0x45   : > { %4116 = vmatpush.bf16.msra.mxu2 %v3929_v2  ;;  %1724 = vmatpush.bf16.msra.mxu0 %v3929_v2  ;;  %v4687_v14 = vld [vmem:[%s4620_s16] sm:$0xff]  ;;  %v4690_v15 = vld [vmem:[%s4620_s16 + $0x8] sm:$0xff]  ;;  %v699_v16 = vunpack.c.0.s8 %v4681_v12  ;;  %v707_v17 = vunpack.c.1.s8 %v4681_v12  ;;  %v700_v18 = vunpack.c.0.s8 %v4684_v13  ;;  %v708_v19 = vunpack.c.1.s8 %v4684_v13  ;;  %v3946_v32 = vld [vmem:[%s5507_s1 + $0xb8] sm:$0xff]  ;;  %s5039_s30 = scalar_lea.vmem %s5512_s6, %s3530_s11  ;;  %s3355_s11 = sshll.u32 %s3352_s19, 4  ;;  %s3356_s11 = int_to_ptr.hbm [resolvable:$true] %s3355_s11 }
  0x46   : > { %4124 = vmatpush.bf16.msra.mxu3 %v3937_v3  ;;  %1813 = vmatpush.bf16.msra.mxu1 %v3937_v3  ;;  %v3924_v20 = vld [vmem:[%s5507_s1 + $0x8] sm:$0xff]  ;;  %v571_v22 = vunpack.c.0.s8 %v4687_v14  ;;  %v579_v23 = vunpack.c.1.s8 %v4687_v14  ;;  %v572_v24 = vunpack.c.0.s8 %v4690_v15  ;;  %v580_v25 = vunpack.c.1.s8 %v4690_v15  ;;  %v3923_v30 = vld [vmem:[%s5507_s1] sm:$0xff]  ;;  %v3954_v33 = vld [vmem:[%s5507_s1 + $0xf8] sm:$0xff]  ;;  %s4363_s9 = sshra.s32 %s3356_s11, 4  ;;  %s4364_s9 = int_to_ptr.hbm [resolvable:$true] %s4363_s9 }
  0x47   : > { %v3932_v21 = vld [vmem:[%s5507_s1 + $0x48] sm:$0xff]  ;;  %v955_v26 = vcvt.s32.f32 %v699_v16  ;;  %v963_v27 = vcvt.s32.f32 %v707_v17  ;;  %v956_v28 = vcvt.s32.f32 %v700_v18  ;;  %v964_v29 = vcvt.s32.f32 %v708_v19  ;;  %v3931_v31 = vld [vmem:[%s5507_s1 + $0x40] sm:$0xff]  ;;  %v3945_v42 = vld [vmem:[%s5507_s1 + $0xb0] sm:$0xff]  ;;  %s4365_s22 = scalar_lea.hbm %s4364_s9, 128  ;;  %p4370_p12 = scmp.lt.s32.totalorder %s4364_s9, %s5513_s7 }
  0x48   : > { %v827_v34 = vcvt.s32.f32 %v571_v22  ;;  %v835_v35 = vcvt.s32.f32 %v579_v23  ;;  %v828_v36 = vcvt.s32.f32 %v572_v24  ;;  %v836_v37 = vcvt.s32.f32 %v580_v25  ;;  %v3953_v43 = vld [vmem:[%s5507_s1 + $0xf0] sm:$0xff]  ;;  %v3944_v44 = vld [vmem:[%s5507_s1 + $0xa8] sm:$0xff]  ;;  %v3943_v2 = vld [vmem:[%s5507_s1 + $0xa0] sm:$0xff]  ;;  %p4366_p4 = scmp.ne.s32.totalorder %s4364_s9, %s4365_s22 }
  0x49   : > { %4117 = vmatpush.bf16.msra.mxu2 %v3928_v4  ;;  %1725 = vmatpush.bf16.msra.mxu0 %v3928_v4  ;;  %v1147_v38 = vpack.c.bf16 %v963_v27, %v955_v26  ;;  %v1148_v39 = vpack.c.bf16 %v964_v29, %v956_v28  ;;  %v3952_v45 = vld [vmem:[%s5507_s1 + $0xe8] sm:$0xff]  ;;  %v715_v46 = vunpack.c.2.s8 %v4681_v12  ;;  %v723_v47 = vunpack.c.3.s8 %v4681_v12  ;;  %v3951_v3 = vld [vmem:[%s5507_s1 + $0xe0] sm:$0xff]  ;;  %v3942_v28 = vld [vmem:[%s5507_s1 + $0x98] sm:$0xff] }
  0x4a   : > { %4125 = vmatpush.bf16.msra.mxu3 %v3936_v5  ;;  %1814 = vmatpush.bf16.msra.mxu1 %v3936_v5  ;;  %v1083_v40 = vpack.c.bf16 %v835_v35, %v827_v34  ;;  %v1084_v41 = vpack.c.bf16 %v836_v37, %v828_v36  ;;  %v716_v48 = vunpack.c.2.s8 %v4684_v13  ;;  %v724_v49 = vunpack.c.3.s8 %v4684_v13  ;;  %v547_v4 = vld [vmem:[%s4620_s16 + $0x140] sm:$0xff]  ;;  %v548_v5 = vld [vmem:[%s4620_s16 + $0x148] sm:$0xff]  ;;  %v3950_v29 = vld [vmem:[%s5507_s1 + $0xd8] sm:$0xff]  ;;  %p4367_p8 = pnand %p4366_p4, %p4578_p7 }
  0x4b   : > { %v587_v50 = vunpack.c.2.s8 %v4687_v14  ;;  %v595_v51 = vunpack.c.3.s8 %v4687_v14  ;;  %v588_v52 = vunpack.c.2.s8 %v4690_v15  ;;  %v596_v53 = vunpack.c.3.s8 %v4690_v15 }
  0x4c   : > { %v971_v54 = vcvt.s32.f32 %v715_v46  ;;  %v979_v55 = vcvt.s32.f32 %v723_v47  ;;  %v972_v56 = vcvt.s32.f32 %v716_v48  ;;  %v980_v57 = vcvt.s32.f32 %v724_v49  ;;  %p4368_p10 = pneg %p4367_p8 }
  0x4d   : > { %4118 = vmatpush.bf16.msra.mxu2 %v3927_v6  ;;  %1726 = vmatpush.bf16.msra.mxu0 %v3927_v6  ;;  %v843_v58 = vcvt.s32.f32 %v587_v50  ;;  %v851_v59 = vcvt.s32.f32 %v595_v51  ;;  %v844_v60 = vcvt.s32.f32 %v588_v52  ;;  %v852_v61 = vcvt.s32.f32 %v596_v53  ;;  %v515_v6 = vld [vmem:[%s4620_s16 + $0x40] sm:$0xff]  ;;  %v3941_v50 = vld [vmem:[%s5507_s1 + $0x90] sm:$0xff]  ;;  %v556_v53 = vld [vmem:[%s4620_s16 + $0x188] sm:$0xff] }
  0x4e   : > { %4126 = vmatpush.bf16.msra.mxu3 %v3935_v7  ;;  %1815 = vmatpush.bf16.msra.mxu1 %v3935_v7  ;;  %v1155_v62 = vpack.c.bf16 %v979_v55, %v971_v54  ;;  %v1156_v63 = vpack.c.bf16 %v980_v57, %v972_v56  ;;  %v516_v7 = vld [vmem:[%s4620_s16 + $0x48] sm:$0xff]  ;;  %v603_v12 = vunpack.c.0.s8 %v515_v6  ;;  %v611_v13 = vunpack.c.1.s8 %v515_v6  ;;  %v3949_v51 = vld [vmem:[%s5507_s1 + $0xd0] sm:$0xff]  ;;  %v555_v52 = vld [vmem:[%s4620_s16 + $0x180] sm:$0xff] }
  0x4f   : > { %v1091_v0 = vpack.c.bf16 %v851_v59, %v843_v58  ;;  %v1092_v1 = vpack.c.bf16 %v852_v61, %v844_v60  ;;  %v604_v14 = vunpack.c.0.s8 %v516_v7  ;;  %v612_v15 = vunpack.c.1.s8 %v516_v7  ;;  %v523_v54 = vld [vmem:[%s4620_s16 + $0x80] sm:$0xff]  ;;  %v524_v55 = vld [vmem:[%s4620_s16 + $0x88] sm:$0xff] }
  0x50   : > { %v619_v34 = vunpack.c.2.s8 %v515_v6  ;;  %v627_v35 = vunpack.c.3.s8 %v515_v6  ;;  %v620_v36 = vunpack.c.2.s8 %v516_v7  ;;  %v628_v37 = vunpack.c.3.s8 %v516_v7 }
  0x51   : > { %4119 = vmatpush.bf16.msra.mxu2 %v3926_v8  ;;  %1727 = vmatpush.bf16.msra.mxu0 %v3926_v8  ;;  %v731_v8 = vunpack.c.0.s8 %v547_v4  ;;  %v860_v22 = vcvt.s32.f32 %v604_v14  ;;  %v868_v23 = vcvt.s32.f32 %v612_v15  ;;  %v763_v56 = vunpack.c.0.s8 %v555_v52  ;;  %v3962_v14 = vld [vmem:[%s5507_s1 + $0x138] sm:$0xff] }
  0x52   : > { %4127 = vmatpush.bf16.msra.mxu3 %v3934_v9  ;;  %1816 = vmatpush.bf16.msra.mxu1 %v3934_v9  ;;  %v739_v9 = vunpack.c.1.s8 %v547_v4  ;;  %v771_v57 = vunpack.c.1.s8 %v555_v52  ;;  %v764_v58 = vunpack.c.0.s8 %v556_v53  ;;  %v772_v59 = vunpack.c.1.s8 %v556_v53  ;;  %v3970_v15 = vld [vmem:[%s5507_s1 + $0x178] sm:$0xff] }
  0x53   : > { %v987_v16 = vcvt.s32.f32 %v731_v8  ;;  %v1100_v27 = vpack.c.bf16 %v868_v23, %v860_v22  ;;  %v635_v60 = vunpack.c.0.s8 %v523_v54  ;;  %v643_v61 = vunpack.c.1.s8 %v523_v54 }
  0x54   : > { %v995_v17 = vcvt.s32.f32 %v739_v9  ;;  %v659_v22 = vunpack.c.3.s8 %v523_v54  ;;  %v652_v23 = vunpack.c.2.s8 %v524_v55 }
  0x55   : > { %4120 = vmatpush.bf16.msra.mxu2 %v3925_v10  ;;  %1728 = vmatpush.bf16.msra.mxu0 %v3925_v10  ;;  %v732_v10 = vunpack.c.0.s8 %v548_v5 }
  0x56   : > { %4128 = vmatpush.bf16.msra.mxu3 %v3933_v11  ;;  %1817 = vmatpush.bf16.msra.mxu1 %v3933_v11  ;;  %v740_v11 = vunpack.c.1.s8 %v548_v5  ;;  %v1163_v24 = vpack.c.bf16 %v995_v17, %v987_v16  ;;  %v779_v16 = vunpack.c.2.s8 %v555_v52  ;;  %v787_v17 = vunpack.c.3.s8 %v555_v52 }
  0x57   : > { %v988_v18 = vcvt.s32.f32 %v732_v10 }
  0x58   : > { %v996_v19 = vcvt.s32.f32 %v740_v11 }
  0x59   : > { %4121 = vmatpush.bf16.msra.mxu2 %v3924_v20  ;;  %1729 = vmatpush.bf16.msra.mxu0 %v3924_v20  ;;  %v859_v20 = vcvt.s32.f32 %v603_v12  ;;  %v3940_v12 = vld [vmem:[%s5507_s1 + $0x88] sm:$0xff] }
  0x5a   : > { %4129 = vmatpush.bf16.msra.mxu3 %v3932_v21  ;;  %1818 = vmatpush.bf16.msra.mxu1 %v3932_v21  ;;  %v867_v21 = vcvt.s32.f32 %v611_v13  ;;  %v1164_v25 = vpack.c.bf16 %v996_v19, %v988_v18  ;;  %v3948_v13 = vld [vmem:[%s5507_s1 + $0xc8] sm:$0xff]  ;;  %v780_v18 = vunpack.c.2.s8 %v556_v53  ;;  %v788_v19 = vunpack.c.3.s8 %v556_v53 }
  0x5c   : > { %v1099_v26 = vpack.c.bf16 %v867_v21, %v859_v20  ;;  %v3961_v20 = vld [vmem:[%s5507_s1 + $0x130] sm:$0xff]  ;;  %v651_v21 = vunpack.c.2.s8 %v523_v54 }
  0x5d   : > { %4122 = vmatpush.bf16.msra.mxu2 %v3923_v30  ;;  %1730 = vmatpush.bf16.msra.mxu0 %v3923_v30  ;;  %v747_v30 = vunpack.c.2.s8 %v547_v4 }
  0x5e   : > { %4130 = vmatpush.bf16.msra.mxu3 %v3931_v31  ;;  %1819 = vmatpush.bf16.msra.mxu1 %v3931_v31  ;;  %v755_v31 = vunpack.c.3.s8 %v547_v4  ;;  %v891_v4 = vcvt.s32.f32 %v635_v60  ;;  %v3958_v60 = vld [vmem:[%s5507_s1 + $0x118] sm:$0xff] }
  0x60   : > { %1771 = vmatmul.bf16.vlgmr.msra.gmra.mxu2 %v1147_v38  ;;  %1731 = vmatmul.bf16.vlgmr.msra.gmra.mxu0 %v1083_v40  ;;  %v1003_v38 = vcvt.s32.f32 %v747_v30  ;;  %v915_v30 = vcvt.s32.f32 %v659_v22 }
  0x61   : > { %1901 = vmatpush.bf16.msrb.mxu2 %v3946_v32  ;;  %1860 = vmatmul.bf16.vlgmr.msra.gmra.mxu3 %v1148_v39  ;;  %v748_v32 = vunpack.c.2.s8 %v548_v5  ;;  %v1011_v39 = vcvt.s32.f32 %v755_v31  ;;  %v908_v31 = vcvt.s32.f32 %v652_v23 }
  0x62   : > { %1990 = vmatpush.bf16.msrb.mxu3 %v3954_v33  ;;  %1820 = vmatmul.bf16.vlgmr.msra.gmra.mxu1 %v1084_v41  ;;  %v756_v33 = vunpack.c.3.s8 %v548_v5  ;;  %v899_v5 = vcvt.s32.f32 %v643_v61  ;;  %v3966_v61 = vld [vmem:[%s5507_s1 + $0x158] sm:$0xff] }
  0x63   : > { %v1004_v40 = vcvt.s32.f32 %v748_v32  ;;  %v1171_v46 = vpack.c.bf16 %v1011_v39, %v1003_v38  ;;  %2079 = vmatpush.bf16.msrb.mxu0 %v3962_v14  ;;  %2168 = vmatpush.bf16.msrb.mxu1 %v3970_v15  ;;  %v3939_v38 = vld [vmem:[%s5507_s1 + $0x80] sm:$0xff] }
  0x64   : > { %v1012_v41 = vcvt.s32.f32 %v756_v33  ;;  %v1115_v10 = vpack.c.bf16 %v899_v5, %v891_v4  ;;  %v3947_v39 = vld [vmem:[%s5507_s1 + $0xc0] sm:$0xff]  ;;  %v3957_v4 = vld [vmem:[%s5507_s1 + $0x110] sm:$0xff] }
  0x65   : > { %1902 = vmatpush.bf16.msrb.mxu2 %v3945_v42  ;;  %v875_v42 = vcvt.s32.f32 %v619_v34 }
  0x66   : > { %1991 = vmatpush.bf16.msrb.mxu3 %v3953_v43  ;;  %v883_v43 = vcvt.s32.f32 %v627_v35  ;;  %v1172_v47 = vpack.c.bf16 %v1012_v41, %v1004_v40  ;;  %v3960_v40 = vld [vmem:[%s5507_s1 + $0x128] sm:$0xff]  ;;  %v4792_v41 = vld [vmem:[%s4620_s16 + $0x1c0] sm:$0xff] }
  0x67   : > { %2080 = vmatpush.bf16.msrb.mxu0 %v3961_v20 }
  0x68   : > { %v1107_v48 = vpack.c.bf16 %v883_v43, %v875_v42  ;;  %v4795_v42 = vld [vmem:[%s4620_s16 + $0x1c8] sm:$0xff] }
  0x69   : > { %1903 = vmatpush.bf16.msrb.mxu2 %v3944_v44  ;;  %v876_v44 = vcvt.s32.f32 %v620_v36  ;;  %v3968_v43 = vld [vmem:[%s5507_s1 + $0x168] sm:$0xff]  ;;  %v812_v14 = vunpack.c.2.s8 %v4795_v42  ;;  %v820_v15 = vunpack.c.3.s8 %v4795_v42 }
  0x6a   : > { %1992 = vmatpush.bf16.msrb.mxu3 %v3952_v45  ;;  %v884_v45 = vcvt.s32.f32 %v628_v37  ;;  %v3969_v37 = vld [vmem:[%s5507_s1 + $0x170] sm:$0xff] }
  0x6b   : > { %2169 = vmatpush.bf16.msrb.mxu1 %v3969_v37  ;;  %2081 = vmatpush.bf16.msrb.mxu0 %v3960_v40  ;;  %v512_v37 = vld [vmem:[%s4620_s16 + $0x28] sm:$0xff] }
  0x6c   : > { %v1108_v49 = vpack.c.bf16 %v884_v45, %v876_v44  ;;  %v4801_v44 = vld [vmem:[%s4620_s16 + $0xc0] sm:$0xff]  ;;  %v4804_v45 = vld [vmem:[%s4620_s16 + $0xc8] sm:$0xff] }
  0x6d   : > { %1904 = vmatpush.bf16.msrb.mxu2 %v3943_v2  ;;  %v1020_v2 = vcvt.s32.f32 %v764_v58  ;;  %v667_v52 = vunpack.c.0.s8 %v4801_v44  ;;  %v675_v53 = vunpack.c.1.s8 %v4801_v44  ;;  %v668_v54 = vunpack.c.0.s8 %v4804_v45 }
  0x6e   : > { %1993 = vmatpush.bf16.msrb.mxu3 %v3951_v3  ;;  %v1028_v3 = vcvt.s32.f32 %v772_v59  ;;  %v684_v20 = vunpack.c.2.s8 %v4804_v45 }
  0x6f   : > { %2170 = vmatpush.bf16.msrb.mxu1 %v3968_v43 }
  0x70   : > { %1776 = vmatmul.bf16.gmra.mxu2 %v1155_v62  ;;  %1736 = vmatmul.bf16.gmra.mxu0 %v1091_v0  ;;  %v636_v62 = vunpack.c.0.s8 %v524_v55  ;;  %v1019_v0 = vcvt.s32.f32 %v763_v56  ;;  %v1180_v9 = vpack.c.bf16 %v1028_v3, %v1020_v2 }
  0x71   : > { %1865 = vmatmul.bf16.gmra.mxu3 %v1156_v63  ;;  %1905 = vmatpush.bf16.msrb.mxu2 %v3942_v28  ;;  %v644_v63 = vunpack.c.1.s8 %v524_v55  ;;  %v1044_v28 = vcvt.s32.f32 %v788_v19  ;;  %v691_v19 = vunpack.c.3.s8 %v4801_v44 }
  0x72   : > { %1825 = vmatmul.bf16.gmra.mxu1 %v1092_v1  ;;  %1994 = vmatpush.bf16.msrb.mxu3 %v3950_v29  ;;  %v1027_v1 = vcvt.s32.f32 %v771_v57  ;;  %v892_v6 = vcvt.s32.f32 %v636_v62  ;;  %v907_v29 = vcvt.s32.f32 %v651_v21  ;;  %v923_v62 = vcvt.s32.f32 %v667_v52 }
  0x73   : > { %v900_v7 = vcvt.s32.f32 %v644_v63  ;;  %v931_v63 = vcvt.s32.f32 %v675_v53  ;;  %v692_v21 = vunpack.c.3.s8 %v4804_v45 }
  0x74   : > { %v1179_v8 = vpack.c.bf16 %v1027_v1, %v1019_v0  ;;  %v1123_v35 = vpack.c.bf16 %v915_v30, %v907_v29  ;;  %v924_v0 = vcvt.s32.f32 %v668_v54 }
  0x75   : > { %1906 = vmatpush.bf16.msrb.mxu2 %v3941_v50  ;;  %v1116_v11 = vpack.c.bf16 %v900_v7, %v892_v6  ;;  %v3959_v50 = vld [vmem:[%s5507_s1 + $0x120] sm:$0xff]  ;;  %v1131_v5 = vpack.c.bf16 %v931_v63, %v923_v62  ;;  %v3965_v7 = vld [vmem:[%s5507_s1 + $0x150] sm:$0xff]  ;;  %v948_v29 = vcvt.s32.f32 %v692_v21 }
  0x76   : > { %1995 = vmatpush.bf16.msrb.mxu3 %v3949_v51  ;;  %v3967_v51 = vld [vmem:[%s5507_s1 + $0x160] sm:$0xff]  ;;  %2082 = vmatpush.bf16.msrb.mxu0 %v3959_v50  ;;  %v3985_v62 = vld [vmem:[%s5507_s1 + $0x1f0] sm:$0xff] }
  0x77   : > { %2171 = vmatpush.bf16.msrb.mxu1 %v3967_v51 }
  0x79   : > { %1907 = vmatpush.bf16.msrb.mxu2 %v3940_v12  ;;  %v811_v12 = vunpack.c.2.s8 %v4792_v41 }
  0x7a   : > { %1996 = vmatpush.bf16.msrb.mxu3 %v3948_v13  ;;  %2083 = vmatpush.bf16.msrb.mxu0 %v3958_v60  ;;  %v819_v13 = vunpack.c.3.s8 %v4792_v41 }
  0x7b   : > { %2172 = vmatpush.bf16.msrb.mxu1 %v3966_v61  ;;  %v1067_v22 = vcvt.s32.f32 %v811_v12  ;;  %v3977_v61 = vld [vmem:[%s5507_s1 + $0x1b0] sm:$0xff] }
  0x7c   : > { %v1075_v23 = vcvt.s32.f32 %v819_v13 }
  0x7d   : > { %1908 = vmatpush.bf16.msrb.mxu2 %v3939_v38 }
  0x7e   : > { %1997 = vmatpush.bf16.msrb.mxu3 %v3947_v39  ;;  %2084 = vmatpush.bf16.msrb.mxu0 %v3957_v4  ;;  %v1203_v30 = vpack.c.bf16 %v1075_v23, %v1067_v22 }
  0x7f   : > { %2173 = vmatpush.bf16.msrb.mxu1 %v3965_v7 }
  0x80   : > { %1781 = vmatmul.bf16.gmra.mxu2 %v1163_v24  ;;  %1741 = vmatmul.bf16.gmra.mxu0 %v1099_v26  ;;  %v660_v24 = vunpack.c.3.s8 %v524_v55  ;;  %v1043_v26 = vcvt.s32.f32 %v787_v17  ;;  %v676_v55 = vunpack.c.1.s8 %v4804_v45  ;;  %v3963_v17 = vld [vmem:[%s5507_s1 + $0x140] sm:$0xff]  ;;  %v584_v45 = vunpack.c.1.s8 %v512_v37 }
  0x81   : > { %1870 = vmatmul.bf16.gmra.mxu3 %v1164_v25  ;;  %v1035_v25 = vcvt.s32.f32 %v779_v16  ;;  %v3955_v16 = vld [vmem:[%s5507_s1 + $0x100] sm:$0xff] }
  0x82   : > { %1830 = vmatmul.bf16.gmra.mxu1 %v1100_v27  ;;  %v1036_v27 = vcvt.s32.f32 %v780_v18  ;;  %v916_v32 = vcvt.s32.f32 %v660_v24  ;;  %v932_v1 = vcvt.s32.f32 %v676_v55  ;;  %v683_v18 = vunpack.c.2.s8 %v4801_v44 }
  0x83   : > { %v1187_v33 = vpack.c.bf16 %v1043_v26, %v1035_v25  ;;  %v1068_v24 = vcvt.s32.f32 %v812_v14  ;;  %v1076_v25 = vcvt.s32.f32 %v820_v15  ;;  %v576_v44 = vunpack.c.0.s8 %v512_v37 }
  0x84   : > { %v1188_v34 = vpack.c.bf16 %v1044_v28, %v1036_v27  ;;  %v1124_v36 = vpack.c.bf16 %v916_v32, %v908_v31  ;;  %v1132_v6 = vpack.c.bf16 %v932_v1, %v924_v0  ;;  %v939_v26 = vcvt.s32.f32 %v683_v18 }
  0x85   : > { %v947_v27 = vcvt.s32.f32 %v691_v19  ;;  %v940_v28 = vcvt.s32.f32 %v684_v20  ;;  %v1204_v31 = vpack.c.bf16 %v1076_v25, %v1068_v24  ;;  %v832_v52 = vcvt.s32.f32 %v576_v44 }
  0x86   : > { %v840_v53 = vcvt.s32.f32 %v584_v45 }
  0x87   : > { %v1139_v32 = vpack.c.bf16 %v947_v27, %v939_v26 }
  0x90   : > { %1786 = vmatmul.bf16.gmra.mxu2 %v1171_v46  ;;  %1746 = vmatmul.bf16.gmra.mxu0 %v1107_v48  ;;  %v795_v46 = vunpack.c.0.s8 %v4792_v41  ;;  %v796_v48 = vunpack.c.0.s8 %v4795_v42 }
  0x91   : > { %1875 = vmatmul.bf16.gmra.mxu3 %v1172_v47  ;;  %v803_v47 = vunpack.c.1.s8 %v4792_v41 }
  0x92   : > { %1835 = vmatmul.bf16.gmra.mxu1 %v1108_v49  ;;  %v804_v49 = vunpack.c.1.s8 %v4795_v42  ;;  %v1051_v56 = vcvt.s32.f32 %v795_v46  ;;  %v1052_v58 = vcvt.s32.f32 %v796_v48 }
  0x93   : > { %v1059_v57 = vcvt.s32.f32 %v803_v47 }
  0x94   : > { %v1060_v59 = vcvt.s32.f32 %v804_v49 }
  0x95   : > { %v1195_v2 = vpack.c.bf16 %v1059_v57, %v1051_v56  ;;  %v1088_v57 = vpack.c.bf16 %v840_v53, %v832_v52 }
  0x96   : > { %v1196_v3 = vpack.c.bf16 %v1060_v59, %v1052_v58 }
  0xa0   : > { %1791 = vmatmul.bf16.gmra.mxu2 %v1179_v8  ;;  %1751 = vmatmul.bf16.gmra.mxu0 %v1115_v10  ;;  %v3978_v8 = vld [vmem:[%s5507_s1 + $0x1b8] sm:$0xff]  ;;  %v3956_v10 = vld [vmem:[%s5507_s1 + $0x108] sm:$0xff] }
  0xa1   : > { %1880 = vmatmul.bf16.gmra.mxu3 %v1180_v9  ;;  %v3986_v9 = vld [vmem:[%s5507_s1 + $0x1f8] sm:$0xff]  ;;  %2257 = vmatpush.bf16.msra.mxu2 %v3978_v8  ;;  %v592_v8 = vunpack.c.2.s8 %v512_v37 }
  0xa2   : > { %1840 = vmatmul.bf16.gmra.mxu1 %v1116_v11  ;;  %2346 = vmatpush.bf16.msra.mxu3 %v3986_v9  ;;  %v3964_v11 = vld [vmem:[%s5507_s1 + $0x148] sm:$0xff]  ;;  %v600_v9 = vunpack.c.3.s8 %v512_v37 }
  0xa3   : > { %2085 = vmatpush.bf16.msrb.mxu0 %v3956_v10  ;;  %2174 = vmatpush.bf16.msrb.mxu1 %v3964_v11  ;;  %v848_v19 = vcvt.s32.f32 %v592_v8  ;;  %v520_v37 = vld [vmem:[%s4620_s16 + $0x68] sm:$0xff] }
  0xa4   : > { %v856_v20 = vcvt.s32.f32 %v600_v9  ;;  %v608_v44 = vunpack.c.0.s8 %v520_v37  ;;  %v616_v45 = vunpack.c.1.s8 %v520_v37 }
  0xa5   : > { %2258 = vmatpush.bf16.msra.mxu2 %v3977_v61 }
  0xa6   : > { %2347 = vmatpush.bf16.msra.mxu3 %v3985_v62  ;;  %v1096_v27 = vpack.c.bf16 %v856_v20, %v848_v19 }
  0xa7   : > { %2086 = vmatpush.bf16.msrb.mxu0 %v3955_v16  ;;  %2175 = vmatpush.bf16.msrb.mxu1 %v3963_v17 }
  0xb0   : > { %1796 = vmatmul.bf16.gmra.mxu2 %v1187_v33  ;;  %1756 = vmatmul.bf16.gmra.mxu0 %v1123_v35  ;;  %v1140_v33 = vpack.c.bf16 %v948_v29, %v940_v28  ;;  %v510_v35 = vld [vmem:[%s4620_s16 + $0x18] sm:$0xff] }
  0xb1   : > { %1885 = vmatmul.bf16.gmra.mxu3 %v1188_v34  ;;  %v509_v34 = vld [vmem:[%s4620_s16 + $0x10] sm:$0xff]  ;;  %v574_v40 = vunpack.c.0.s8 %v510_v35  ;;  %v582_v41 = vunpack.c.1.s8 %v510_v35  ;;  %v590_v4 = vunpack.c.2.s8 %v510_v35 }
  0xb2   : > { %1845 = vmatmul.bf16.gmra.mxu1 %v1124_v36  ;;  %v511_v36 = vld [vmem:[%s4620_s16 + $0x20] sm:$0xff]  ;;  %v573_v38 = vunpack.c.0.s8 %v509_v34  ;;  %v581_v39 = vunpack.c.1.s8 %v509_v34  ;;  %v589_v1 = vunpack.c.2.s8 %v509_v34 }
  0xb3   : > { %v575_v42 = vunpack.c.0.s8 %v511_v36  ;;  %v583_v43 = vunpack.c.1.s8 %v511_v36  ;;  %v830_v48 = vcvt.s32.f32 %v574_v40  ;;  %v838_v49 = vcvt.s32.f32 %v582_v41 }
  0xb4   : > { %v829_v46 = vcvt.s32.f32 %v573_v38  ;;  %v837_v47 = vcvt.s32.f32 %v581_v39  ;;  %v599_v7 = vunpack.c.3.s8 %v511_v36  ;;  %v845_v11 = vcvt.s32.f32 %v589_v1 }
  0xb5   : > { %v831_v50 = vcvt.s32.f32 %v575_v42  ;;  %v839_v51 = vcvt.s32.f32 %v583_v43  ;;  %v1086_v55 = vpack.c.bf16 %v838_v49, %v830_v48  ;;  %v846_v14 = vcvt.s32.f32 %v590_v4 }
  0xb6   : > { %v1085_v54 = vpack.c.bf16 %v837_v47, %v829_v46  ;;  %v855_v18 = vcvt.s32.f32 %v599_v7 }
  0xb7   : > { %v1087_v56 = vpack.c.bf16 %v839_v51, %v831_v50 }
  0xc0   : > { %1801 = vmatmul.bf16.gmra.mxu2 %v1195_v2  ;;  %1761 = vmatmul.bf16.gmra.mxu0 %v1131_v5  ;;  %v598_v5 = vunpack.c.3.s8 %v510_v35 }
  0xc1   : > { %1890 = vmatmul.bf16.gmra.mxu3 %v1196_v3  ;;  %v597_v3 = vunpack.c.3.s8 %v509_v34 }
  0xc2   : > { %1850 = vmatmul.bf16.gmra.mxu1 %v1132_v6  ;;  %v591_v6 = vunpack.c.2.s8 %v511_v36  ;;  %v854_v15 = vcvt.s32.f32 %v598_v5  ;;  %v519_v36 = vld [vmem:[%s4620_s16 + $0x60] sm:$0xff]  ;;  %v3976_v5 = vld [vmem:[%s5507_s1 + $0x1a8] sm:$0xff] }
  0xc3   : > { %v853_v13 = vcvt.s32.f32 %v597_v3  ;;  %v607_v42 = vunpack.c.0.s8 %v519_v36  ;;  %v615_v43 = vunpack.c.1.s8 %v519_v36  ;;  %2259 = vmatpush.bf16.msra.mxu2 %v3976_v5 }
  0xc4   : > { %v847_v17 = vcvt.s32.f32 %v591_v6  ;;  %v1094_v25 = vpack.c.bf16 %v854_v15, %v846_v14  ;;  %v3984_v6 = vld [vmem:[%s5507_s1 + $0x1e8] sm:$0xff]  ;;  %v623_v14 = vunpack.c.2.s8 %v519_v36  ;;  %v631_v15 = vunpack.c.3.s8 %v519_v36 }
  0xc5   : > { %v1093_v24 = vpack.c.bf16 %v853_v13, %v845_v11  ;;  %v863_v53 = vcvt.s32.f32 %v607_v42  ;;  %2348 = vmatpush.bf16.msra.mxu3 %v3984_v6 }
  0xc6   : > { %v1095_v26 = vpack.c.bf16 %v855_v18, %v847_v17  ;;  %v624_v17 = vunpack.c.2.s8 %v520_v37  ;;  %v632_v18 = vunpack.c.3.s8 %v520_v37 }
  0xd0   : > { %1806 = vmatmul.bf16.gmra.mxu2 %v1203_v30  ;;  %1766 = vmatmul.bf16.gmra.mxu0 %v1139_v32  ;;  %v518_v32 = vld [vmem:[%s4620_s16 + $0x58] sm:$0xff] }
  0xd1   : > { %1895 = vmatmul.bf16.gmra.mxu3 %v1204_v31  ;;  %v517_v31 = vld [vmem:[%s4620_s16 + $0x50] sm:$0xff]  ;;  %v606_v40 = vunpack.c.0.s8 %v518_v32  ;;  %v614_v41 = vunpack.c.1.s8 %v518_v32  ;;  %v630_v13 = vunpack.c.3.s8 %v518_v32 }
  0xd2   : > { %1855 = vmatmul.bf16.gmra.mxu1 %v1140_v33  ;;  %v605_v35 = vunpack.c.0.s8 %v517_v31  ;;  %v613_v39 = vunpack.c.1.s8 %v517_v31  ;;  %v621_v9 = vunpack.c.2.s8 %v517_v31  ;;  %v629_v11 = vunpack.c.3.s8 %v517_v31 }
  0xd3   : > { %v862_v50 = vcvt.s32.f32 %v606_v40  ;;  %v870_v51 = vcvt.s32.f32 %v614_v41  ;;  %v888_v31 = vcvt.s32.f32 %v632_v18 }
  0xd4   : > { %v861_v47 = vcvt.s32.f32 %v605_v35  ;;  %v869_v49 = vcvt.s32.f32 %v613_v39  ;;  %v877_v20 = vcvt.s32.f32 %v621_v9 }
  0xd5   : > { %v1102_v62 = vpack.c.bf16 %v870_v51, %v862_v50 }
  0xd6   : > { %v1101_v61 = vpack.c.bf16 %v869_v49, %v861_v47  ;;  %v528_v49 = vld [vmem:[%s4620_s16 + $0xa8] sm:$0xff] }
  0xdd   : > { %v1732_v58 = vpop.f32.mrf.mxu0 }
  0xdf   : > { %v1821_v59 = vpop.f32.mrf.mxu1 }
  0xe0   : > { %1909 = vmatmul.bf16.vlgmr.msrb.gmra.mxu2 %v1085_v54  ;;  %v4862_v60 = vadd.f32 %v1821_v59, %v1732_v58  ;;  %2087 = vmatmul.bf16.vlgmr.msrb.gmra.mxu0 %v1087_v56  ;;  %v871_v54 = vcvt.s32.f32 %v615_v43  ;;  %v872_v56 = vcvt.s32.f32 %v616_v45  ;;  %v525_v43 = vld [vmem:[%s4620_s16 + $0x90] sm:$0xff] }
  0xe1   : > { %1998 = vmatmul.bf16.vlgmr.msrb.gmra.mxu3 %v1086_v55  ;;  %v864_v55 = vcvt.s32.f32 %v608_v44  ;;  %v526_v44 = vld [vmem:[%s4620_s16 + $0x98] sm:$0xff]  ;;  %v637_v47 = vunpack.c.0.s8 %v525_v43  ;;  %v645_v51 = vunpack.c.1.s8 %v525_v43 }
  0xe2   : > { %2176 = vmatmul.bf16.vlgmr.msrb.gmra.mxu1 %v1088_v57 }
  0xe3   : > { %v1772_v63 = vpop.f32.mrf.mxu2 }
  0xe4   : > { %v1861_v0 = vpop.f32.mrf.mxu3 }
  0xe5   : > { %v4870_v2 = vadd.f32 %v1861_v0, %v1772_v63  ;;  %v1734_v10 = vpop.f32.mrf.mxu0  ;;  %v1103_v63 = vpack.c.bf16 %v871_v54, %v863_v53  ;;  %v1104_v0 = vpack.c.bf16 %v872_v56, %v864_v55  ;;  %v638_v53 = vunpack.c.0.s8 %v526_v44 }
  0xe6   : > { %v646_v54 = vunpack.c.1.s8 %v526_v44 }
  0xe7   : > { %v1823_v12 = vpop.f32.mrf.mxu1 }
  0xe8   : > { %v4872_v16 = vadd.f32 %v1823_v12, %v1734_v10  ;;  %v622_v12 = vunpack.c.2.s8 %v518_v32 }
  0xeb   : > { %v1774_v21 = vpop.f32.mrf.mxu2 }
  0xec   : > { %v1863_v22 = vpop.f32.mrf.mxu3 }
  0xed   : > { %v4874_v23 = vadd.f32 %v1863_v22, %v1774_v21  ;;  %v1737_v28 = vpop.f32.mrf.mxu0  ;;  %v885_v22 = vcvt.s32.f32 %v629_v11 }
  0xef   : > { %v1826_v29 = vpop.f32.mrf.mxu1  ;;  %v1109_v35 = vpack.c.bf16 %v885_v22, %v877_v20  ;;  %v3975_v22 = vld [vmem:[%s5507_s1 + $0x1a0] sm:$0xff] }
  0xf0   : > { %1914 = vmatmul.bf16.gmra.mxu2 %v1093_v24  ;;  %v4876_v30 = vadd.f32 %v1826_v29, %v1737_v28  ;;  %2092 = vmatmul.bf16.gmra.mxu0 %v1095_v26  ;;  %v878_v24 = vcvt.s32.f32 %v622_v12  ;;  %v887_v28 = vcvt.s32.f32 %v631_v15  ;;  %v880_v29 = vcvt.s32.f32 %v624_v17 }
  0xf1   : > { %2003 = vmatmul.bf16.gmra.mxu3 %v1094_v25  ;;  %v886_v25 = vcvt.s32.f32 %v630_v13  ;;  %2260 = vmatpush.bf16.msra.mxu2 %v3975_v22 }
  0xf2   : > { %2181 = vmatmul.bf16.gmra.mxu1 %v1096_v27  ;;  %v879_v27 = vcvt.s32.f32 %v623_v14  ;;  %v1112_v39 = vpack.c.bf16 %v888_v31, %v880_v29  ;;  %v661_v31 = vunpack.c.3.s8 %v525_v43 }
  0xf3   : > { %v1777_v33 = vpop.f32.mrf.mxu2  ;;  %v1110_v36 = vpack.c.bf16 %v886_v25, %v878_v24  ;;  %v3983_v24 = vld [vmem:[%s5507_s1 + $0x1e0] sm:$0xff] }
  0xf4   : > { %v1866_v34 = vpop.f32.mrf.mxu3  ;;  %v1111_v37 = vpack.c.bf16 %v887_v28, %v879_v27  ;;  %v653_v28 = vunpack.c.2.s8 %v525_v43  ;;  %2349 = vmatpush.bf16.msra.mxu3 %v3983_v24 }
  0xf5   : > { %v4882_v38 = vadd.f32 %v1866_v34, %v1777_v33  ;;  %v1739_v46 = vpop.f32.mrf.mxu0 }
  0xf7   : > { %v1828_v48 = vpop.f32.mrf.mxu1 }
  0xf8   : > { %v4884_v52 = vadd.f32 %v1828_v48, %v1739_v46  ;;  %v527_v48 = vld [vmem:[%s4620_s16 + $0xa0] sm:$0xff] }
  0xf9   : > { %v639_v55 = vunpack.c.0.s8 %v527_v48  ;;  %v647_v56 = vunpack.c.1.s8 %v527_v48 }
  0xfb   : > { %v1779_v57 = vpop.f32.mrf.mxu2  ;;  %v895_v6 = vcvt.s32.f32 %v639_v55 }
  0xfc   : > { %v1868_v58 = vpop.f32.mrf.mxu3 }
  0xfd   : > { %v4886_v59 = vadd.f32 %v1868_v58, %v1779_v57  ;;  %v1742_v1 = vpop.f32.mrf.mxu0  ;;  %v640_v57 = vunpack.c.0.s8 %v528_v49  ;;  %v648_v58 = vunpack.c.1.s8 %v528_v49 }
  0xff   : > { %v1831_v3 = vpop.f32.mrf.mxu1  ;;  %v904_v9 = vcvt.s32.f32 %v648_v58 }
 0x100   : > { %1919 = vmatmul.bf16.gmra.mxu2 %v1101_v61  ;;  %v4888_v4 = vadd.f32 %v1831_v3, %v1742_v1  ;;  %2097 = vmatmul.bf16.gmra.mxu0 %v1103_v63  ;;  %v894_v1 = vcvt.s32.f32 %v638_v53  ;;  %v902_v3 = vcvt.s32.f32 %v646_v54 }
 0x101   : > { %2008 = vmatmul.bf16.gmra.mxu3 %v1102_v62  ;;  %v893_v62 = vcvt.s32.f32 %v637_v47 }
 0x102   : > { %2186 = vmatmul.bf16.gmra.mxu1 %v1104_v0  ;;  %v901_v0 = vcvt.s32.f32 %v645_v51  ;;  %v1118_v15 = vpack.c.bf16 %v902_v3, %v894_v1  ;;  %v533_v3 = vld [vmem:[%s4620_s16 + $0xd0] sm:$0xff] }
 0x103   : > { %v1782_v7 = vpop.f32.mrf.mxu2 }
 0x104   : > { %v1871_v8 = vpop.f32.mrf.mxu3  ;;  %v1117_v14 = vpack.c.bf16 %v901_v0, %v893_v62 }
 0x105   : > { %v4896_v10 = vadd.f32 %v1871_v8, %v1782_v7  ;;  %v1744_v19 = vpop.f32.mrf.mxu0  ;;  %v903_v7 = vcvt.s32.f32 %v647_v56  ;;  %v896_v8 = vcvt.s32.f32 %v640_v57 }
 0x107   : > { %v1833_v21 = vpop.f32.mrf.mxu1  ;;  %v1119_v17 = vpack.c.bf16 %v903_v7, %v895_v6  ;;  %v1120_v18 = vpack.c.bf16 %v904_v9, %v896_v8  ;;  %v534_v6 = vld [vmem:[%s4620_s16 + $0xd8] sm:$0xff]  ;;  %v669_v9 = vunpack.c.0.s8 %v533_v3 }
 0x108   : > { %v4898_v26 = vadd.f32 %v1833_v21, %v1744_v19 }
 0x10b   : > { %v1784_v33 = vpop.f32.mrf.mxu2 }
 0x10c   : > { %v1873_v32 = vpop.f32.mrf.mxu3 }
 0x10d   : > { %v4900_v34 = vadd.f32 %v1873_v32, %v1784_v33  ;;  %v1747_v40 = vpop.f32.mrf.mxu0  ;;  %v654_v33 = vunpack.c.2.s8 %v526_v44  ;;  %v662_v32 = vunpack.c.3.s8 %v526_v44 }
 0x10f   : > { %v1836_v41 = vpop.f32.mrf.mxu1  ;;  %v910_v47 = vcvt.s32.f32 %v654_v33  ;;  %v918_v51 = vcvt.s32.f32 %v662_v32 }
 0x110   : > { %1924 = vmatmul.bf16.gmra.mxu2 %v1109_v35  ;;  %v4902_v42 = vadd.f32 %v1836_v41, %v1747_v40  ;;  %2102 = vmatmul.bf16.gmra.mxu0 %v1111_v37  ;;  %v655_v35 = vunpack.c.2.s8 %v527_v48  ;;  %v656_v37 = vunpack.c.2.s8 %v528_v49  ;;  %v909_v41 = vcvt.s32.f32 %v653_v28 }
 0x111   : > { %2013 = vmatmul.bf16.gmra.mxu3 %v1110_v36  ;;  %v663_v36 = vunpack.c.3.s8 %v527_v48 }
 0x112   : > { %2191 = vmatmul.bf16.gmra.mxu1 %v1112_v39  ;;  %v664_v39 = vunpack.c.3.s8 %v528_v49  ;;  %v911_v54 = vcvt.s32.f32 %v655_v35  ;;  %v912_v56 = vcvt.s32.f32 %v656_v37  ;;  %v1126_v49 = vpack.c.bf16 %v918_v51, %v910_v47 }
 0x113   : > { %v1787_v45 = vpop.f32.mrf.mxu2  ;;  %v919_v55 = vcvt.s32.f32 %v663_v36 }
 0x114   : > { %v1876_v46 = vpop.f32.mrf.mxu3  ;;  %v920_v43 = vcvt.s32.f32 %v664_v39 }
 0x115   : > { %v4908_v50 = vadd.f32 %v1876_v46, %v1787_v45  ;;  %v1749_v61 = vpop.f32.mrf.mxu0  ;;  %v917_v46 = vcvt.s32.f32 %v661_v31 }
 0x116   : > { %v1128_v62 = vpack.c.bf16 %v920_v43, %v912_v56 }
 0x117   : > { %v1838_v63 = vpop.f32.mrf.mxu1  ;;  %v1125_v48 = vpack.c.bf16 %v917_v46, %v909_v41 }
 0x118   : > { %v4910_v5 = vadd.f32 %v1838_v63, %v1749_v61  ;;  %v1127_v61 = vpack.c.bf16 %v919_v55, %v911_v54 }
 0x11b   : > { %v1789_v11 = vpop.f32.mrf.mxu2 }
 0x11c   : > { %v1878_v12 = vpop.f32.mrf.mxu3 }
 0x11d   : > { %v4912_v13 = vadd.f32 %v1878_v12, %v1789_v11  ;;  %v1752_v19 = vpop.f32.mrf.mxu0  ;;  %v535_v11 = vld [vmem:[%s4620_s16 + $0xe0] sm:$0xff]  ;;  %v536_v12 = vld [vmem:[%s4620_s16 + $0xe8] sm:$0xff] }
 0x11e   : > { %v672_v22 = vunpack.c.0.s8 %v536_v12  ;;  %v680_v24 = vunpack.c.1.s8 %v536_v12 }
 0x11f   : > { %v1841_v20 = vpop.f32.mrf.mxu1 }
 0x120   : > { %1929 = vmatmul.bf16.gmra.mxu2 %v1117_v14  ;;  %v4914_v21 = vadd.f32 %v1841_v20, %v1752_v19  ;;  %2107 = vmatmul.bf16.gmra.mxu0 %v1119_v17  ;;  %v670_v17 = vunpack.c.0.s8 %v534_v6  ;;  %v671_v19 = vunpack.c.0.s8 %v535_v11  ;;  %v679_v20 = vunpack.c.1.s8 %v535_v11 }
 0x121   : > { %2018 = vmatmul.bf16.gmra.mxu3 %v1118_v15  ;;  %v677_v15 = vunpack.c.1.s8 %v533_v3  ;;  %v928_v39 = vcvt.s32.f32 %v672_v22 }
 0x122   : > { %2196 = vmatmul.bf16.gmra.mxu1 %v1120_v18  ;;  %v678_v18 = vunpack.c.1.s8 %v534_v6  ;;  %v926_v33 = vcvt.s32.f32 %v670_v17  ;;  %v927_v36 = vcvt.s32.f32 %v671_v19  ;;  %v935_v37 = vcvt.s32.f32 %v679_v20 }
 0x123   : > { %v1792_v25 = vpop.f32.mrf.mxu2  ;;  %v933_v31 = vcvt.s32.f32 %v677_v15  ;;  %v695_v15 = vunpack.c.3.s8 %v535_v11  ;;  %v688_v17 = vunpack.c.2.s8 %v536_v12 }
 0x124   : > { %v1881_v27 = vpop.f32.mrf.mxu3  ;;  %v934_v32 = vcvt.s32.f32 %v678_v18  ;;  %v1135_v54 = vpack.c.bf16 %v935_v37, %v927_v36  ;;  %v696_v18 = vunpack.c.3.s8 %v536_v12 }
 0x125   : > { %v4922_v29 = vadd.f32 %v1881_v27, %v1792_v25  ;;  %v1754_v40 = vpop.f32.mrf.mxu0  ;;  %v925_v27 = vcvt.s32.f32 %v669_v9  ;;  %v687_v9 = vunpack.c.2.s8 %v535_v11 }
 0x126   : > { %v1134_v51 = vpack.c.bf16 %v934_v32, %v926_v33  ;;  %v951_v33 = vcvt.s32.f32 %v695_v15  ;;  %v944_v32 = vcvt.s32.f32 %v688_v17  ;;  %v4018_v17 = vld [vmem:[#allocation9 + $0x38] sm:$0xff] }
 0x127   : > { %v1843_v45 = vpop.f32.mrf.mxu1  ;;  %v1133_v47 = vpack.c.bf16 %v933_v31, %v925_v27  ;;  %v943_v31 = vcvt.s32.f32 %v687_v9  ;;  %2982 = vmatpush.bf16.msra.mxu0 %v4018_v17 }
 0x128   : > { %v4924_v53 = vadd.f32 %v1843_v45, %v1754_v40  ;;  %v936_v40 = vcvt.s32.f32 %v680_v24 }
 0x12a   : > { %v1136_v55 = vpack.c.bf16 %v936_v40, %v928_v39  ;;  %v1143_v39 = vpack.c.bf16 %v951_v33, %v943_v31 }
 0x12b   : > { %v1794_v57 = vpop.f32.mrf.mxu2 }
 0x12c   : > { %v1883_v44 = vpop.f32.mrf.mxu3 }
 0x12d   : > { %v4926_v58 = vadd.f32 %v1883_v44, %v1794_v57  ;;  %v1757_v63 = vpop.f32.mrf.mxu0  ;;  %v3974_v44 = vld [vmem:[%s5507_s1 + $0x198] sm:$0xff] }
 0x12e   : > { %2261 = vmatpush.bf16.msra.mxu2 %v3974_v44  ;;  %v4964_v44 = vld [vmem:[%s4620_s16 + $0x120] sm:$0xff] }
 0x12f   : > { %v1846_v0 = vpop.f32.mrf.mxu1 }
 0x130   : > { %1934 = vmatmul.bf16.gmra.mxu2 %v1125_v48  ;;  %v4928_v1 = vadd.f32 %v1846_v0, %v1757_v63  ;;  %2112 = vmatmul.bf16.gmra.mxu0 %v1127_v61  ;;  %v3982_v48 = vld [vmem:[%s5507_s1 + $0x1d8] sm:$0xff]  ;;  %v693_v0 = vunpack.c.3.s8 %v533_v3 }
 0x131   : > { %2023 = vmatmul.bf16.gmra.mxu3 %v1126_v49 }
 0x132   : > { %2201 = vmatmul.bf16.gmra.mxu1 %v1128_v62  ;;  %v685_v62 = vunpack.c.2.s8 %v533_v3  ;;  %2350 = vmatpush.bf16.msra.mxu3 %v3982_v48  ;;  %v949_v24 = vcvt.s32.f32 %v693_v0  ;;  %v952_v3 = vcvt.s32.f32 %v696_v18  ;;  %v4967_v48 = vld [vmem:[%s4620_s16 + $0x128] sm:$0xff]  ;;  %v3994_v18 = vld [vmem:[#allocation8 + $0x38] sm:$0xff] }
 0x133   : > { %v1797_v7 = vpop.f32.mrf.mxu2  ;;  %v704_v9 = vunpack.c.0.s8 %v4967_v48  ;;  %v712_v15 = vunpack.c.1.s8 %v4967_v48  ;;  %3119 = vmatpush.bf16.msra.mxu1 %v3994_v18  ;;  %v719_v18 = vunpack.c.2.s8 %v4964_v44 }
 0x134   : > { %v1886_v8 = vpop.f32.mrf.mxu3  ;;  %v941_v20 = vcvt.s32.f32 %v685_v62  ;;  %v1144_v40 = vpack.c.bf16 %v952_v3, %v944_v32 }
 0x135   : > { %v4934_v14 = vadd.f32 %v1886_v8, %v1797_v7  ;;  %v1759_v25 = vpop.f32.mrf.mxu0  ;;  %v686_v7 = vunpack.c.2.s8 %v534_v6  ;;  %v694_v8 = vunpack.c.3.s8 %v534_v6  ;;  %v960_v3 = vcvt.s32.f32 %v704_v9 }
 0x136   : > { %v1141_v11 = vpack.c.bf16 %v949_v24, %v941_v20 }
 0x137   : > { %v1848_v28 = vpop.f32.mrf.mxu1  ;;  %v950_v27 = vcvt.s32.f32 %v694_v8  ;;  %v711_v8 = vunpack.c.1.s8 %v4964_v44 }
 0x138   : > { %v4936_v35 = vadd.f32 %v1848_v28, %v1759_v25  ;;  %v942_v25 = vcvt.s32.f32 %v686_v7  ;;  %v703_v7 = vunpack.c.0.s8 %v4964_v44 }
 0x139   : > { %v967_v32 = vcvt.s32.f32 %v711_v8 }
 0x13a   : > { %v1142_v12 = vpack.c.bf16 %v950_v27, %v942_v25  ;;  %v959_v33 = vcvt.s32.f32 %v703_v7 }
 0x13b   : > { %v1799_v41 = vpop.f32.mrf.mxu2 }
 0x13c   : > { %v1888_v45 = vpop.f32.mrf.mxu3 }
 0x13d   : > { %v4938_v46 = vadd.f32 %v1888_v45, %v1799_v41  ;;  %v1762_v56 = vpop.f32.mrf.mxu0 }
 0x13f   : > { %v1851_v43 = vpop.f32.mrf.mxu1 }
 0x140   : > { %1939 = vmatmul.bf16.gmra.mxu2 %v1133_v47  ;;  %v4940_v57 = vadd.f32 %v1851_v43, %v1762_v56  ;;  %2117 = vmatmul.bf16.gmra.mxu0 %v1135_v54  ;;  %v4960_v54 = vld [vmem:[%s4620_s16 + $0x118] sm:$0xff] }
 0x141   : > { %2028 = vmatmul.bf16.gmra.mxu3 %v1134_v51  ;;  %v4957_v51 = vld [vmem:[%s4620_s16 + $0x110] sm:$0xff]  ;;  %v702_v62 = vunpack.c.0.s8 %v4960_v54  ;;  %v710_v0 = vunpack.c.1.s8 %v4960_v54  ;;  %v726_v17 = vunpack.c.3.s8 %v4960_v54 }
 0x142   : > { %2206 = vmatmul.bf16.gmra.mxu1 %v1136_v55  ;;  %v701_v43 = vunpack.c.0.s8 %v4957_v51  ;;  %v717_v7 = vunpack.c.2.s8 %v4957_v51  ;;  %v725_v9 = vunpack.c.3.s8 %v4957_v51 }
 0x143   : > { %v1802_v49 = vpop.f32.mrf.mxu2  ;;  %v958_v25 = vcvt.s32.f32 %v702_v62  ;;  %v966_v27 = vcvt.s32.f32 %v710_v0 }
 0x144   : > { %v1891_v61 = vpop.f32.mrf.mxu3  ;;  %v957_v20 = vcvt.s32.f32 %v701_v43  ;;  %v3973_v43 = vld [vmem:[%s5507_s1 + $0x190] sm:$0xff] }
 0x145   : > { %v4948_v63 = vadd.f32 %v1891_v61, %v1802_v49  ;;  %v1764_v19 = vpop.f32.mrf.mxu0  ;;  %v709_v61 = vunpack.c.1.s8 %v4957_v51  ;;  %2262 = vmatpush.bf16.msra.mxu2 %v3973_v43 }
 0x147   : > { %v1853_v22 = vpop.f32.mrf.mxu1  ;;  %v965_v24 = vcvt.s32.f32 %v709_v61  ;;  %v3981_v61 = vld [vmem:[%s5507_s1 + $0x1d0] sm:$0xff] }
 0x148   : > { %v4950_v28 = vadd.f32 %v1853_v22, %v1764_v19  ;;  %2351 = vmatpush.bf16.msra.mxu3 %v3981_v61 }
 0x14b   : > { %v1804_v36 = vpop.f32.mrf.mxu2 }
 0x14c   : > { %v1893_v6 = vpop.f32.mrf.mxu3 }
 0x14d   : > { %v4952_v37 = vadd.f32 %v1893_v6, %v1804_v36  ;;  %v1767_v41 = vpop.f32.mrf.mxu0  ;;  %v968_v36 = vcvt.s32.f32 %v712_v15  ;;  %v718_v15 = vunpack.c.2.s8 %v4960_v54 }
 0x14f   : > { %v1856_v45 = vpop.f32.mrf.mxu1  ;;  %v974_v51 = vcvt.s32.f32 %v718_v15 }
 0x150   : > { %1944 = vmatmul.bf16.gmra.mxu2 %v1141_v11  ;;  %v4954_v47 = vadd.f32 %v1856_v45, %v1767_v41  ;;  %2122 = vmatmul.bf16.gmra.mxu0 %v1143_v39  ;;  %v1149_v39 = vpack.c.bf16 %v965_v24, %v957_v20  ;;  %v1151_v41 = vpack.c.bf16 %v967_v32, %v959_v33  ;;  %v727_v20 = vunpack.c.3.s8 %v4964_v44 }
 0x151   : > { %2033 = vmatmul.bf16.gmra.mxu3 %v1142_v12  ;;  %v1152_v45 = vpack.c.bf16 %v968_v36, %v960_v3  ;;  %v728_v24 = vunpack.c.3.s8 %v4967_v48  ;;  %v981_v32 = vcvt.s32.f32 %v725_v9  ;;  %v982_v3 = vcvt.s32.f32 %v726_v17 }
 0x152   : > { %2211 = vmatmul.bf16.gmra.mxu1 %v1144_v40  ;;  %v1150_v40 = vpack.c.bf16 %v966_v27, %v958_v25  ;;  %v973_v27 = vcvt.s32.f32 %v717_v7  ;;  %v975_v36 = vcvt.s32.f32 %v719_v18  ;;  %v983_v54 = vcvt.s32.f32 %v727_v20  ;;  %v5001_v7 = vld [vmem:[%s4620_s16 + $0x150] sm:$0xff] }
 0x153   : > { %v1807_v55 = vpop.f32.mrf.mxu2  ;;  %v733_v18 = vunpack.c.0.s8 %v5001_v7 }
 0x154   : > { %v1896_v56 = vpop.f32.mrf.mxu3 }
 0x155   : > { %v4969_v49 = vadd.f32 %v1896_v56, %v1807_v55  ;;  %v1769_v19 = vpop.f32.mrf.mxu0 }
 0x157   : > { %v1858_v22 = vpop.f32.mrf.mxu1 }
 0x158   : > { %v4978_v31 = vadd.f32 %v1858_v22, %v1769_v19  ;;  %v720_v22 = vunpack.c.2.s8 %v4967_v48  ;;  %v1157_v48 = vpack.c.bf16 %v981_v32, %v973_v27 }
 0x15b   : > { %v1809_v6 = vpop.f32.mrf.mxu2 }
 0x15c   : > { %v1898_v11 = vpop.f32.mrf.mxu3 }
 0x15d   : > { %v4980_v12 = vadd.f32 %v1898_v11, %v1809_v6  ;;  %v2088_v55 = vpop.f32.mrf.mxu0  ;;  %v976_v11 = vcvt.s32.f32 %v720_v22  ;;  %v741_v22 = vunpack.c.1.s8 %v5001_v7 }
 0x15f   : > { %v2177_v56 = vpop.f32.mrf.mxu1 }
 0x160   : > { %1949 = vmatmul.bf16.gmra.mxu2 %v1149_v39  ;;  %2127 = vmatmul.bf16.gmra.mxu0 %v1151_v41  ;;  %v984_v39 = vcvt.s32.f32 %v728_v24 }
 0x161   : > { %2038 = vmatmul.bf16.gmra.mxu3 %v1150_v40 }
 0x162   : > { %2216 = vmatmul.bf16.gmra.mxu1 %v1152_v45  ;;  %v1158_v45 = vpack.c.bf16 %v982_v3, %v974_v51  ;;  %v1160_v61 = vpack.c.bf16 %v984_v39, %v976_v11  ;;  %v4017_v3 = vld [vmem:[#allocation9 + $0x30] sm:$0xff] }
 0x163   : > { %v1910_v62 = vpop.f32.mrf.mxu2  ;;  %2983 = vmatpush.bf16.msra.mxu0 %v4017_v3  ;;  %v749_v3 = vunpack.c.2.s8 %v5001_v7 }
 0x164   : > { %v1999_v0 = vpop.f32.mrf.mxu3  ;;  %v1911_v8 = vadd.f32 %v1910_v62, %v4862_v60 }
 0x165   : > { %v2090_v25 = vpop.f32.mrf.mxu0 }
 0x166   : > { %v2000_v19 = vadd.f32 %v1999_v0, %v1911_v8  ;;  %v5004_v8 = vld [vmem:[%s4620_s16 + $0x158] sm:$0xff] }
 0x167   : > { %v2179_v33 = vpop.f32.mrf.mxu1  ;;  %v734_v24 = vunpack.c.0.s8 %v5004_v8 }
 0x168   : > { %v2089_v60 = vadd.f32 %v2088_v55, %v2000_v19  ;;  %v1159_v55 = vpack.c.bf16 %v983_v54, %v975_v36  ;;  %v5013_v19 = vld [vmem:[%s4620_s16 + $0x168] sm:$0xff]  ;;  %v3993_v36 = vld [vmem:[#allocation8 + $0x30] sm:$0xff]  ;;  %v989_v54 = vcvt.s32.f32 %v733_v18 }
 0x169   : > { %v736_v32 = vunpack.c.0.s8 %v5013_v19  ;;  %v744_v51 = vunpack.c.1.s8 %v5013_v19  ;;  %3120 = vmatpush.bf16.msra.mxu1 %v3993_v36 }
 0x16a   : > { %v4997_v6 = vadd.f32 %v2177_v56, %v2089_v60 }
 0x16b   : > { %v1912_v44 = vpop.f32.mrf.mxu2 }
 0x16c   : > { %v2001_v40 = vpop.f32.mrf.mxu3  ;;  %v1913_v41 = vadd.f32 %v1912_v44, %v4872_v16  ;;  %v5009_v16 = vld [vmem:[%s4620_s16 + $0x160] sm:$0xff]  ;;  %v997_v44 = vcvt.s32.f32 %v741_v22 }
 0x16d   : > { %v2093_v62 = vpop.f32.mrf.mxu0  ;;  %v735_v27 = vunpack.c.0.s8 %v5009_v16  ;;  %v743_v60 = vunpack.c.1.s8 %v5009_v16 }
 0x16e   : > { %v2002_v43 = vadd.f32 %v2001_v40, %v1913_v41  ;;  %v990_v40 = vcvt.s32.f32 %v734_v24  ;;  %v1165_v18 = vpack.c.bf16 %v997_v44, %v989_v54  ;;  %v750_v54 = vunpack.c.2.s8 %v5004_v8  ;;  %v2534_v44 = vld [vmem:[%s5039_s30] sm:$0xff] }
 0x16f   : > { %v2182_v56 = vpop.f32.mrf.mxu1 }
 0x170   : > { %v2091_v0 = vadd.f32 %v2090_v25, %v2002_v43  ;;  %1954 = vmatmul.bf16.gmra.mxu2 %v1157_v48  ;;  %2132 = vmatmul.bf16.gmra.mxu0 %v1159_v55  ;;  %v742_v25 = vunpack.c.1.s8 %v5004_v8  ;;  %v991_v48 = vcvt.s32.f32 %v735_v27  ;;  %v999_v43 = vcvt.s32.f32 %v743_v60  ;;  %v3980_v60 = vld [vmem:[%s5507_s1 + $0x1c8] sm:$0xff] }
 0x171   : > { %2043 = vmatmul.bf16.gmra.mxu3 %v1158_v45  ;;  %v992_v55 = vcvt.s32.f32 %v736_v32 }
 0x172   : > { %v5006_v9 = vadd.f32 %v2179_v33, %v2091_v0  ;;  %2221 = vmatmul.bf16.gmra.mxu1 %v1160_v61  ;;  %v998_v41 = vcvt.s32.f32 %v742_v25  ;;  %v1000_v61 = vcvt.s32.f32 %v744_v51  ;;  %v1167_v22 = vpack.c.bf16 %v999_v43, %v991_v48  ;;  %2352 = vmatpush.bf16.msra.mxu3 %v3980_v60 }
 0x173   : > { %v1915_v15 = vpop.f32.mrf.mxu2  ;;  %v759_v48 = vunpack.c.3.s8 %v5009_v16  ;;  %v752_v43 = vunpack.c.2.s8 %v5013_v19 }
 0x174   : > { %v2004_v17 = vpop.f32.mrf.mxu3  ;;  %v1916_v20 = vadd.f32 %v1915_v15, %v4876_v30  ;;  %v1168_v24 = vpack.c.bf16 %v1000_v61, %v992_v55  ;;  %v1005_v55 = vcvt.s32.f32 %v749_v3 }
 0x175   : > { %v2095_v30 = vpop.f32.mrf.mxu0 }
 0x176   : > { %v2005_v33 = vadd.f32 %v2004_v17, %v1916_v20  ;;  %v1166_v20 = vpack.c.bf16 %v998_v41, %v990_v40  ;;  %v751_v40 = vunpack.c.2.s8 %v5009_v16 }
 0x177   : > { %v2184_v11 = vpop.f32.mrf.mxu1 }
 0x178   : > { %v2094_v39 = vadd.f32 %v2093_v62, %v2005_v33 }
 0x17a   : > { %v5028_v45 = vadd.f32 %v2182_v56, %v2094_v39  ;;  %v3972_v56 = vld [vmem:[%s5507_s1 + $0x188] sm:$0xff]  ;;  %v4450_v39 = vmov 0  }
 0x17b   : > { %v1917_v0 = vpop.f32.mrf.mxu2  ;;  %2263 = vmatpush.bf16.msra.mxu2 %v3972_v56  ;;  %4225 = vset.pattern.permute.xlu0 %v4450_v39 }
 0x17c   : > { %v2006_v15 = vpop.f32.mrf.mxu3  ;;  %v1918_v17 = vadd.f32 %v1917_v0, %v4884_v52  ;;  %2568 = vperm.xlu0 %4225, %v2534_v44   ;;  %4226 = vset.pattern.permute.xlu1 %v4450_v39 }
 0x17d   : > { %v2098_v25 = vpop.f32.mrf.mxu0  ;;  %4227 = vset.pattern.permute.xlu2 %v4450_v39  ;;  %v5069_v39 = vld [vmem:[%s4620_s16 + $0x1a0] sm:$0xff] }
 0x17e   : > { %v2007_v62 = vadd.f32 %v2006_v15, %v1918_v17  ;;  %v1006_v15 = vcvt.s32.f32 %v750_v54  ;;  %v5061_v54 = vld [vmem:[%s4620_s16 + $0x190] sm:$0xff] }
 0x17f   : > { %v2187_v33 = vpop.f32.mrf.mxu1 }
 0x180   : > { %v2096_v27 = vadd.f32 %v2095_v30, %v2007_v62  ;;  %1959 = vmatmul.bf16.gmra.mxu2 %v1165_v18  ;;  %2137 = vmatmul.bf16.gmra.mxu0 %v1167_v22  ;;  %v757_v30 = vunpack.c.3.s8 %v5001_v7  ;;  %v1007_v18 = vcvt.s32.f32 %v751_v40  ;;  %v1015_v62 = vcvt.s32.f32 %v759_v48  ;;  %v5073_v48 = vld [vmem:[%s4620_s16 + $0x1a8] sm:$0xff] }
 0x181   : > { %2048 = vmatmul.bf16.gmra.mxu3 %v1166_v20  ;;  %v1008_v22 = vcvt.s32.f32 %v752_v43 }
 0x182   : > { %v5041_v52 = vadd.f32 %v2184_v11, %v2096_v27  ;;  %2226 = vmatmul.bf16.gmra.mxu1 %v1168_v24  ;;  %v758_v11 = vunpack.c.3.s8 %v5004_v8  ;;  %v1013_v0 = vcvt.s32.f32 %v757_v30 }
 0x183   : > { %v1920_v32 = vpop.f32.mrf.mxu2 }
 0x184   : > { %v2009_v51 = vpop.f32.mrf.mxu3  ;;  %v1921_v36 = vadd.f32 %v1920_v32, %v4888_v4  ;;  %v760_v4 = vunpack.c.3.s8 %v5013_v19  ;;  %v1014_v17 = vcvt.s32.f32 %v758_v11  ;;  %v1173_v56 = vpack.c.bf16 %v1013_v0, %v1005_v55  ;;  %v2535_v32 = vld [vmem:[%s5039_s30 + $0x8] sm:$0xff]  ;;  %v5064_v11 = vld [vmem:[%s4620_s16 + $0x198] sm:$0xff] }
 0x185   : > { %v2100_v7 = vpop.f32.mrf.mxu0  ;;  %2573 = vperm.xlu0 %4225, %v2535_v32   ;;  %v774_v55 = vunpack.c.1.s8 %v5064_v11  ;;  %v767_v0 = vunpack.c.0.s8 %v5069_v39 }
 0x186   : > { %v2010_v41 = vadd.f32 %v2009_v51, %v1921_v36  ;;  %v1016_v24 = vcvt.s32.f32 %v760_v4  ;;  %v1174_v60 = vpack.c.bf16 %v1014_v17, %v1006_v15  ;;  %v1175_v51 = vpack.c.bf16 %v1015_v62, %v1007_v18 }
 0x187   : > { %v2189_v8 = vpop.f32.mrf.mxu1  ;;  %v773_v4 = vunpack.c.1.s8 %v5061_v54  ;;  %v775_v17 = vunpack.c.1.s8 %v5069_v39  ;;  %v768_v18 = vunpack.c.0.s8 %v5073_v48  ;;  %v776_v62 = vunpack.c.1.s8 %v5073_v48 }
 0x188   : > { %v2099_v61 = vadd.f32 %v2098_v25, %v2010_v41  ;;  %v1176_v3 = vpack.c.bf16 %v1016_v24, %v1008_v22  ;;  %v765_v41 = vunpack.c.0.s8 %v5061_v54  ;;  %v3992_v22 = vld [vmem:[#allocation8 + $0x28] sm:$0xff]  ;;  %v1030_v32 = vcvt.s32.f32 %v774_v55 }
 0x189   : > { %3121 = vmatpush.bf16.msra.mxu1 %v3992_v22 }
 0x18a   : > { %v5056_v20 = vadd.f32 %v2187_v33, %v2099_v61  ;;  %v2540_v61 = vld [vmem:[%s5039_s30 + $0x30] sm:$0xff] }
 0x18b   : > { %v1922_v16 = vpop.f32.mrf.mxu2 }
 0x18c   : > { %v2011_v27 = vpop.f32.mrf.mxu3  ;;  %v1923_v19 = vadd.f32 %v1922_v16, %v4898_v26  ;;  %v1021_v16 = vcvt.s32.f32 %v765_v41 }
 0x18d   : > { %v2103_v33 = vpop.f32.mrf.mxu0  ;;  %2598 = vperm.xlu0 %4225, %v2540_v61  }
 0x18e   : > { %v2012_v25 = vadd.f32 %v2011_v27, %v1923_v19 }
 0x18f   : > { %v2192_v36 = vpop.f32.mrf.mxu1 }
 0x190   : > { %v2101_v30 = vadd.f32 %v2100_v7, %v2012_v25  ;;  %1964 = vmatmul.bf16.gmra.mxu2 %v1173_v56  ;;  %2142 = vmatmul.bf16.gmra.mxu0 %v1175_v51  ;;  %v766_v7 = vunpack.c.0.s8 %v5064_v11  ;;  %v1029_v56 = vcvt.s32.f32 %v773_v4  ;;  %v1023_v25 = vcvt.s32.f32 %v767_v0 }
 0x191   : > { %2053 = vmatmul.bf16.gmra.mxu3 %v1174_v60 }
 0x192   : > { %v5066_v26 = vadd.f32 %v2189_v8, %v2101_v30  ;;  %2231 = vmatmul.bf16.gmra.mxu1 %v1176_v3  ;;  %v2536_v8 = vld [vmem:[%s5039_s30 + $0x10] sm:$0xff]  ;;  %v1022_v60 = vcvt.s32.f32 %v766_v7  ;;  %v1031_v3 = vcvt.s32.f32 %v775_v17  ;;  %v1024_v30 = vcvt.s32.f32 %v768_v18  ;;  %v3979_v18 = vld [vmem:[%s5507_s1 + $0x1c0] sm:$0xff] }
 0x193   : > { %v1925_v44 = vpop.f32.mrf.mxu2  ;;  %2578 = vperm.xlu1 %4226, %v2536_v8   ;;  %v1181_v41 = vpack.c.bf16 %v1029_v56, %v1021_v16  ;;  %v782_v56 = vunpack.c.2.s8 %v5064_v11  ;;  %2353 = vmatpush.bf16.msra.mxu3 %v3979_v18 }
 0x194   : > { %v2014_v40 = vpop.f32.mrf.mxu3  ;;  %v1926_v43 = vadd.f32 %v1925_v44, %v4902_v42  ;;  %v4016_v42 = vld [vmem:[#allocation9 + $0x28] sm:$0xff]  ;;  %v1032_v44 = vcvt.s32.f32 %v776_v62  ;;  %v1182_v61 = vpack.c.bf16 %v1030_v32, %v1022_v60  ;;  %v1183_v7 = vpack.c.bf16 %v1031_v3, %v1023_v25  ;;  %v2541_v60 = vld [vmem:[%s5039_s30 + $0x38] sm:$0xff]  ;;  %v2546_v32 = vld [vmem:[%s5039_s30 + $0x60] sm:$0xff] }
 0x195   : > { %v2105_v24 = vpop.f32.mrf.mxu0  ;;  %2984 = vmatpush.bf16.msra.mxu0 %v4016_v42  ;;  %v783_v25 = vunpack.c.2.s8 %v5069_v39 }
 0x196   : > { %v2015_v15 = vadd.f32 %v2014_v40, %v1926_v43  ;;  %v1184_v55 = vpack.c.bf16 %v1032_v44, %v1024_v30  ;;  %v791_v30 = vunpack.c.3.s8 %v5069_v39  ;;  %v784_v44 = vunpack.c.2.s8 %v5073_v48 }
 0x197   : > { %v2194_v27 = vpop.f32.mrf.mxu1 }
 0x198   : > { %v2104_v19 = vadd.f32 %v2103_v33, %v2015_v15  ;;  %v2537_v33 = vld [vmem:[%s5039_s30 + $0x18] sm:$0xff]  ;;  %v2543_v15 = vld [vmem:[%s5039_s30 + $0x48] sm:$0xff]  ;;  %v1040_v39 = vcvt.s32.f32 %v784_v44 }
 0x199   : > { %2613 = vperm.xlu0 %4225, %v2543_v15  }
 0x19a   : > { %v5085_v51 = vadd.f32 %v2192_v36, %v2104_v19  ;;  %v789_v19 = vunpack.c.3.s8 %v5061_v54 }
 0x19b   : > { %v1927_v40 = vpop.f32.mrf.mxu2  ;;  %2583 = vperm.xlu1 %4226, %v2537_v33   ;;  %v1039_v33 = vcvt.s32.f32 %v783_v25 }
 0x19c   : > { %v2016_v43 = vpop.f32.mrf.mxu3  ;;  %v1928_v8 = vadd.f32 %v1927_v40, %v4910_v5  ;;  %v3971_v5 = vld [vmem:[%s5507_s1 + $0x180] sm:$0xff] }
 0x19d   : > { %v2108_v42 = vpop.f32.mrf.mxu0  ;;  %2264 = vmatpush.bf16.msra.mxu2 %v3971_v5 }
 0x19e   : > { %v2017_v4 = vadd.f32 %v2016_v43, %v1928_v8  ;;  %v1045_v8 = vcvt.s32.f32 %v789_v19 }
 0x19f   : > { %v2197_v0 = vpop.f32.mrf.mxu1 }
 0x1a0   : > { %v2106_v36 = vadd.f32 %v2105_v24, %v2017_v4  ;;  %1969 = vmatmul.bf16.gmra.mxu2 %v1181_v41  ;;  %2147 = vmatmul.bf16.gmra.mxu0 %v1183_v7  ;;  %v781_v24 = vunpack.c.2.s8 %v5061_v54  ;;  %v1038_v41 = vcvt.s32.f32 %v782_v56  ;;  %v1047_v4 = vcvt.s32.f32 %v791_v30  ;;  %v5121_v56 = vld [vmem:[%s4620_s16 + $0x1d0] sm:$0xff] }
 0x1a1   : > { %2058 = vmatmul.bf16.gmra.mxu3 %v1182_v61  ;;  %2628 = vperm.xlu0 %4225, %v2546_v32   ;;  %v797_v25 = vunpack.c.0.s8 %v5121_v56  ;;  %v805_v44 = vunpack.c.1.s8 %v5121_v56 }
 0x1a2   : > { %v5093_v17 = vadd.f32 %v2194_v27, %v2106_v36  ;;  %2236 = vmatmul.bf16.gmra.mxu1 %v1184_v55  ;;  %v790_v27 = vunpack.c.3.s8 %v5064_v11  ;;  %v1037_v54 = vcvt.s32.f32 %v781_v24 }
 0x1a3   : > { %v1930_v62 = vpop.f32.mrf.mxu2  ;;  %2603 = vperm.xlu1 %4226, %v2541_v60  }
 0x1a4   : > { %v2019_v22 = vpop.f32.mrf.mxu3  ;;  %v1931_v16 = vadd.f32 %v1930_v62, %v4914_v21  ;;  %v792_v21 = vunpack.c.3.s8 %v5073_v48  ;;  %v1046_v61 = vcvt.s32.f32 %v790_v27  ;;  %v1189_v5 = vpack.c.bf16 %v1045_v8, %v1037_v54  ;;  %v2544_v62 = vld [vmem:[%s5039_s30 + $0x50] sm:$0xff]  ;;  %v5127_v27 = vld [vmem:[%s4620_s16 + $0x1e0] sm:$0xff] }
 0x1a5   : > { %v5109_v40 = vpop.f32.mrf.mxu0  ;;  %v2552_v8 = vld [vmem:[%s5039_s30 + $0x90] sm:$0xff] }
 0x1a6   : > { %v2020_v3 = vadd.f32 %v2019_v22, %v1931_v16  ;;  %v1048_v7 = vcvt.s32.f32 %v792_v21  ;;  %v1190_v18 = vpack.c.bf16 %v1046_v61, %v1038_v41  ;;  %v799_v41 = vunpack.c.0.s8 %v5127_v27 }
 0x1a7   : > { %v5111_v43 = vpop.f32.mrf.mxu1 }
 0x1a8   : > { %v2109_v11 = vadd.f32 %v2108_v42, %v2020_v3  ;;  %v2549_v42 = vld [vmem:[%s5039_s30 + $0x78] sm:$0xff]  ;;  %v1192_v24 = vpack.c.bf16 %v1048_v7, %v1040_v39  ;;  %v5131_v3 = vld [vmem:[%s4620_s16 + $0x1e8] sm:$0xff]  ;;  %v3991_v7 = vld [vmem:[#allocation8 + $0x20] sm:$0xff] }
 0x1a9   : > { %2643 = vperm.xlu0 %4225, %v2549_v42   ;;  %v808_v39 = vunpack.c.1.s8 %v5131_v3  ;;  %3122 = vmatpush.bf16.msra.mxu1 %v3991_v7 }
 0x1aa   : > { %v5113_v15 = vadd.f32 %v2197_v0, %v2109_v11  ;;  %v1191_v0 = vpack.c.bf16 %v1047_v4, %v1039_v33  ;;  %v2547_v11 = vld [vmem:[%s5039_s30 + $0x68] sm:$0xff]  ;;  %v807_v33 = vunpack.c.1.s8 %v5127_v27  ;;  %v800_v4 = vunpack.c.0.s8 %v5131_v3 }
 0x1ab   : > { %v1932_v55 = vpop.f32.mrf.mxu2  ;;  %2618 = vperm.xlu1 %4226, %v2544_v62  }
 0x1ac   : > { %v2021_v48 = vpop.f32.mrf.mxu3  ;;  %v1933_v36 = vadd.f32 %v1932_v55, %v4924_v53  ;;  %v5124_v53 = vld [vmem:[%s4620_s16 + $0x1d8] sm:$0xff] }
 0x1ad   : > { %v2113_v16 = vpop.f32.mrf.mxu0  ;;  %v798_v21 = vunpack.c.0.s8 %v5124_v53  ;;  %v806_v54 = vunpack.c.1.s8 %v5124_v53  ;;  %v814_v7 = vunpack.c.2.s8 %v5124_v53 }
 0x1ae   : > { %v5118_v22 = vadd.f32 %v2021_v48, %v1933_v36  ;;  %v1053_v48 = vcvt.s32.f32 %v797_v25 }
 0x1af   : > { %v2202_v19 = vpop.f32.mrf.mxu1  ;;  %v1054_v62 = vcvt.s32.f32 %v798_v21  ;;  %v1062_v42 = vcvt.s32.f32 %v806_v54 }
 0x1b0   : > { %1974 = vmatmul.bf16.gmra.mxu2 %v1189_v5  ;;  %2152 = vmatmul.bf16.gmra.mxu0 %v1191_v0  ;;  %v1055_v0 = vcvt.s32.f32 %v799_v41 }
 0x1b1   : > { %2063 = vmatmul.bf16.gmra.mxu3 %v1190_v18  ;;  %2658 = vperm.xlu0 %4225, %v2552_v8   ;;  %v1061_v18 = vcvt.s32.f32 %v805_v44 }
 0x1b2   : > { %2241 = vmatmul.bf16.gmra.mxu1 %v1192_v24 }
 0x1b3   : > { %v1935_v60 = vpop.f32.mrf.mxu2  ;;  %2633 = vperm.xlu1 %4226, %v2547_v11  }
 0x1b4   : > { %v2024_v32 = vpop.f32.mrf.mxu3  ;;  %v1936_v30 = vadd.f32 %v1935_v60, %v4928_v1  ;;  %v4015_v1 = vld [vmem:[#allocation9 + $0x20] sm:$0xff]  ;;  %v1063_v60 = vcvt.s32.f32 %v807_v33 }
 0x1b5   : > { %v5143_v55 = vpop.f32.mrf.mxu0  ;;  %2985 = vmatpush.bf16.msra.mxu0 %v4015_v1  ;;  %v821_v1 = vunpack.c.3.s8 %v5121_v56 }
 0x1b6   : > { %v2025_v61 = vadd.f32 %v2024_v32, %v1936_v30  ;;  %5541 = vst [vmem:[#allocation22_spill] sm:$0xff] %v5143_v55  ;;  %v1056_v32 = vcvt.s32.f32 %v800_v4  ;;  %v1064_v30 = vcvt.s32.f32 %v808_v39  ;;  %v1197_v55 = vpack.c.bf16 %v1061_v18, %v1053_v48  ;;  %v2553_v18 = vld [vmem:[%s5039_s30 + $0x98] sm:$0xff] }
 0x1b7   : > { %v5145_v36 = vpop.f32.mrf.mxu1  ;;  %v1199_v21 = vpack.c.bf16 %v1063_v60, %v1055_v0  ;;  %v813_v4 = vunpack.c.2.s8 %v5121_v56  ;;  %v822_v48 = vunpack.c.3.s8 %v5124_v53  ;;  %v816_v0 = vunpack.c.2.s8 %v5131_v3 }
 0x1b8   : > { %5542 = vst [vmem:[#allocation23_spill] sm:$0xff] %v5145_v36  ;;  %v2114_v5 = vadd.f32 %v2113_v16, %v2025_v61  ;;  %v1198_v36 = vpack.c.bf16 %v1062_v42, %v1054_v62  ;;  %v2550_v16 = vld [vmem:[%s5039_s30 + $0x80] sm:$0xff]  ;;  %v2555_v61 = vld [vmem:[%s5039_s30 + $0xa8] sm:$0xff]  ;;  %v823_v42 = vunpack.c.3.s8 %v5127_v27 }
 0x1b9   : > { %2673 = vperm.xlu0 %4225, %v2555_v61   ;;  %v2558_v62 = vld [vmem:[%s5039_s30 + $0xc0] sm:$0xff]  ;;  %v1069_v60 = vcvt.s32.f32 %v813_v4  ;;  %v1072_v61 = vcvt.s32.f32 %v816_v0 }
 0x1ba   : > { %v5147_v24 = vadd.f32 %v2202_v19, %v2114_v5  ;;  %v1200_v19 = vpack.c.bf16 %v1064_v30, %v1056_v32  ;;  %v2538_v5 = vld [vmem:[%s5039_s30 + $0x20] sm:$0xff]  ;;  %v1077_v30 = vcvt.s32.f32 %v821_v1 }
 0x1bb   : > { %v1937_v11 = vpop.f32.mrf.mxu2  ;;  %2648 = vperm.xlu1 %4226, %v2550_v16   ;;  %2588 = vperm.xlu2 %4227, %v2538_v5   ;;  %v2561_v5 = vld [vmem:[%s5039_s30 + $0xd8] sm:$0xff] }
 0x1bc   : > { %v2026_v8 = vpop.f32.mrf.mxu3  ;;  %v1938_v25 = vadd.f32 %v1937_v11, %v4936_v35  ;;  %v1070_v11 = vcvt.s32.f32 %v814_v7 }
 0x1bd   : > { %v2118_v54 = vpop.f32.mrf.mxu0 }
 0x1be   : > { %v5152_v44 = vadd.f32 %v2026_v8, %v1938_v25  ;;  %v1078_v8 = vcvt.s32.f32 %v822_v48 }
 0x1bf   : > { %v2207_v41 = vpop.f32.mrf.mxu1 }
 0x1c0   : > { %1979 = vmatmul.bf16.gmra.mxu2 %v1197_v55  ;;  %2157 = vmatmul.bf16.gmra.mxu0 %v1199_v21  ;;  %v815_v55 = vunpack.c.2.s8 %v5127_v27  ;;  %v1079_v27 = vcvt.s32.f32 %v823_v42  ;;  %v1206_v4 = vpack.c.bf16 %v1078_v8, %v1070_v11  ;;  %v2559_v11 = vld [vmem:[%s5039_s30 + $0xc8] sm:$0xff]  ;;  %v2564_v8 = vld [vmem:[%s5039_s30 + $0xf0] sm:$0xff] }
 0x1c1   : > { %2068 = vmatmul.bf16.gmra.mxu3 %v1198_v36  ;;  %2688 = vperm.xlu0 %4225, %v2558_v62   ;;  %v514_v62 = vld [vmem:[%s4620_s16 + $0x38] sm:$0xff] }
 0x1c2   : > { %2246 = vmatmul.bf16.gmra.mxu1 %v1200_v19  ;;  %v1071_v25 = vcvt.s32.f32 %v815_v55 }
 0x1c3   : > { %v1940_v35 = vpop.f32.mrf.mxu2  ;;  %2663 = vperm.xlu1 %4226, %v2553_v18  }
 0x1c4   : > { %v2029_v33 = vpop.f32.mrf.mxu3  ;;  %v1941_v39 = vadd.f32 %v1940_v35, %v4940_v57  ;;  %v824_v57 = vunpack.c.3.s8 %v5131_v3 }
 0x1c5   : > { %v5166_v56 = vpop.f32.mrf.mxu0 }
 0x1c6   : > { %v2030_v36 = vadd.f32 %v2029_v33, %v1941_v39  ;;  %v1080_v21 = vcvt.s32.f32 %v824_v57  ;;  %v1205_v33 = vpack.c.bf16 %v1077_v30, %v1069_v60  ;;  %v2539_v39 = vld [vmem:[%s5039_s30 + $0x28] sm:$0xff]  ;;  %v578_v60 = vunpack.c.0.s8 %v514_v62  ;;  %v2542_v30 = vld [vmem:[%s5039_s30 + $0x40] sm:$0xff] }
 0x1c7   : > { %v5168_v53 = vpop.f32.mrf.mxu1  ;;  %2593 = vperm.xlu2 %4227, %v2539_v39  }
 0x1c8   : > { %v2119_v32 = vadd.f32 %v2118_v54, %v2030_v36  ;;  %v2556_v54 = vld [vmem:[%s5039_s30 + $0xb0] sm:$0xff]  ;;  %v1208_v7 = vpack.c.bf16 %v1080_v21, %v1072_v61  ;;  %v3990_v61 = vld [vmem:[#allocation8 + $0x18] sm:$0xff] }
 0x1c9   : > { %2703 = vperm.xlu0 %4225, %v2561_v5   ;;  %3123 = vmatpush.bf16.msra.mxu1 %v3990_v61 }
 0x1ca   : > { %v5170_v16 = vadd.f32 %v2207_v41, %v2119_v32  ;;  %v1207_v41 = vpack.c.bf16 %v1079_v27, %v1071_v25  ;;  %v586_v32 = vunpack.c.1.s8 %v514_v62  ;;  %v4014_v27 = vld [vmem:[#allocation9 + $0x18] sm:$0xff] }
 0x1cb   : > { %v1942_v3 = vpop.f32.mrf.mxu2  ;;  %2678 = vperm.xlu1 %4226, %v2556_v54   ;;  %2986 = vmatpush.bf16.msra.mxu0 %v4014_v27  ;;  %v2565_v27 = vld [vmem:[%s5039_s30 + $0xf8] sm:$0xff] }
 0x1cc   : > { %v2031_v19 = vpop.f32.mrf.mxu3  ;;  %v1943_v35 = vadd.f32 %v1942_v3, %v4950_v28  ;;  %v513_v28 = vld [vmem:[%s4620_s16 + $0x30] sm:$0xff] }
 0x1cd   : > { %v2123_v48 = vpop.f32.mrf.mxu0  ;;  %v577_v42 = vunpack.c.0.s8 %v513_v28  ;;  %v585_v57 = vunpack.c.1.s8 %v513_v28 }
 0x1ce   : > { %v5176_v1 = vadd.f32 %v2031_v19, %v1943_v35 }
 0x1cf   : > { %v2212_v18 = vpop.f32.mrf.mxu1  ;;  %2608 = vperm.xlu2 %4227, %v2542_v30   ;;  %v833_v3 = vcvt.s32.f32 %v577_v42  ;;  %v841_v35 = vcvt.s32.f32 %v585_v57 }
 0x1d0   : > { %1984 = vmatmul.bf16.gmra.mxu2 %v1205_v33  ;;  %2162 = vmatmul.bf16.gmra.mxu0 %v1207_v41  ;;  %v834_v33 = vcvt.s32.f32 %v578_v60 }
 0x1d1   : > { %2073 = vmatmul.bf16.gmra.mxu3 %v1206_v4  ;;  %2718 = vperm.xlu0 %4225, %v2564_v8   ;;  %v842_v4 = vcvt.s32.f32 %v586_v32  ;;  %v593_v32 = vunpack.c.2.s8 %v513_v28  ;;  %v602_v8 = vunpack.c.3.s8 %v514_v62 }
 0x1d2   : > { %2251 = vmatmul.bf16.gmra.mxu1 %v1208_v7  ;;  %v1089_v7 = vpack.c.bf16 %v841_v35, %v833_v3 }
 0x1d3   : > { %v1945_v55 = vpop.f32.mrf.mxu2  ;;  %2693 = vperm.xlu1 %4226, %v2559_v11   ;;  %v594_v11 = vunpack.c.2.s8 %v514_v62 }
 0x1d4   : > { %v2034_v36 = vpop.f32.mrf.mxu3  ;;  %v1946_v0 = vadd.f32 %v1945_v55, %v4954_v47  ;;  %v1090_v55 = vpack.c.bf16 %v842_v4, %v834_v33 }
 0x1d5   : > { %v5184_v21 = vpop.f32.mrf.mxu0 }
 0x1d6   : > { %v2035_v25 = vadd.f32 %v2034_v36, %v1946_v0  ;;  %v2545_v36 = vld [vmem:[%s5039_s30 + $0x58] sm:$0xff]  ;;  %v2562_v0 = vld [vmem:[%s5039_s30 + $0xe0] sm:$0xff] }
 0x1d7   : > { %v5186_v19 = vpop.f32.mrf.mxu1  ;;  %2623 = vperm.xlu2 %4227, %v2545_v36   ;;  %v2551_v36 = vld [vmem:[%s5039_s30 + $0x88] sm:$0xff] }
 0x1d8   : > { %v2124_v47 = vadd.f32 %v2123_v48, %v2035_v25  ;;  %v2548_v25 = vld [vmem:[%s5039_s30 + $0x70] sm:$0xff] }
 0x1da   : > { %v5188_v39 = vadd.f32 %v2212_v18, %v2124_v47  ;;  %v849_v47 = vcvt.s32.f32 %v593_v32  ;;  %v522_v32 = vld [vmem:[%s4620_s16 + $0x78] sm:$0xff] }
 0x1db   : > { %v1947_v54 = vpop.f32.mrf.mxu2  ;;  %2708 = vperm.xlu1 %4226, %v2562_v0  }
 0x1dc   : > { %v2036_v5 = vpop.f32.mrf.mxu3  ;;  %v1948_v41 = vadd.f32 %v1947_v54, %v4978_v31  ;;  %v601_v31 = vunpack.c.3.s8 %v513_v28  ;;  %v850_v54 = vcvt.s32.f32 %v594_v11 }
 0x1dd   : > { %v2128_v42 = vpop.f32.mrf.mxu0 }
 0x1de   : > { %v5193_v48 = vadd.f32 %v2036_v5, %v1948_v41  ;;  %v857_v4 = vcvt.s32.f32 %v601_v31 }
 0x1df   : > { %v2217_v57 = vpop.f32.mrf.mxu1  ;;  %2638 = vperm.xlu2 %4227, %v2548_v25   ;;  %v618_v25 = vunpack.c.1.s8 %v522_v32 }
 0x1e0   : > { %2265 = vmatmul.bf16.vlgmr.msra.gmra.mxu2 %v1089_v7  ;;  %v1097_v7 = vpack.c.bf16 %v857_v4, %v849_v47  ;;  %v4013_v47 = vld [vmem:[#allocation9 + $0x10] sm:$0xff] }
 0x1e1   : > { %2354 = vmatmul.bf16.vlgmr.msra.gmra.mxu3 %v1090_v55  ;;  %2987 = vmatpush.bf16.msra.mxu0 %v4013_v47  ;;  %v626_v47 = vunpack.c.2.s8 %v522_v32 }
 0x1e3   : > { %v1950_v18 = vpop.f32.mrf.mxu2  ;;  %2723 = vperm.xlu1 %4226, %v2565_v27   ;;  %v2554_v27 = vld [vmem:[%s5039_s30 + $0xa0] sm:$0xff] }
 0x1e4   : > { %v2039_v60 = vpop.f32.mrf.mxu3  ;;  %v1951_v30 = vadd.f32 %v1950_v18, %v4870_v2  ;;  %v858_v2 = vcvt.s32.f32 %v602_v8 }
 0x1e5   : > { %v5198_v3 = vpop.f32.mrf.mxu0 }
 0x1e6   : > { %v2040_v61 = vadd.f32 %v2039_v60, %v1951_v30  ;;  %v1098_v55 = vpack.c.bf16 %v858_v2, %v850_v54  ;;  %v521_v60 = vld [vmem:[%s4620_s16 + $0x70] sm:$0xff] }
 0x1e7   : > { %v5200_v35 = vpop.f32.mrf.mxu1  ;;  %2653 = vperm.xlu2 %4227, %v2551_v36   ;;  %v609_v31 = vunpack.c.0.s8 %v521_v60  ;;  %v617_v8 = vunpack.c.1.s8 %v521_v60 }
 0x1e8   : > { %v2129_v33 = vadd.f32 %v2128_v42, %v2040_v61 }
 0x1e9   : > { %v865_v54 = vcvt.s32.f32 %v609_v31 }
 0x1ea   : > { %v5202_v28 = vadd.f32 %v2217_v57, %v2129_v33  ;;  %v3989_v33 = vld [vmem:[#allocation8 + $0x10] sm:$0xff] }
 0x1eb   : > { %v1952_v62 = vpop.f32.mrf.mxu2  ;;  %3124 = vmatpush.bf16.msra.mxu1 %v3989_v33  ;;  %v634_v33 = vunpack.c.3.s8 %v522_v32 }
 0x1ec   : > { %v2041_v5 = vpop.f32.mrf.mxu3  ;;  %v1953_v41 = vadd.f32 %v1952_v62, %v4874_v23  ;;  %v610_v23 = vunpack.c.0.s8 %v522_v32 }
 0x1ed   : > { %v2133_v18 = vpop.f32.mrf.mxu0 }
 0x1ee   : > { %v5206_v0 = vadd.f32 %v2041_v5, %v1953_v41  ;;  %v873_v5 = vcvt.s32.f32 %v617_v8  ;;  %v866_v41 = vcvt.s32.f32 %v610_v23 }
 0x1ef   : > { %v2222_v42 = vpop.f32.mrf.mxu1  ;;  %2668 = vperm.xlu2 %4227, %v2554_v27   ;;  %v2557_v27 = vld [vmem:[%s5039_s30 + $0xb8] sm:$0xff] }
 0x1f0   : > { %2270 = vmatmul.bf16.gmra.mxu2 %v1097_v7  ;;  %v874_v7 = vcvt.s32.f32 %v618_v25  ;;  %v625_v25 = vunpack.c.2.s8 %v521_v60 }
 0x1f1   : > { %2359 = vmatmul.bf16.gmra.mxu3 %v1098_v55 }
 0x1f3   : > { %v1955_v30 = vpop.f32.mrf.mxu2 }
 0x1f4   : > { %v2044_v57 = vpop.f32.mrf.mxu3  ;;  %v1956_v11 = vadd.f32 %v1955_v30, %v4882_v38 }
 0x1f5   : > { %v5212_v4 = vpop.f32.mrf.mxu0 }
 0x1f6   : > { %v2045_v61 = vadd.f32 %v2044_v57, %v1956_v11  ;;  %v1105_v57 = vpack.c.bf16 %v873_v5, %v865_v54  ;;  %v1106_v11 = vpack.c.bf16 %v874_v7, %v866_v41  ;;  %v881_v5 = vcvt.s32.f32 %v625_v25 }
 0x1f7   : > { %v5214_v2 = vpop.f32.mrf.mxu1  ;;  %2683 = vperm.xlu2 %4227, %v2557_v27  }
 0x1f8   : > { %5543 = vst [vmem:[#allocation24_spill] sm:$0xff] %v5214_v2  ;;  %v2134_v62 = vadd.f32 %v2133_v18, %v2045_v61  ;;  %v633_v61 = vunpack.c.3.s8 %v521_v60 }
 0x1fa   : > { %v5216_v38 = vadd.f32 %v2222_v42, %v2134_v62 }
 0x1fb   : > { %v1957_v55 = vpop.f32.mrf.mxu2 }
 0x1fc   : > { %v2046_v36 = vpop.f32.mrf.mxu3  ;;  %v1958_v30 = vadd.f32 %v1957_v55, %v4886_v59  ;;  %v2560_v59 = vld [vmem:[%s5039_s30 + $0xd0] sm:$0xff]  ;;  %v889_v55 = vcvt.s32.f32 %v633_v61  ;;  %v530_v61 = vld [vmem:[%s4620_s16 + $0xb8] sm:$0xff] }
 0x1fd   : > { %v2138_v2 = vpop.f32.mrf.mxu0 }
 0x1fe   : > { %v5220_v31 = vadd.f32 %v2046_v36, %v1958_v30  ;;  %v882_v36 = vcvt.s32.f32 %v626_v47  ;;  %v890_v30 = vcvt.s32.f32 %v634_v33 }
 0x1ff   : > { %v2227_v18 = vpop.f32.mrf.mxu1  ;;  %2698 = vperm.xlu2 %4227, %v2560_v59  }
 0x200   : > { %2275 = vmatmul.bf16.gmra.mxu2 %v1105_v57  ;;  %v1114_v27 = vpack.c.bf16 %v890_v30, %v882_v36  ;;  %v3988_v36 = vld [vmem:[#allocation8 + $0x8] sm:$0xff] }
 0x201   : > { %2364 = vmatmul.bf16.gmra.mxu3 %v1106_v11  ;;  %v1113_v11 = vpack.c.bf16 %v889_v55, %v881_v5  ;;  %v4012_v55 = vld [vmem:[#allocation9 + $0x8] sm:$0xff]  ;;  %3125 = vmatpush.bf16.msra.mxu1 %v3988_v36 }
 0x202   : > { %2988 = vmatpush.bf16.msra.mxu0 %v4012_v55  ;;  %v666_v55 = vunpack.c.3.s8 %v530_v61 }
 0x203   : > { %v1960_v8 = vpop.f32.mrf.mxu2 }
 0x204   : > { %v2049_v23 = vpop.f32.mrf.mxu3  ;;  %v1961_v42 = vadd.f32 %v1960_v8, %v4896_v10  ;;  %v2563_v8 = vld [vmem:[%s5039_s30 + $0xe8] sm:$0xff]  ;;  %s4369_s30 = scalar_lea.hbm %s5513_s7, 256 }
 0x205   : > { %v5224_v62 = vpop.f32.mrf.mxu0  ;;  %p4371_p13 = scmp.lt.s32.totalorder %s4369_s30, %s4365_s22 }
 0x206   : > { %v2050_v54 = vadd.f32 %v2049_v23, %v1961_v42  ;;  %5544 = vst [vmem:[#allocation25_spill] sm:$0xff] %v5224_v62 }
 0x207   : > { %v5226_v41 = vpop.f32.mrf.mxu1  ;;  %2713 = vperm.xlu2 %4227, %v2563_v8   ;;  %p4372_p0 = por %p4371_p13, %p4370_p12 }
 0x208   : > { %5545 = vst [vmem:[#allocation26_spill] sm:$0xff] %v5226_v41  ;;  %v2139_v7 = vadd.f32 %v2138_v2, %v2050_v54  ;;  %v529_v2 = vld [vmem:[%s4620_s16 + $0xb0] sm:$0xff] }
 0x209   : > { %v649_v54 = vunpack.c.1.s8 %v529_v2  ;;  %p4373_p3 = pnand %p4372_p0, %p4368_p10 }
 0x20a   : > { %v5228_v57 = vadd.f32 %v2227_v18, %v2139_v7  ;;  %v641_v18 = vunpack.c.0.s8 %v529_v2  ;;  %v642_v7 = vunpack.c.0.s8 %v530_v61 }
 0x20b   : > { %v1962_v10 = vpop.f32.mrf.mxu2 }
 0x20c   : > { %5546 = vst [vmem:[#allocation27_spill] sm:$0xff] %v5228_v57  ;;  %v2051_v60 = vpop.f32.mrf.mxu3  ;;  %v1963_v32 = vadd.f32 %v1962_v10, %v4900_v34  ;;  %v650_v34 = vunpack.c.1.s8 %v530_v61  ;;  %v897_v10 = vcvt.s32.f32 %v641_v18 }
 0x20d   : > { %v2143_v25 = vpop.f32.mrf.mxu0 }
 0x20e   : > { %v5232_v23 = vadd.f32 %v2051_v60, %v1963_v32  ;;  %v906_v8 = vcvt.s32.f32 %v650_v34 }
 0x20f   : > { %v2232_v42 = vpop.f32.mrf.mxu1 }
 0x210   : > { %2280 = vmatmul.bf16.gmra.mxu2 %v1113_v11  ;;  %v905_v11 = vcvt.s32.f32 %v649_v54 }
 0x211   : > { %2369 = vmatmul.bf16.gmra.mxu3 %v1114_v27  ;;  %v898_v27 = vcvt.s32.f32 %v642_v7  ;;  %v657_v7 = vunpack.c.2.s8 %v529_v2 }
 0x213   : > { %v1965_v47 = vpop.f32.mrf.mxu2 }
 0x214   : > { %v2054_v33 = vpop.f32.mrf.mxu3  ;;  %v1966_v59 = vadd.f32 %v1965_v47, %v4908_v50 }
 0x215   : > { %v5237_v30 = vpop.f32.mrf.mxu0 }
 0x216   : > { %v2055_v5 = vadd.f32 %v2054_v33, %v1966_v59  ;;  %5547 = vst [vmem:[#allocation28_spill] sm:$0xff] %v5237_v30  ;;  %v1121_v33 = vpack.c.bf16 %v905_v11, %v897_v10  ;;  %v1122_v59 = vpack.c.bf16 %v906_v8, %v898_v27  ;;  %v922_v8 = vcvt.s32.f32 %v666_v55 }
 0x217   : > { %v5239_v60 = vpop.f32.mrf.mxu1 }
 0x218   : > { %v2144_v32 = vadd.f32 %v2143_v25, %v2055_v5  ;;  %v665_v5 = vunpack.c.3.s8 %v529_v2 }
 0x21a   : > { %v5241_v41 = vadd.f32 %v2232_v42, %v2144_v32  ;;  %v658_v42 = vunpack.c.2.s8 %v530_v61  ;;  %v921_v11 = vcvt.s32.f32 %v665_v5 }
 0x21b   : > { %v1967_v50 = vpop.f32.mrf.mxu2 }
 0x21c   : > { %v2056_v47 = vpop.f32.mrf.mxu3  ;;  %v1968_v57 = vadd.f32 %v1967_v50, %v4912_v13  ;;  %v913_v13 = vcvt.s32.f32 %v657_v7  ;;  %v914_v27 = vcvt.s32.f32 %v658_v42  ;;  %v537_v7 = vld [vmem:[%s4620_s16 + $0xf0] sm:$0xff] }
 0x21d   : > { %v2148_v30 = vpop.f32.mrf.mxu0  ;;  %v673_v42 = vunpack.c.0.s8 %v537_v7  ;;  %v681_v55 = vunpack.c.1.s8 %v537_v7 }
 0x21e   : > { %v5244_v62 = vadd.f32 %v2056_v47, %v1968_v57  ;;  %v1129_v2 = vpack.c.bf16 %v921_v11, %v913_v13  ;;  %v1130_v61 = vpack.c.bf16 %v922_v8, %v914_v27  ;;  %v3987_v13 = vld [vmem:[#allocation8] sm:$0xff] }
 0x21f   : > { %v2237_v18 = vpop.f32.mrf.mxu1  ;;  %v929_v27 = vcvt.s32.f32 %v673_v42  ;;  %3126 = vmatpush.bf16.msra.mxu1 %v3987_v13 }
 0x220   : > { %2285 = vmatmul.bf16.gmra.mxu2 %v1121_v33 }
 0x221   : > { %2374 = vmatmul.bf16.gmra.mxu3 %v1122_v59 }
 0x223   : > { %v1970_v25 = vpop.f32.mrf.mxu2 }
 0x224   : > { %v2059_v54 = vpop.f32.mrf.mxu3  ;;  %v1971_v34 = vadd.f32 %v1970_v25, %v4922_v29 }
 0x225   : > { %v5247_v32 = vpop.f32.mrf.mxu0 }
 0x226   : > { %v2060_v36 = vadd.f32 %v2059_v54, %v1971_v34  ;;  %5548 = vst [vmem:[#allocation29_spill] sm:$0xff] %v5247_v32 }
 0x227   : > { %v5249_v10 = vpop.f32.mrf.mxu1 }
 0x228   : > { %5549 = vst [vmem:[#allocation30_spill] sm:$0xff] %v5249_v10  ;;  %v2149_v57 = vadd.f32 %v2148_v30, %v2060_v36  ;;  %v538_v30 = vld [vmem:[%s4620_s16 + $0xf8] sm:$0xff] }
 0x229   : > { %v674_v36 = vunpack.c.0.s8 %v538_v30  ;;  %v698_v13 = vunpack.c.3.s8 %v538_v30 }
 0x22a   : > { %v5251_v50 = vadd.f32 %v2237_v18, %v2149_v57  ;;  %v682_v57 = vunpack.c.1.s8 %v538_v30 }
 0x22b   : > { %v1972_v47 = vpop.f32.mrf.mxu2 }
 0x22c   : > { %5550 = vst [vmem:[#allocation31_spill] sm:$0xff] %v5251_v50  ;;  %v2061_v33 = vpop.f32.mrf.mxu3  ;;  %v1973_v29 = vadd.f32 %v1972_v47, %v4926_v58  ;;  %v4011_v58 = vld [vmem:[#allocation9] sm:$0xff]  ;;  %v937_v47 = vcvt.s32.f32 %v681_v55 }
 0x22d   : > { %v2153_v25 = vpop.f32.mrf.mxu0  ;;  %2989 = vmatpush.bf16.msra.mxu0 %v4011_v58  ;;  %v690_v58 = vunpack.c.2.s8 %v538_v30 }
 0x22e   : > { %v5254_v59 = vadd.f32 %v2061_v33, %v1973_v29  ;;  %v930_v33 = vcvt.s32.f32 %v674_v36  ;;  %v938_v29 = vcvt.s32.f32 %v682_v57  ;;  %v689_v36 = vunpack.c.2.s8 %v537_v7 }
 0x22f   : > { %v2242_v54 = vpop.f32.mrf.mxu1 }
 0x230   : > { %2290 = vmatmul.bf16.gmra.mxu2 %v1129_v2 }
 0x231   : > { %2379 = vmatmul.bf16.gmra.mxu3 %v1130_v61 }
 0x233   : > { %v1975_v34 = vpop.f32.mrf.mxu2 }
 0x234   : > { %v2064_v5 = vpop.f32.mrf.mxu3  ;;  %v1976_v18 = vadd.f32 %v1975_v34, %v4934_v14 }
 0x235   : > { %v5259_v11 = vpop.f32.mrf.mxu0 }
 0x236   : > { %v2065_v10 = vadd.f32 %v2064_v5, %v1976_v18  ;;  %v1137_v5 = vpack.c.bf16 %v937_v47, %v929_v27  ;;  %v1138_v18 = vpack.c.bf16 %v938_v29, %v930_v33  ;;  %v954_v47 = vcvt.s32.f32 %v698_v13 }
 0x237   : > { %v5261_v2 = vpop.f32.mrf.mxu1 }
 0x238   : > { %v2154_v8 = vadd.f32 %v2153_v25, %v2065_v10  ;;  %5551 = vst [vmem:[#allocation32_spill] sm:$0xff] %v5261_v2  ;;  %v945_v2 = vcvt.s32.f32 %v689_v36 }
 0x23a   : > { %v5263_v61 = vadd.f32 %v2242_v54, %v2154_v8  ;;  %v697_v54 = vunpack.c.3.s8 %v537_v7 }
 0x23b   : > { %v1977_v14 = vpop.f32.mrf.mxu2 }
 0x23c   : > { %v2066_v34 = vpop.f32.mrf.mxu3  ;;  %v1978_v50 = vadd.f32 %v1977_v14, %v4938_v46  ;;  %v953_v27 = vcvt.s32.f32 %v697_v54  ;;  %v3995_v14 = vld [vmem:[%s4630_s14] sm:$0xff] }
 0x23d   : > { %v2158_v10 = vpop.f32.mrf.mxu0  ;;  %2990 = vmatmul.bf16.vlgmr.msra.gmra.mxu0 %v3995_v14 }
 0x23e   : > { %v5266_v32 = vadd.f32 %v2066_v34, %v1978_v50  ;;  %v946_v50 = vcvt.s32.f32 %v690_v58  ;;  %v1145_v7 = vpack.c.bf16 %v953_v27, %v945_v2 }
 0x23f   : > { %v2247_v25 = vpop.f32.mrf.mxu1 }
 0x240   : > { %2295 = vmatmul.bf16.gmra.mxu2 %v1137_v5 }
 0x241   : > { %2384 = vmatmul.bf16.gmra.mxu3 %v1138_v18  ;;  %v1146_v18 = vpack.c.bf16 %v954_v47, %v946_v50 }
 0x243   : > { %v1980_v42 = vpop.f32.mrf.mxu2 }
 0x244   : > { %v2069_v55 = vpop.f32.mrf.mxu3  ;;  %v1981_v57 = vadd.f32 %v1980_v42, %v4948_v63  ;;  %v545_v42 = vld [vmem:[%s4620_s16 + $0x130] sm:$0xff] }
 0x245   : > { %v5271_v29 = vpop.f32.mrf.mxu0  ;;  %v713_v58 = vunpack.c.1.s8 %v545_v42 }
 0x246   : > { %v2070_v8 = vadd.f32 %v2069_v55, %v1981_v57  ;;  %v546_v55 = vld [vmem:[%s4620_s16 + $0x138] sm:$0xff]  ;;  %v705_v57 = vunpack.c.0.s8 %v545_v42 }
 0x247   : > { %v5275_v30 = vpop.f32.mrf.mxu1  ;;  %v706_v13 = vunpack.c.0.s8 %v546_v55  ;;  %v969_v47 = vcvt.s32.f32 %v713_v58  ;;  %v729_v58 = vunpack.c.3.s8 %v545_v42 }
 0x248   : > { %v2159_v46 = vadd.f32 %v2158_v10, %v2070_v8  ;;  %5553 = vst [vmem:[#allocation34_spill] sm:$0xff] %v5275_v30  ;;  %v961_v27 = vcvt.s32.f32 %v705_v57 }
 0x249   : > { %v962_v14 = vcvt.s32.f32 %v706_v13  ;;  %v722_v13 = vunpack.c.2.s8 %v546_v55 }
 0x24a   : > { %v5269_v33 = vadd.f32 %v2247_v25, %v2159_v46 }
 0x24b   : > { %v1982_v34 = vpop.f32.mrf.mxu2 }
 0x24c   : > { %5552 = vst [vmem:[#allocation33_spill] sm:$0xff] %v5269_v33  ;;  %v2071_v5 = vpop.f32.mrf.mxu3  ;;  %v1983_v63 = vadd.f32 %v1982_v34, %v4952_v37  ;;  %v714_v37 = vunpack.c.1.s8 %v546_v55  ;;  %v1153_v33 = vpack.c.bf16 %v969_v47, %v961_v27  ;;  %v3997_v47 = vld [vmem:[%s4630_s14 + $0x10] sm:$0xff] }
 0x24d   : > { %v2163_v2 = vpop.f32.mrf.mxu0 }
 0x24e   : > { %v5277_v10 = vadd.f32 %v2071_v5, %v1983_v63  ;;  %v970_v34 = vcvt.s32.f32 %v714_v37  ;;  %v3996_v63 = vld [vmem:[%s4630_s14 + $0x8] sm:$0xff]  ;;  %v730_v37 = vunpack.c.3.s8 %v546_v55 }
 0x24f   : > { %v2252_v46 = vpop.f32.mrf.mxu1  ;;  %2995 = vmatmul.bf16.gmra.mxu0 %v3996_v63 }
 0x250   : > { %2300 = vmatmul.bf16.gmra.mxu2 %v1145_v7  ;;  %v986_v27 = vcvt.s32.f32 %v730_v37 }
 0x251   : > { %2389 = vmatmul.bf16.gmra.mxu3 %v1146_v18 }
 0x253   : > { %v1985_v25 = vpop.f32.mrf.mxu2 }
 0x254   : > { %v2074_v36 = vpop.f32.mrf.mxu3  ;;  %v1986_v54 = vadd.f32 %v1985_v25, %v4969_v49  ;;  %v1154_v49 = vpack.c.bf16 %v970_v34, %v962_v14 }
 0x256   : > { %v2075_v8 = vadd.f32 %v2074_v36, %v1986_v54  ;;  %v721_v54 = vunpack.c.2.s8 %v545_v42 }
 0x258   : > { %v2164_v50 = vadd.f32 %v2163_v2, %v2075_v8  ;;  %v2569_v2 = vpop.permute.xlu0 %2568  ;;  %v977_v8 = vcvt.s32.f32 %v721_v54 }
 0x25a   : > { %v5282_v5 = vadd.f32 %v2252_v46, %v2164_v50  ;;  %v985_v50 = vcvt.s32.f32 %v729_v58 }
 0x25b   : > { %v1987_v7 = vpop.f32.mrf.mxu2 }
 0x25c   : > { %v2076_v18 = vpop.f32.mrf.mxu3  ;;  %v1988_v30 = vadd.f32 %v1987_v7, %v4980_v12  ;;  %v978_v12 = vcvt.s32.f32 %v722_v13  ;;  %v1161_v63 = vpack.c.bf16 %v985_v50, %v977_v8  ;;  %v2579_v8 = vpop.permute.xlu1 %2578 }
 0x25e   : > { %v5286_v25 = vadd.f32 %v2076_v18, %v1988_v30  ;;  %v1162_v7 = vpack.c.bf16 %v986_v27, %v978_v12 }
 0x25f   : > { %3000 = vmatmul.bf16.gmra.mxu0 %v3997_v47 }
 0x260   : > { %2305 = vmatmul.bf16.gmra.mxu2 %v1153_v33  ;;  %v2574_v55 = vpop.permute.xlu0 %2573 }
 0x261   : > { %2394 = vmatmul.bf16.gmra.mxu3 %v1154_v49 }
 0x263   : > { %v2266_v36 = vpop.f32.mrf.mxu2 }
 0x264   : > { %v2355_v57 = vpop.f32.mrf.mxu3  ;;  %v2267_v46 = vadd.f32 %v2266_v36, %v4997_v6  ;;  %v553_v6 = vld [vmem:[%s4620_s16 + $0x170] sm:$0xff]  ;;  %v554_v36 = vld [vmem:[%s4620_s16 + $0x178] sm:$0xff] }
 0x265   : > { %v737_v37 = vunpack.c.0.s8 %v553_v6 }
 0x266   : > { %v2356_v33 = vadd.f32 %v2355_v57, %v2267_v46  ;;  %v745_v57 = vunpack.c.1.s8 %v553_v6  ;;  %v738_v46 = vunpack.c.0.s8 %v554_v36 }
 0x267   : > { %v993_v50 = vcvt.s32.f32 %v737_v37 }
 0x268   : > { %v2726_v18 = vmul.f32 %v2569_v2, %v2356_v33  ;;  %v1001_v27 = vcvt.s32.f32 %v745_v57  ;;  %v994_v2 = vcvt.s32.f32 %v738_v46  ;;  %v753_v57 = vunpack.c.2.s8 %v553_v6 }
 0x269   : > { %v761_v46 = vunpack.c.3.s8 %v553_v6 }
 0x26b   : > { %v2268_v30 = vpop.f32.mrf.mxu2 }
 0x26c   : > { %v2357_v14 = vpop.f32.mrf.mxu3  ;;  %v2269_v34 = vadd.f32 %v2268_v30, %v5006_v9  ;;  %v746_v9 = vunpack.c.1.s8 %v554_v36  ;;  %v3998_v30 = vld [vmem:[%s4630_s14 + $0x18] sm:$0xff] }
 0x26e   : > { %v2358_v42 = vadd.f32 %v2357_v14, %v2269_v34  ;;  %v1002_v47 = vcvt.s32.f32 %v746_v9  ;;  %v754_v9 = vunpack.c.2.s8 %v554_v36 }
 0x26f   : > { %3005 = vmatmul.bf16.gmra.mxu0 %v3998_v30 }
 0x270   : > { %v2727_v49 = vmul.f32 %v2574_v55, %v2358_v42  ;;  %2310 = vmatmul.bf16.gmra.mxu2 %v1161_v63  ;;  %v1170_v42 = vpack.c.bf16 %v1002_v47, %v994_v2  ;;  %v1010_v2 = vcvt.s32.f32 %v754_v9  ;;  %v3999_v47 = vld [vmem:[%s4630_s14 + $0x20] sm:$0xff] }
 0x271   : > { %2399 = vmatmul.bf16.gmra.mxu3 %v1162_v7  ;;  %v1169_v7 = vpack.c.bf16 %v1001_v27, %v993_v50  ;;  %v1017_v27 = vcvt.s32.f32 %v761_v46 }
 0x272   : > { %v2758_v54 = vpack.c.bf16 %v2727_v49, %v2726_v18  ;;  %v2584_v18 = vpop.permute.xlu1 %2583 }
 0x273   : > { %v2271_v58 = vpop.f32.mrf.mxu2 }
 0x274   : > { %v2360_v13 = vpop.f32.mrf.mxu3  ;;  %3127 = vmatmul.bf16.vlgmr.msra.gmra.mxu1 %v2758_v54  ;;  %v2272_v12 = vadd.f32 %v2271_v58, %v5028_v45 }
 0x276   : > { %v2361_v34 = vadd.f32 %v2360_v13, %v2272_v12  ;;  %v762_v13 = vunpack.c.3.s8 %v554_v36  ;;  %v2589_v12 = vpop.permute.xlu2 %2588 }
 0x278   : > { %v2728_v49 = vmul.f32 %v2579_v8, %v2361_v34  ;;  %v1018_v8 = vcvt.s32.f32 %v762_v13 }
 0x27b   : > { %v2273_v14 = vpop.f32.mrf.mxu2 }
 0x27c   : > { %v2362_v33 = vpop.f32.mrf.mxu3  ;;  %v2274_v63 = vadd.f32 %v2273_v14, %v5041_v52  ;;  %v1009_v52 = vcvt.s32.f32 %v753_v57 }
 0x27e   : > { %v2363_v55 = vadd.f32 %v2362_v33, %v2274_v63  ;;  %v1177_v63 = vpack.c.bf16 %v1017_v27, %v1009_v52  ;;  %v2594_v36 = vpop.permute.xlu2 %2593 }
 0x27f   : > { %3010 = vmatmul.bf16.gmra.mxu0 %v3999_v47 }
 0x280   : > { %v2729_v54 = vmul.f32 %v2584_v18, %v2363_v55  ;;  %2315 = vmatmul.bf16.gmra.mxu2 %v1169_v7  ;;  %v1178_v7 = vpack.c.bf16 %v1018_v8, %v1010_v2  ;;  %v562_v18 = vld [vmem:[%s4620_s16 + $0x1b8] sm:$0xff] }
 0x281   : > { %2404 = vmatmul.bf16.gmra.mxu3 %v1170_v42  ;;  %v770_v57 = vunpack.c.0.s8 %v562_v18 }
 0x282   : > { %v2759_v45 = vpack.c.bf16 %v2729_v54, %v2728_v49 }
 0x283   : > { %v2276_v58 = vpop.f32.mrf.mxu2  ;;  %v1026_v52 = vcvt.s32.f32 %v770_v57 }
 0x284   : > { %v2365_v37 = vpop.f32.mrf.mxu3  ;;  %3132 = vmatmul.bf16.gmra.mxu1 %v2759_v45  ;;  %v2277_v50 = vadd.f32 %v2276_v58, %v5056_v20  ;;  %v561_v20 = vld [vmem:[%s4620_s16 + $0x1b0] sm:$0xff] }
 0x285   : > { %v769_v58 = vunpack.c.0.s8 %v561_v20 }
 0x286   : > { %v2366_v33 = vadd.f32 %v2365_v37, %v2277_v50  ;;  %v777_v37 = vunpack.c.1.s8 %v561_v20  ;;  %v4000_v50 = vld [vmem:[%s4630_s14 + $0x28] sm:$0xff] }
 0x287   : > { %v1025_v46 = vcvt.s32.f32 %v769_v58 }
 0x288   : > { %v2730_v42 = vmul.f32 %v2589_v12, %v2366_v33  ;;  %v1033_v13 = vcvt.s32.f32 %v777_v37 }
 0x28b   : > { %v2278_v30 = vpop.f32.mrf.mxu2 }
 0x28c   : > { %v2367_v14 = vpop.f32.mrf.mxu3  ;;  %v2279_v34 = vadd.f32 %v2278_v30, %v5066_v26  ;;  %v778_v26 = vunpack.c.1.s8 %v562_v18  ;;  %v1185_v30 = vpack.c.bf16 %v1033_v13, %v1025_v46  ;;  %v4001_v13 = vld [vmem:[%s4630_s14 + $0x30] sm:$0xff] }
 0x28e   : > { %v2368_v6 = vadd.f32 %v2367_v14, %v2279_v34  ;;  %v1034_v12 = vcvt.s32.f32 %v778_v26  ;;  %v2599_v34 = vpop.permute.xlu0 %2598 }
 0x28f   : > { %3015 = vmatmul.bf16.gmra.mxu0 %v4000_v50 }
 0x290   : > { %v2731_v55 = vmul.f32 %v2594_v36, %v2368_v6  ;;  %2320 = vmatmul.bf16.gmra.mxu2 %v1177_v63  ;;  %v1186_v14 = vpack.c.bf16 %v1034_v12, %v1026_v52  ;;  %v2604_v63 = vpop.permute.xlu1 %2603 }
 0x291   : > { %2409 = vmatmul.bf16.gmra.mxu3 %v1178_v7 }
 0x292   : > { %v2760_v49 = vpack.c.bf16 %v2731_v55, %v2730_v42  ;;  %v785_v55 = vunpack.c.2.s8 %v561_v20 }
 0x293   : > { %v2281_v54 = vpop.f32.mrf.mxu2 }
 0x294   : > { %v2370_v45 = vpop.f32.mrf.mxu3  ;;  %3137 = vmatmul.bf16.gmra.mxu1 %v2760_v49  ;;  %v2282_v9 = vadd.f32 %v2281_v54, %v5085_v51  ;;  %v793_v49 = vunpack.c.3.s8 %v561_v20  ;;  %v786_v54 = vunpack.c.2.s8 %v562_v18  ;;  %v1041_v58 = vcvt.s32.f32 %v785_v55 }
 0x296   : > { %v2371_v8 = vadd.f32 %v2370_v45, %v2282_v9  ;;  %v794_v45 = vunpack.c.3.s8 %v562_v18  ;;  %v1049_v57 = vcvt.s32.f32 %v793_v49  ;;  %v1042_v26 = vcvt.s32.f32 %v786_v54 }
 0x298   : > { %v2732_v7 = vmul.f32 %v2599_v34, %v2371_v8  ;;  %v1050_v46 = vcvt.s32.f32 %v794_v45 }
 0x29a   : > { %v1194_v18 = vpack.c.bf16 %v1050_v46, %v1042_v26 }
 0x29b   : > { %v2283_v27 = vpop.f32.mrf.mxu2 }
 0x29c   : > { %v2372_v2 = vpop.f32.mrf.mxu3  ;;  %v2284_v47 = vadd.f32 %v2283_v27, %v5093_v17  ;;  %v2111_v17 = vadd.f32 %v5109_v40, %v5118_v22  ;;  %v1193_v27 = vpack.c.bf16 %v1049_v57, %v1041_v58  ;;  %v2614_v40 = vpop.permute.xlu0 %2613 }
 0x29d   : > { %v2609_v22 = vpop.permute.xlu2 %2608 }
 0x29e   : > { %v2373_v33 = vadd.f32 %v2372_v2, %v2284_v47  ;;  %v2200_v9 = vadd.f32 %v5111_v43, %v2111_v17  ;;  %v569_v47 = vld [vmem:[%s4620_s16 + $0x1f0] sm:$0xff]  ;;  %v5555_v17 = vld [vmem:[#allocation23_spill] sm:$0xff] }
 0x29f   : > { %3020 = vmatmul.bf16.gmra.mxu0 %v4001_v13  ;;  %v801_v34 = vunpack.c.0.s8 %v569_v47 }
 0x2a0   : > { %v2733_v6 = vmul.f32 %v2604_v63, %v2373_v33  ;;  %2325 = vmatmul.bf16.gmra.mxu2 %v1185_v30  ;;  %v570_v30 = vld [vmem:[%s4620_s16 + $0x1f8] sm:$0xff]  ;;  %v809_v63 = vunpack.c.1.s8 %v569_v47 }
 0x2a1   : > { %2414 = vmatmul.bf16.gmra.mxu3 %v1186_v14 }
 0x2a2   : > { %v2761_v51 = vpack.c.bf16 %v2733_v6, %v2732_v7  ;;  %v802_v7 = vunpack.c.0.s8 %v570_v30  ;;  %v810_v6 = vunpack.c.1.s8 %v570_v30  ;;  %v1065_v49 = vcvt.s32.f32 %v809_v63 }
 0x2a3   : > { %v2286_v36 = vpop.f32.mrf.mxu2 }
 0x2a4   : > { %v2375_v42 = vpop.f32.mrf.mxu3  ;;  %3142 = vmatmul.bf16.gmra.mxu1 %v2761_v51  ;;  %v2287_v37 = vadd.f32 %v2286_v36, %v5113_v15  ;;  %v5554_v51 = vld [vmem:[#allocation22_spill] sm:$0xff]  ;;  %v1058_v54 = vcvt.s32.f32 %v802_v7  ;;  %v1066_v45 = vcvt.s32.f32 %v810_v6 }
 0x2a5   : > { %v2116_v36 = vadd.f32 %v5554_v51, %v5152_v44 }
 0x2a6   : > { %v2376_v50 = vadd.f32 %v2375_v42, %v2287_v37  ;;  %v1057_v42 = vcvt.s32.f32 %v801_v34  ;;  %v4002_v37 = vld [vmem:[%s4630_s14 + $0x38] sm:$0xff] }
 0x2a7   : > { %v2205_v58 = vadd.f32 %v5555_v17, %v2116_v36 }
 0x2a8   : > { %v2734_v8 = vmul.f32 %v2609_v22, %v2376_v50  ;;  %v1201_v13 = vpack.c.bf16 %v1065_v49, %v1057_v42  ;;  %v2619_v50 = vpop.permute.xlu1 %2618  ;;  %v817_v22 = vunpack.c.2.s8 %v569_v47  ;;  %v4003_v42 = vld [vmem:[%s4630_s14 + $0x40] sm:$0xff] }
 0x2ab   : > { %v2288_v52 = vpop.f32.mrf.mxu2 }
 0x2ac   : > { %v2377_v12 = vpop.f32.mrf.mxu3  ;;  %v2289_v20 = vadd.f32 %v2288_v52, %v2200_v9  ;;  %v1202_v52 = vpack.c.bf16 %v1066_v45, %v1058_v54 }
 0x2ae   : > { %v2378_v2 = vadd.f32 %v2377_v12, %v2289_v20  ;;  %v2624_v20 = vpop.permute.xlu2 %2623 }
 0x2af   : > { %3025 = vmatmul.bf16.gmra.mxu0 %v4002_v37 }
 0x2b0   : > { %v2735_v15 = vmul.f32 %v2614_v40, %v2378_v2  ;;  %2330 = vmatmul.bf16.gmra.mxu2 %v1193_v27 }
 0x2b1   : > { %2419 = vmatmul.bf16.gmra.mxu3 %v1194_v18 }
 0x2b2   : > { %v2762_v43 = vpack.c.bf16 %v2735_v15, %v2734_v8  ;;  %v825_v8 = vunpack.c.3.s8 %v569_v47  ;;  %v818_v15 = vunpack.c.2.s8 %v570_v30 }
 0x2b3   : > { %v2291_v14 = vpop.f32.mrf.mxu2 }
 0x2b4   : > { %v2380_v33 = vpop.f32.mrf.mxu3  ;;  %3147 = vmatmul.bf16.gmra.mxu1 %v2762_v43  ;;  %v2292_v55 = vadd.f32 %v2291_v14, %v5147_v24  ;;  %v5316_v24 = vpop.f32.mrf.mxu0  ;;  %v826_v43 = vunpack.c.3.s8 %v570_v30  ;;  %v2121_v14 = vadd.f32 %v5166_v56, %v5176_v1  ;;  %v1081_v63 = vcvt.s32.f32 %v825_v8 }
 0x2b5   : > { %v1074_v7 = vcvt.s32.f32 %v818_v15  ;;  %v2629_v56 = vpop.permute.xlu0 %2628  ;;  %v2634_v1 = vpop.permute.xlu1 %2633 }
 0x2b6   : > { %v2381_v46 = vadd.f32 %v2380_v33, %v2292_v55  ;;  %v1073_v33 = vcvt.s32.f32 %v817_v22  ;;  %v1082_v6 = vcvt.s32.f32 %v826_v43  ;;  %v2210_v36 = vadd.f32 %v5168_v53, %v2121_v14  ;;  %v5337_v14 = vpop.f32.mrf.mxu1 }
 0x2b8   : > { %v2736_v44 = vmul.f32 %v2619_v50, %v2381_v46  ;;  %v1209_v45 = vpack.c.bf16 %v1081_v63, %v1073_v33  ;;  %v1210_v30 = vpack.c.bf16 %v1082_v6, %v1074_v7  ;;  %v2126_v46 = vadd.f32 %v5184_v21, %v5193_v48  ;;  %v4005_v63 = vld [vmem:[%s4630_s14 + $0x50] sm:$0xff] }
 0x2bb   : > { %v2293_v57 = vpop.f32.mrf.mxu2 }
 0x2bc   : > { %v2382_v26 = vpop.f32.mrf.mxu3  ;;  %v2294_v9 = vadd.f32 %v2293_v57, %v2205_v58  ;;  %v5321_v51 = vpop.f32.mrf.mxu0 }
 0x2be   : > { %v2383_v12 = vadd.f32 %v2382_v26, %v2294_v9 }
 0x2bf   : > { %3030 = vmatmul.bf16.gmra.mxu0 %v4003_v42 }
 0x2c0   : > { %v2737_v27 = vmul.f32 %v2624_v20, %v2383_v12  ;;  %2335 = vmatmul.bf16.gmra.mxu2 %v1201_v13  ;;  %v4004_v12 = vld [vmem:[%s4630_s14 + $0x48] sm:$0xff] }
 0x2c1   : > { %2424 = vmatmul.bf16.gmra.mxu3 %v1202_v52  ;;  %v2215_v52 = vadd.f32 %v5186_v19, %v2126_v46  ;;  %v2131_v19 = vadd.f32 %v5198_v3, %v5206_v0 }
 0x2c2   : > { %v2763_v18 = vpack.c.bf16 %v2737_v27, %v2736_v44 }
 0x2c3   : > { %v2296_v2 = vpop.f32.mrf.mxu2 }
 0x2c4   : > { %v2385_v40 = vpop.f32.mrf.mxu3  ;;  %3152 = vmatmul.bf16.gmra.mxu1 %v2763_v18  ;;  %v2297_v34 = vadd.f32 %v2296_v2, %v5170_v16  ;;  %v2993_v37 = vpop.f32.mrf.mxu0 }
 0x2c5   : > { %v2644_v2 = vpop.permute.xlu0 %2643 }
 0x2c6   : > { %v2386_v54 = vadd.f32 %v2385_v40, %v2297_v34  ;;  %v2639_v40 = vpop.permute.xlu2 %2638  ;;  %v2220_v34 = vadd.f32 %v5200_v35, %v2131_v19  ;;  %v2136_v35 = vadd.f32 %v5212_v4, %v5220_v31  ;;  %v5557_v19 = vld [vmem:[#allocation25_spill] sm:$0xff] }
 0x2c8   : > { %v2738_v16 = vmul.f32 %v2629_v56, %v2386_v54 }
 0x2cb   : > { %v2298_v55 = vpop.f32.mrf.mxu2 }
 0x2cc   : > { %v2387_v49 = vpop.f32.mrf.mxu3  ;;  %v2299_v47 = vadd.f32 %v2298_v55, %v2210_v36  ;;  %v5328_v13 = vpop.f32.mrf.mxu0 }
 0x2ce   : > { %v2388_v17 = vadd.f32 %v2387_v49, %v2299_v47  ;;  %v2649_v49 = vpop.permute.xlu1 %2648  ;;  %v2654_v54 = vpop.permute.xlu2 %2653 }
 0x2cf   : > { %3035 = vmatmul.bf16.gmra.mxu0 %v4004_v12 }
 0x2d0   : > { %v2739_v58 = vmul.f32 %v2634_v1, %v2388_v17  ;;  %2340 = vmatmul.bf16.gmra.mxu2 %v1209_v45  ;;  %v5351_v1 = vld [vmem:[%s5511_s5] ss:$0 sm:$0xff] }
 0x2d1   : > { %2429 = vmatmul.bf16.gmra.mxu3 %v1210_v30 }
 0x2d2   : > { %v2764_v57 = vpack.c.bf16 %v2739_v58, %v2738_v16 }
 0x2d3   : > { %v2301_v26 = vpop.f32.mrf.mxu2 }
 0x2d4   : > { %v2390_v53 = vpop.f32.mrf.mxu3  ;;  %3157 = vmatmul.bf16.gmra.mxu1 %v2764_v57  ;;  %v2302_v9 = vadd.f32 %v2301_v26, %v5188_v39  ;;  %v5332_v15 = vpop.f32.mrf.mxu0  ;;  %v5556_v26 = vld [vmem:[#allocation24_spill] sm:$0xff] }
 0x2d6   : > { %v2391_v44 = vadd.f32 %v2390_v53, %v2302_v9  ;;  %v2225_v53 = vadd.f32 %v5556_v26, %v2136_v35 }
 0x2d8   : > { %v2740_v22 = vmul.f32 %v2639_v40, %v2391_v44 }
 0x2db   : > { %v2303_v50 = vpop.f32.mrf.mxu2 }
 0x2dc   : > { %v2392_v20 = vpop.f32.mrf.mxu3  ;;  %v2304_v27 = vadd.f32 %v2303_v50, %v2215_v52  ;;  %v5339_v33 = vpop.f32.mrf.mxu0  ;;  %v4006_v52 = vld [vmem:[%s4630_s14 + $0x58] sm:$0xff] }
 0x2de   : > { %v2393_v18 = vadd.f32 %v2392_v20, %v2304_v27  ;;  %v2659_v27 = vpop.permute.xlu0 %2658 }
 0x2df   : > { %3040 = vmatmul.bf16.gmra.mxu0 %v4005_v63  ;;  %v5558_v63 = vld [vmem:[#allocation27_spill] sm:$0xff] }
 0x2e0   : > { %v2741_v8 = vmul.f32 %v2644_v2, %v2393_v18  ;;  %v2664_v18 = vpop.permute.xlu1 %2663 }
 0x2e2   : > { %v2765_v21 = vpack.c.bf16 %v2741_v8, %v2740_v22 }
 0x2e3   : > { %v2306_v39 = vpop.f32.mrf.mxu2 }
 0x2e4   : > { %v2395_v48 = vpop.f32.mrf.mxu3  ;;  %3162 = vmatmul.bf16.gmra.mxu1 %v2765_v21  ;;  %v2307_v43 = vadd.f32 %v2306_v39, %v5202_v28  ;;  %v5343_v28 = vpop.f32.mrf.mxu0 }
 0x2e6   : > { %v2396_v36 = vadd.f32 %v2395_v48, %v2307_v43  ;;  %v2141_v43 = vadd.f32 %v5557_v19, %v5232_v23 }
 0x2e8   : > { %v2742_v47 = vmul.f32 %v2649_v49, %v2396_v36 }
 0x2eb   : > { %v2308_v7 = vpop.f32.mrf.mxu2 }
 0x2ec   : > { %v2397_v6 = vpop.f32.mrf.mxu3  ;;  %v2309_v42 = vadd.f32 %v2308_v7, %v2220_v34  ;;  %v5354_v57 = vpop.f32.mrf.mxu0 }
 0x2ee   : > { %v2398_v55 = vadd.f32 %v2397_v6, %v2309_v42  ;;  %v5559_v42 = vld [vmem:[#allocation26_spill] sm:$0xff] }
 0x2ef   : > { %3045 = vmatmul.bf16.gmra.mxu0 %v4006_v52 }
 0x2f0   : > { %v2743_v45 = vmul.f32 %v2654_v54, %v2398_v55  ;;  %v2230_v55 = vadd.f32 %v5559_v42, %v2141_v43 }
 0x2f1   : > { %v3128_v3 = vpop.f32.mrf.mxu1 }
 0x2f2   : > { %v2766_v0 = vpack.c.bf16 %v2743_v45, %v2742_v47  ;;  %v3129_v56 = vadd.f32 %v3128_v3, %v5321_v51  ;;  %v4007_v47 = vld [vmem:[%s4630_s14 + $0x60] sm:$0xff] }
 0x2f3   : > { %v2311_v30 = vpop.f32.mrf.mxu2 }
 0x2f4   : > { %v2400_v17 = vpop.f32.mrf.mxu3  ;;  %3167 = vmatmul.bf16.gmra.mxu1 %v2766_v0  ;;  %v2312_v16 = vadd.f32 %v2311_v30, %v5216_v38  ;;  %v3212_v46 = vadd.f32 %v5351_v1, %v3129_v56  ;;  %v2674_v56 = vpop.permute.xlu0 %2673 }
 0x2f6   : > { %v2401_v31 = vadd.f32 %v2400_v17, %v2312_v16  ;;  %v3244_v20 = vmax.f32 %v3212_v46, 0.0  ;;  %v2669_v16 = vpop.permute.xlu2 %2668 }
 0x2f8   : > { %v2744_v2 = vmul.f32 %v2659_v27, %v2401_v31 }
 0x2f9   : > { %v3130_v58 = vpop.f32.mrf.mxu1 }
 0x2fa   : > { %v3131_v9 = vadd.f32 %v3130_v58, %v2993_v37  ;;  %v5360_v37 = vpop.f32.mrf.mxu0 }
 0x2fb   : > { %v2313_v12 = vpop.f32.mrf.mxu2 }
 0x2fc   : > { %v2402_v4 = vpop.f32.mrf.mxu3  ;;  %v3213_v51 = vadd.f32 %v5351_v1, %v3131_v9  ;;  %v2314_v50 = vadd.f32 %v2313_v12, %v2225_v53 }
 0x2fe   : > { %v3245_v44 = vmax.f32 %v3213_v51, 0.0  ;;  %v2403_v38 = vadd.f32 %v2402_v4, %v2314_v50  ;;  %v5560_v4 = vld [vmem:[#allocation28_spill] sm:$0xff]  ;;  %v2684_v19 = vpop.permute.xlu2 %2683 }
 0x2ff   : > { %3050 = vmatmul.bf16.gmra.mxu0 %v4007_v47  ;;  %v2146_v31 = vadd.f32 %v5560_v4, %v5244_v62  ;;  %v5562_v47 = vld [vmem:[#allocation31_spill] sm:$0xff] }
 0x300   : > { %v4023_v40 = vpack.c.bf16 %v3245_v44, %v3244_v20  ;;  %v2745_v22 = vmul.f32 %v2664_v18, %v2403_v38 }
 0x301   : > { %v3133_v8 = vpop.f32.mrf.mxu1  ;;  %v2235_v38 = vadd.f32 %v5239_v60, %v2146_v31 }
 0x302   : > { %4024 = vst [vmem:[%s5364_s10] sm:$0xff] %v4023_v40   ;;  %v2767_v21 = vpack.c.bf16 %v2745_v22, %v2744_v2  ;;  %v3134_v34 = vadd.f32 %v3133_v8, %v5328_v13  ;;  %v5371_v36 = vpop.f32.mrf.mxu0  ;;  %v4008_v2 = vld [vmem:[%s4630_s14 + $0x68] sm:$0xff] }
 0x303   : > { %v2316_v39 = vpop.f32.mrf.mxu2 }
 0x304   : > { %v2405_v48 = vpop.f32.mrf.mxu3  ;;  %3172 = vmatmul.bf16.gmra.mxu1 %v2767_v21  ;;  %v2317_v7 = vadd.f32 %v2316_v39, %v5558_v63  ;;  %v3214_v49 = vadd.f32 %v5351_v1, %v3134_v34 }
 0x306   : > { %v2406_v0 = vadd.f32 %v2405_v48, %v2317_v7  ;;  %v3246_v13 = vmax.f32 %v3214_v49, 0.0  ;;  %v2679_v48 = vpop.permute.xlu1 %2678 }
 0x308   : > { %v2746_v58 = vmul.f32 %v2669_v16, %v2406_v0  ;;  %v5563_v0 = vld [vmem:[#allocation30_spill] sm:$0xff] }
 0x309   : > { %v3135_v6 = vpop.f32.mrf.mxu1 }
 0x30a   : > { %v3136_v54 = vadd.f32 %v3135_v6, %v5332_v15  ;;  %v5378_v15 = vpop.f32.mrf.mxu0 }
 0x30b   : > { %v2318_v45 = vpop.f32.mrf.mxu2 }
 0x30c   : > { %v2407_v3 = vpop.f32.mrf.mxu3  ;;  %v3215_v23 = vadd.f32 %v5351_v1, %v3136_v54  ;;  %v2319_v30 = vadd.f32 %v2318_v45, %v2230_v55  ;;  %v5561_v55 = vld [vmem:[#allocation29_spill] sm:$0xff] }
 0x30d   : > { %v2151_v49 = vadd.f32 %v5561_v55, %v5254_v59 }
 0x30e   : > { %v3247_v17 = vmax.f32 %v3215_v23, 0.0  ;;  %v2408_v35 = vadd.f32 %v2407_v3, %v2319_v30 }
 0x30f   : > { %3055 = vmatmul.bf16.gmra.mxu0 %v4008_v2  ;;  %v2240_v23 = vadd.f32 %v5563_v0, %v2151_v49 }
 0x310   : > { %v4028_v26 = vpack.c.bf16 %v3247_v17, %v3246_v13  ;;  %v2747_v53 = vmul.f32 %v2674_v56, %v2408_v35  ;;  %v4009_v35 = vld [vmem:[%s4630_s14 + $0x70] sm:$0xff] }
 0x311   : > { %v3138_v46 = vpop.f32.mrf.mxu1 }
 0x312   : > { %4100 = vst [vmem:[%s5364_s10 + $0x8] sm:$0xff] %v4028_v26   ;;  %v2768_v9 = vpack.c.bf16 %v2747_v53, %v2746_v58  ;;  %v3139_v51 = vadd.f32 %v3138_v46, %v5339_v33  ;;  %v5385_v44 = vpop.f32.mrf.mxu0 }
 0x313   : > { %v2321_v52 = vpop.f32.mrf.mxu2 }
 0x314   : > { %v2410_v12 = vpop.f32.mrf.mxu3  ;;  %3177 = vmatmul.bf16.gmra.mxu1 %v2768_v9  ;;  %v2322_v50 = vadd.f32 %v2321_v52, %v5241_v41  ;;  %v3216_v27 = vadd.f32 %v5351_v1, %v3139_v51  ;;  %v2689_v9 = vpop.permute.xlu0 %2688 }
 0x315   : > { %v2694_v52 = vpop.permute.xlu1 %2693 }
 0x316   : > { %v2411_v8 = vadd.f32 %v2410_v12, %v2322_v50  ;;  %v3248_v33 = vmax.f32 %v3216_v27, 0.0  ;;  %v2156_v27 = vadd.f32 %v5259_v11, %v5266_v32 }
 0x318   : > { %v2748_v43 = vmul.f32 %v2679_v48, %v2411_v8 }
 0x319   : > { %v3140_v20 = vpop.f32.mrf.mxu1 }
 0x31a   : > { %v3141_v18 = vadd.f32 %v3140_v20, %v5343_v28  ;;  %v5392_v28 = vpop.f32.mrf.mxu0 }
 0x31b   : > { %v2323_v40 = vpop.f32.mrf.mxu2 }
 0x31c   : > { %v2412_v22 = vpop.f32.mrf.mxu3  ;;  %v3217_v62 = vadd.f32 %v5351_v1, %v3141_v18  ;;  %v2324_v21 = vadd.f32 %v2323_v40, %v2235_v38 }
 0x31e   : > { %v3249_v41 = vmax.f32 %v3217_v62, 0.0  ;;  %v2413_v39 = vadd.f32 %v2412_v22, %v2324_v21  ;;  %v5564_v22 = vld [vmem:[#allocation32_spill] sm:$0xff] }
 0x31f   : > { %3060 = vmatmul.bf16.gmra.mxu0 %v4009_v35  ;;  %v2245_v8 = vadd.f32 %v5564_v22, %v2156_v27 }
 0x320   : > { %v4033_v60 = vpack.c.bf16 %v3249_v41, %v3248_v33  ;;  %v2749_v34 = vmul.f32 %v2684_v19, %v2413_v39  ;;  %v4010_v33 = vld [vmem:[%s4630_s14 + $0x78] sm:$0xff] }
 0x321   : > { %v3143_v63 = vpop.f32.mrf.mxu1 }
 0x322   : > { %4101 = vst [vmem:[%s5364_s10 + $0x10] sm:$0xff] %v4033_v60   ;;  %v2769_v7 = vpack.c.bf16 %v2749_v34, %v2748_v43  ;;  %v3144_v54 = vadd.f32 %v3143_v63, %v5354_v57  ;;  %v5402_v17 = vpop.f32.mrf.mxu0  ;;  %v2704_v60 = vpop.permute.xlu0 %2703 }
 0x323   : > { %v2326_v6 = vpop.f32.mrf.mxu2  ;;  %v2699_v34 = vpop.permute.xlu2 %2698 }
 0x324   : > { %v2415_v42 = vpop.f32.mrf.mxu3  ;;  %3182 = vmatmul.bf16.gmra.mxu1 %v2769_v7  ;;  %v2327_v45 = vadd.f32 %v2326_v6, %v5562_v47  ;;  %v3218_v30 = vadd.f32 %v5351_v1, %v3144_v54  ;;  %v2161_v54 = vadd.f32 %v5271_v29, %v5277_v10 }
 0x326   : > { %v2416_v58 = vadd.f32 %v2415_v42, %v2327_v45  ;;  %v3250_v57 = vmax.f32 %v3218_v30, 0.0  ;;  %v5565_v45 = vld [vmem:[#allocation33_spill] sm:$0xff]  ;;  %v5566_v30 = vld [vmem:[#allocation34_spill] sm:$0xff] }
 0x328   : > { %v2750_v12 = vmul.f32 %v2689_v9, %v2416_v58 }
 0x329   : > { %v3145_v3 = vpop.f32.mrf.mxu1 }
 0x32a   : > { %v3146_v13 = vadd.f32 %v3145_v3, %v5360_v37  ;;  %v5407_v38 = vpop.f32.mrf.mxu0 }
 0x32b   : > { %v2328_v56 = vpop.f32.mrf.mxu2 }
 0x32c   : > { %v2417_v16 = vpop.f32.mrf.mxu3  ;;  %v3219_v59 = vadd.f32 %v5351_v1, %v3146_v13  ;;  %v2329_v26 = vadd.f32 %v2328_v56, %v2240_v23  ;;  %v2250_v13 = vadd.f32 %v5566_v30, %v2161_v54 }
 0x32e   : > { %v3251_v53 = vmax.f32 %v3219_v59, 0.0  ;;  %v2418_v46 = vadd.f32 %v2417_v16, %v2329_v26 }
 0x32f   : > { %3065 = vmatmul.bf16.gmra.mxu0 %v4010_v33 }
 0x330   : > { %v4038_v4 = vpack.c.bf16 %v3251_v53, %v3250_v57  ;;  %v2751_v37 = vmul.f32 %v2694_v52, %v2418_v46  ;;  %v2709_v53 = vpop.permute.xlu1 %2708  ;;  %v2714_v46 = vpop.permute.xlu2 %2713 }
 0x331   : > { %v3148_v31 = vpop.f32.mrf.mxu1 }
 0x332   : > { %4102 = vst [vmem:[%s5364_s10 + $0x18] sm:$0xff] %v4038_v4   ;;  %v2770_v51 = vpack.c.bf16 %v2751_v37, %v2750_v12  ;;  %v3149_v18 = vadd.f32 %v3148_v31, %v5371_v36 }
 0x333   : > { %v2331_v50 = vpop.f32.mrf.mxu2 }
 0x334   : > { %v2420_v20 = vpop.f32.mrf.mxu3  ;;  %3187 = vmatmul.bf16.gmra.mxu1 %v2770_v51  ;;  %v2332_v2 = vadd.f32 %v2331_v50, %v5263_v61  ;;  %v3220_v62 = vadd.f32 %v5351_v1, %v3149_v18  ;;  %v5418_v61 = vpop.f32.mrf.mxu0  ;;  %v2166_v50 = vadd.f32 %v5316_v24, %v5286_v25 }
 0x336   : > { %v2421_v48 = vadd.f32 %v2420_v20, %v2332_v2  ;;  %v3252_v32 = vmax.f32 %v3220_v62, 0.0  ;;  %v2255_v2 = vadd.f32 %v5337_v14, %v2166_v50 }
 0x338   : > { %v2752_v63 = vmul.f32 %v2699_v34, %v2421_v48  ;;  %v2719_v48 = vpop.permute.xlu0 %2718 }
 0x339   : > { %v3150_v40 = vpop.f32.mrf.mxu1 }
 0x33a   : > { %v3151_v21 = vadd.f32 %v3150_v40, %v5378_v15 }
 0x33b   : > { %v2333_v41 = vpop.f32.mrf.mxu2 }
 0x33c   : > { %v2422_v39 = vpop.f32.mrf.mxu3  ;;  %v3221_v19 = vadd.f32 %v5351_v1, %v3151_v21  ;;  %v2334_v43 = vadd.f32 %v2333_v41, %v2245_v8  ;;  %v3028_v0 = vpop.f32.mrf.mxu0 }
 0x33e   : > { %v3253_v11 = vmax.f32 %v3221_v19, 0.0  ;;  %v2423_v36 = vadd.f32 %v2422_v39, %v2334_v43 }
 0x340   : > { %v4043_v7 = vpack.c.bf16 %v3253_v11, %v3252_v32  ;;  %v2753_v6 = vmul.f32 %v2704_v60, %v2423_v36 }
 0x341   : > { %v3153_v15 = vpop.f32.mrf.mxu1 }
 0x342   : > { %4103 = vst [vmem:[%s5364_s10 + $0x20] sm:$0xff] %v4043_v7   ;;  %v2771_v42 = vpack.c.bf16 %v2753_v6, %v2752_v63  ;;  %v3154_v47 = vadd.f32 %v3153_v15, %v5385_v44 }
 0x343   : > { %v2336_v55 = vpop.f32.mrf.mxu2 }
 0x344   : > { %v2425_v49 = vpop.f32.mrf.mxu3  ;;  %3192 = vmatmul.bf16.gmra.mxu1 %v2771_v42  ;;  %v2337_v3 = vadd.f32 %v2336_v55, %v5565_v45  ;;  %v3222_v35 = vadd.f32 %v5351_v1, %v3154_v47  ;;  %v3031_v31 = vpop.f32.mrf.mxu0 }
 0x346   : > { %v2426_v59 = vadd.f32 %v2425_v49, %v2337_v3  ;;  %v3254_v29 = vmax.f32 %v3222_v35, 0.0 }
 0x348   : > { %v2754_v9 = vmul.f32 %v2709_v53, %v2426_v59 }
 0x349   : > { %v3155_v23 = vpop.f32.mrf.mxu1 }
 0x34a   : > { %v3156_v56 = vadd.f32 %v3155_v23, %v5392_v28 }
 0x34b   : > { %v2338_v16 = vpop.f32.mrf.mxu2 }
 0x34c   : > { %v2427_v58 = vpop.f32.mrf.mxu3  ;;  %v3223_v26 = vadd.f32 %v5351_v1, %v3156_v56  ;;  %v2339_v57 = vadd.f32 %v2338_v16, %v2250_v13  ;;  %v3033_v39 = vpop.f32.mrf.mxu0 }
 0x34e   : > { %v3255_v10 = vmax.f32 %v3223_v26, 0.0  ;;  %v2428_v44 = vadd.f32 %v2427_v58, %v2339_v57 }
 0x350   : > { %v4048_v52 = vpack.c.bf16 %v3255_v10, %v3254_v29  ;;  %v2755_v12 = vmul.f32 %v2714_v46, %v2428_v44 }
 0x351   : > { %v3158_v4 = vpop.f32.mrf.mxu1 }
 0x352   : > { %4104 = vst [vmem:[%s5364_s10 + $0x28] sm:$0xff] %v4048_v52   ;;  %v2772_v37 = vpack.c.bf16 %v2755_v12, %v2754_v9  ;;  %v3159_v20 = vadd.f32 %v3158_v4, %v5402_v17 }
 0x353   : > { %v2341_v51 = vpop.f32.mrf.mxu2 }
 0x354   : > { %v2430_v28 = vpop.f32.mrf.mxu3  ;;  %3197 = vmatmul.bf16.gmra.mxu1 %v2772_v37  ;;  %v2342_v27 = vadd.f32 %v2341_v51, %v5282_v5  ;;  %v3224_v40 = vadd.f32 %v5351_v1, %v3159_v20  ;;  %v2724_v5 = vpop.permute.xlu1 %2723 }
 0x355   : > { %v3036_v36 = vpop.f32.mrf.mxu0 }
 0x356   : > { %v2431_v62 = vadd.f32 %v2430_v28, %v2342_v27  ;;  %v3256_v25 = vmax.f32 %v3224_v40, 0.0 }
 0x358   : > { %v2756_v19 = vmul.f32 %v2719_v48, %v2431_v62 }
 0x359   : > { %v3160_v18 = vpop.f32.mrf.mxu1 }
 0x35a   : > { %v3161_v22 = vadd.f32 %v3160_v18, %v5407_v38 }
 0x35b   : > { %v2343_v8 = vpop.f32.mrf.mxu2 }
 0x35c   : > { %v3225_v21 = vadd.f32 %v5351_v1, %v3161_v22  ;;  %v2344_v33 = vadd.f32 %v2343_v8, %v2255_v2  ;;  %v2432_v41 = vpop.f32.mrf.mxu3 }
 0x35d   : > { %v3038_v49 = vpop.f32.mrf.mxu0 }
 0x35e   : > { %v3257_v24 = vmax.f32 %v3225_v21, 0.0  ;;  %v2433_v17 = vadd.f32 %v2432_v41, %v2344_v33 }
 0x360   : > { %v4053_v43 = vpack.c.bf16 %v3257_v24, %v3256_v25  ;;  %v2757_v14 = vmul.f32 %v2724_v5, %v2433_v17 }
 0x361   : > { %v3163_v32 = vpop.f32.mrf.mxu1 }
 0x362   : > { %4105 = vst [vmem:[%s5364_s10 + $0x30] sm:$0xff] %v4053_v43   ;;  %v2773_v38 = vpack.c.bf16 %v2757_v14, %v2756_v19  ;;  %v3164_v11 = vadd.f32 %v3163_v32, %v5418_v61 }
 0x364   : > { %3202 = vmatmul.bf16.gmra.mxu1 %v2773_v38  ;;  %v3226_v34 = vadd.f32 %v5351_v1, %v3164_v11 }
 0x365   : > { %v3041_v61 = vpop.f32.mrf.mxu0 }
 0x366   : > { %v3258_v6 = vmax.f32 %v3226_v34, 0.0 }
 0x369   : > { %v3165_v60 = vpop.f32.mrf.mxu1 }
 0x36a   : > { %v3166_v63 = vadd.f32 %v3165_v60, %v3028_v0 }
 0x36c   : > { %v3227_v7 = vadd.f32 %v5351_v1, %v3166_v63 }
 0x36d   : > { %v3043_v56 = vpop.f32.mrf.mxu0 }
 0x36e   : > { %v3259_v15 = vmax.f32 %v3227_v7, 0.0 }
 0x370   : > { %v4058_v42 = vpack.c.bf16 %v3259_v15, %v3258_v6 }
 0x371   : > { %v3168_v55 = vpop.f32.mrf.mxu1 }
 0x372   : > { %4106 = vst [vmem:[%s5364_s10 + $0x38] sm:$0xff] %v4058_v42   ;;  %v3169_v54 = vadd.f32 %v3168_v55, %v3031_v31 }
 0x374   : > { %v3228_v45 = vadd.f32 %v5351_v1, %v3169_v54 }
 0x375   : > { %v3046_v44 = vpop.f32.mrf.mxu0 }
 0x376   : > { %v3260_v30 = vmax.f32 %v3228_v45, 0.0 }
 0x379   : > { %v3170_v47 = vpop.f32.mrf.mxu1 }
 0x37a   : > { %v3171_v3 = vadd.f32 %v3170_v47, %v3033_v39 }
 0x37c   : > { %v3229_v23 = vadd.f32 %v5351_v1, %v3171_v3 }
 0x37d   : > { %v3048_v12 = vpop.f32.mrf.mxu0 }
 0x37e   : > { %v3261_v0 = vmax.f32 %v3229_v23, 0.0 }
 0x380   : > { %v4063_v13 = vpack.c.bf16 %v3261_v0, %v3260_v30 }
 0x381   : > { %v3173_v35 = vpop.f32.mrf.mxu1 }
 0x382   : > { %4107 = vst [vmem:[%s5364_s10 + $0x40] sm:$0xff] %v4063_v13   ;;  %v3174_v16 = vadd.f32 %v3173_v35, %v3036_v36 }
 0x384   : > { %v3230_v59 = vadd.f32 %v5351_v1, %v3174_v16 }
 0x385   : > { %v3051_v27 = vpop.f32.mrf.mxu0 }
 0x386   : > { %v3262_v29 = vmax.f32 %v3230_v59, 0.0 }
 0x389   : > { %v3175_v58 = vpop.f32.mrf.mxu1 }
 0x38a   : > { %v3176_v26 = vadd.f32 %v3175_v58, %v3038_v49 }
 0x38c   : > { %v3231_v57 = vadd.f32 %v5351_v1, %v3176_v26 }
 0x38d   : > { %v3053_v62 = vpop.f32.mrf.mxu0 }
 0x38e   : > { %v3263_v10 = vmax.f32 %v3231_v57, 0.0 }
 0x390   : > { %v4068_v53 = vpack.c.bf16 %v3263_v10, %v3262_v29 }
 0x391   : > { %v3178_v46 = vpop.f32.mrf.mxu1 }
 0x392   : > { %4108 = vst [vmem:[%s5364_s10 + $0x48] sm:$0xff] %v4068_v53   ;;  %v3179_v9 = vadd.f32 %v3178_v46, %v3041_v61 }
 0x394   : > { %v3232_v4 = vadd.f32 %v5351_v1, %v3179_v9 }
 0x395   : > { %v3056_v24 = vpop.f32.mrf.mxu0 }
 0x396   : > { %v3264_v51 = vmax.f32 %v3232_v4, 0.0 }
 0x399   : > { %v3180_v52 = vpop.f32.mrf.mxu1 }
 0x39a   : > { %v3181_v37 = vadd.f32 %v3180_v52, %v3043_v56 }
 0x39c   : > { %v3233_v31 = vadd.f32 %v5351_v1, %v3181_v37 }
 0x39d   : > { %v3058_v38 = vpop.f32.mrf.mxu0 }
 0x39e   : > { %v3265_v28 = vmax.f32 %v3233_v31, 0.0 }
 0x3a0   : > { %v4073_v50 = vpack.c.bf16 %v3265_v28, %v3264_v51 }
 0x3a1   : > { %v3183_v20 = vpop.f32.mrf.mxu1 }
 0x3a2   : > { %4109 = vst [vmem:[%s5364_s10 + $0x50] sm:$0xff] %v4073_v50   ;;  %v3184_v18 = vadd.f32 %v3183_v20, %v3046_v44 }
 0x3a4   : > { %v3234_v40 = vadd.f32 %v5351_v1, %v3184_v18 }
 0x3a5   : > { %v3061_v7 = vpop.f32.mrf.mxu0 }
 0x3a6   : > { %v3266_v21 = vmax.f32 %v3234_v40, 0.0 }
 0x3a9   : > { %v3185_v2 = vpop.f32.mrf.mxu1 }
 0x3aa   : > { %v3186_v22 = vadd.f32 %v3185_v2, %v3048_v12 }
 0x3ac   : > { %v3235_v8 = vadd.f32 %v5351_v1, %v3186_v22 }
 0x3ad   : > { %v3063_v54 = vpop.f32.mrf.mxu0 }
 0x3ae   : > { %v3267_v33 = vmax.f32 %v3235_v8, 0.0 }
 0x3b0   : > { %v4078_v41 = vpack.c.bf16 %v3267_v33, %v3266_v21 }
 0x3b1   : > { %v3188_v39 = vpop.f32.mrf.mxu1 }
 0x3b2   : > { %4110 = vst [vmem:[%s5364_s10 + $0x58] sm:$0xff] %v4078_v41   ;;  %v3189_v25 = vadd.f32 %v3188_v39, %v3051_v27 }
 0x3b4   : > { %v3236_v48 = vadd.f32 %v5351_v1, %v3189_v25 }
 0x3b5   : > { %v3066_v13 = vpop.f32.mrf.mxu0 }
 0x3b6   : > { %v3268_v43 = vmax.f32 %v3236_v48, 0.0 }
 0x3b9   : > { %v3190_v17 = vpop.f32.mrf.mxu1 }
 0x3ba   : > { %v3191_v5 = vadd.f32 %v3190_v17, %v3053_v62 }
 0x3bc   : > { %v3237_v19 = vadd.f32 %v5351_v1, %v3191_v5 }
 0x3bd   : > { %v3068_v58 = vpop.f32.mrf.mxu0 }
 0x3be   : > { %v3269_v14 = vmax.f32 %v3237_v19, 0.0 }
 0x3c0   : > { %v4083_v32 = vpack.c.bf16 %v3269_v14, %v3268_v43 }
 0x3c1   : > { %v3193_v11 = vpop.f32.mrf.mxu1 }
 0x3c2   : > { %4111 = vst [vmem:[%s5364_s10 + $0x60] sm:$0xff] %v4083_v32   ;;  %v3194_v36 = vadd.f32 %v3193_v11, %v3056_v24 }
 0x3c4   : > { %v3238_v34 = vadd.f32 %v5351_v1, %v3194_v36 }
 0x3c6   : > { %v3270_v15 = vmax.f32 %v3238_v34, 0.0 }
 0x3c9   : > { %v3195_v60 = vpop.f32.mrf.mxu1 }
 0x3ca   : > { %v3196_v63 = vadd.f32 %v3195_v60, %v3058_v38 }
 0x3cc   : > { %v3239_v6 = vadd.f32 %v5351_v1, %v3196_v63 }
 0x3ce   : > { %v3271_v42 = vmax.f32 %v3239_v6, 0.0 }
 0x3d0   : > { %v4088_v55 = vpack.c.bf16 %v3271_v42, %v3270_v15 }
 0x3d1   : > { %v3198_v49 = vpop.f32.mrf.mxu1 }
 0x3d2   : > { %4112 = vst [vmem:[%s5364_s10 + $0x68] sm:$0xff] %v4088_v55   ;;  %v3199_v47 = vadd.f32 %v3198_v49, %v3061_v7 }
 0x3d4   : > { %v3240_v3 = vadd.f32 %v5351_v1, %v3199_v47 }
 0x3d6   : > { %v3272_v30 = vmax.f32 %v3240_v3, 0.0 }
 0x3d9   : > { %v3200_v45 = vpop.f32.mrf.mxu1 }
 0x3da   : > { %v3201_v61 = vadd.f32 %v3200_v45, %v3063_v54 }
 0x3dc   : > { %v3241_v23 = vadd.f32 %v5351_v1, %v3201_v61 }
 0x3de   : > { %v3273_v0 = vmax.f32 %v3241_v23, 0.0 }
 0x3e0   : > { %v4093_v35 = vpack.c.bf16 %v3273_v0, %v3272_v30 }
 0x3e1   : > { %v3203_v56 = vpop.f32.mrf.mxu1 }
 0x3e2   : > { %4113 = vst [vmem:[%s5364_s10 + $0x70] sm:$0xff] %v4093_v35   ;;  %v3204_v16 = vadd.f32 %v3203_v56, %v3066_v13 }
 0x3e4   : > { %v3242_v26 = vadd.f32 %v5351_v1, %v3204_v16 }
 0x3e6   : > { %v3274_v10 = vmax.f32 %v3242_v26, 0.0 }
 0x3e9   : > { %v3205_v59 = vpop.f32.mrf.mxu1 }
 0x3ea   : > { %v3206_v57 = vadd.f32 %v3205_v59, %v3068_v58 }
 0x3ec   : > { %v3243_v29 = vadd.f32 %v5351_v1, %v3206_v57 }
 0x3ee   : > { %v3275_v44 = vmax.f32 %v3243_v29, 0.0 }
 0x3f0   : > { %v4098_v53 = vpack.c.bf16 %v3275_v44, %v3274_v10 }
 0x3f2   : > { %4114 = vst [vmem:[%s5364_s10 + $0x78] sm:$0xff] %v4098_v53  }
 0x3f3   : > { %4376 = shalt.err (!%p4373_p3)
}
 0x3f4   : > { %s4451_s4 = smov 64   ;;  %s4452_s12 = smov 4  }
 0x3f5   : > { %4143 = dma.vmem_to_hbm [thread:$0]  (%p4578_p7), %s3354_s15, 2048, %s3356_s11, %s3341_s27, %s4451_s4, %s4451_s4, %s4452_s12  }
 0x3f6 PF: > { %s5567_s23 = sld [smem:[#allocation17_spill]]  ;;  %p4160_p5 = pnand %p3515_p11, %p4538_p6 }
 0x3f8   : > { %p4161_p9 = pneg %p4160_p5 }
 0x3fc   : > { %s3370_s20 = sand.u32 1, %s5567_s23  }
 0x3fd   : > { %s3371_s16 = scalar_lea.sflag [#allocation5], %s3370_s20 }
 0x3fe   : > { %4418 = dma.done.wait (%p4161_p9), %s3371_s16, 2048  }
 0x3ff   : > { %4420 = vsyncadd (%p4161_p9), %s3371_s16, 4294965248  ;;  %s27_s29 = sadd.s32 1, %s4443_s29   ;;  %s5569_s0 = sld [smem:[#allocation18_spill]] }
 0x400   : > { %p24_p2 = scmp.ge.s32.totalorder %s27_s29, 4   ;;  %s5570_s26 = sld [smem:[#allocation21_spill]] }
 0x401   : > { %s5571_s13 = sld [smem:[#allocation20_spill]]  ;;  %s5572_s24 = smov %s4427_s25 }
 0x402   : > { %s5574_s27 = smov %s4439_s28 }
 0x403   :  { %26 = sbr.rel (!%p24_p2) target bundleno = 13 (0xd), region = 128 }
 0x405   : > { %s5573_s25 = smov %s5569_s0 }
 0x407   : > { %s5575_s28 = smov %s5571_s13 }
 0x408   :  { %3377 = vsyncpa [#allocation4], 1 }
 0x409   :  { %3379 = vsyncpa [#allocation4 + $0x1], 1 }
 0x40a   :  { %3380 = vsyncpa [#allocation7], 1 }
 0x40b   :  { %3382 = vsyncpa [#allocation7 + $0x1], 1 }
 0x40c   :  { %3383 = vsyncpa [#allocation10], 1 }
 0x40d   :  { %3384 = vsyncpa [#allocation5], 1 }
 0x40e   :  { %3386 = vsyncpa [#allocation5 + $0x1], 1 }

</bundles_post_ra>
